<compile_context>
chip_gen: v6e
topology: v6e:2x2x1
jax: 0.10.0
libtpu: 0.0.40
codegen_flags: <defaults>
</compile_context>

<pallas_src>
import jax
import jax.numpy as jnp
from jax.experimental import pallas as pl
from jax.experimental.pallas import tpu as pltpu


def _leaky_relu(x, slope=0.01):
    # F.leaky_relu default negative_slope = 0.01
    return jnp.where(x > 0, x, slope * x)


def ae_lipmlp_kernel(x_ref, pos_ref,
                     w1_ref, b1_ref, w2_ref, b2_ref, w3_ref, b3_ref,
                     w4_ref, b4_ref,
                     w5z_ref, w5p_ref, b5_ref,
                     w6_ref, b6_ref, w7_ref, b7_ref, w8_ref, b8_ref,
                     out_ref):
    def dense(h, w_ref, b_ref):
        # MXU matmul in the weights' dtype (bf16), f32 accumulation, f32 bias add.
        return jnp.dot(h.astype(w_ref.dtype), w_ref[...],
                       preferred_element_type=jnp.float32) + b_ref[...]

    x = x_ref[...]        # (TILE_B, 784) f32
    pos = pos_ref[...]    # (TILE_B, 2) f32; the x100 scale is folded into w5p

    # --- encode ---
    h1 = _leaky_relu(dense(x, w1_ref, b1_ref))
    h2 = _leaky_relu(dense(h1, w2_ref, b2_ref))
    h3 = _leaky_relu(dense(h2, w3_ref, b3_ref))
    z = jax.nn.sigmoid(_leaky_relu(dense(h3, w4_ref, b4_ref)))

    # --- decode ---
    # torch.cat((z, position*100), 1) @ W5 == z @ W5[:32] + (position*100) @ W5[32:]
    # The depth-2 position contraction runs on the VPU (broadcast FMA), not the MXU.
    pos_term = (pos[:, 0:1] * w5p_ref[0:1, :] + pos[:, 1:2] * w5p_ref[1:2, :])
    h4 = _leaky_relu(dense(z, w5z_ref, b5_ref) + pos_term)
    h5 = _leaky_relu(dense(h4, w6_ref, b6_ref))
    h6 = _leaky_relu(dense(h5, w7_ref, b7_ref))

    # fc8: 128 -> 1 as VPU multiply + cross-lane reduce (avoids an N=1 MXU pass).
    sdf = jnp.sum(h6 * w8_ref[...], axis=-1, keepdims=True) + b8_ref[...]
    out_ref[...] = sdf.astype(out_ref.dtype)


def init_params(key):
    """Deterministic nn.Linear-style init: U(-1/sqrt(fan_in), 1/sqrt(fan_in)).

    Stored in PyTorch convention: W (out, in), b (out,).
    """
    layer_dims = [(784, 256), (256, 128), (128, 64), (64, 32),
                  (34, 128), (128, 128), (128, 128), (128, 1)]
    params = []
    for (fan_in, fan_out) in layer_dims:
        key, kw, kb = jax.random.split(key, 3)
        bound = 1.0 / jnp.sqrt(fan_in)
        W = jax.random.uniform(kw, (fan_out, fan_in), jnp.float32, -bound, bound)
        b = jax.random.uniform(kb, (fan_out,), jnp.float32, -bound, bound)
        params.append((W, b))
    return params


def prepare_params(params, weight_dtype=jnp.bfloat16):
    """One-time parameter prep (hoisted out of the per-call path):
       - transpose all weights to (in, out),
       - split fc5 into its z (32-wide, MXU/bf16) and position (2-wide, VPU/f32) parts,
       - fold the x100 position scale into the position part of fc5,
       - keep fc8 as a (1, 128) f32 row for the VPU reduce path,
       - biases as (1, out) f32.
    """
    (w1, b1), (w2, b2), (w3, b3), (w4, b4), \
        (w5, b5), (w6, b6), (w7, b7), (w8, b8) = params

    def t(w):
        return jnp.asarray(w.T, dtype=weight_dtype)

    def bias(b):
        return jnp.asarray(b, jnp.float32).reshape(1, -1)

    w5t = jnp.asarray(w5.T, jnp.float32)           # (34, 128)
    w5z = w5t[:32, :].astype(weight_dtype)          # z part, MXU path
    w5p = w5t[32:, :] * 100.0                       # position part (x100 folded), VPU path
    w8_row = jnp.asarray(w8, jnp.float32)           # (1, 128), VPU/XLU path

    return dict(
        w1=t(w1), b1=bias(b1), w2=t(w2), b2=bias(b2),
        w3=t(w3), b3=bias(b3), w4=t(w4), b4=bias(b4),
        w5z=w5z, w5p=w5p, b5=bias(b5),
        w6=t(w6), b6=bias(b6), w7=t(w7), b7=bias(b7),
        w8=w8_row, b8=bias(b8),
    )


def ae_lipmlp_forward(x, position, prep, *, tile_b=256):
    """Forward pass. `prep` is the output of prepare_params (computed once)."""
    B = x.shape[0]
    num_tiles = pl.cdiv(B, tile_b)
    pad_b = num_tiles * tile_b
    if pad_b != B:
        x = jnp.pad(x, ((0, pad_b - B), (0, 0)))
        position = jnp.pad(position, ((0, pad_b - B), (0, 0)))

    operands = [
        x, position,
        prep["w1"], prep["b1"], prep["w2"], prep["b2"],
        prep["w3"], prep["b3"], prep["w4"], prep["b4"],
        prep["w5z"], prep["w5p"], prep["b5"],
        prep["w6"], prep["b6"], prep["w7"], prep["b7"],
        prep["w8"], prep["b8"],
    ]

    # x / position / out are tiled over the batch grid axis; weights & biases are
    # full-array blocks whose index_map is constant, so they stay VMEM-resident.
    in_specs = [
        pl.BlockSpec((tile_b, x.shape[1]), lambda i: (i, 0)),
        pl.BlockSpec((tile_b, position.shape[1]), lambda i: (i, 0)),
    ] + [pl.BlockSpec(op.shape, lambda i: (0, 0)) for op in operands[2:]]

    out = pl.pallas_call(
        ae_lipmlp_kernel,
        out_shape=jax.ShapeDtypeStruct((pad_b, 1), jnp.float32),
        grid=(num_tiles,),
        in_specs=in_specs,
        out_specs=pl.BlockSpec((tile_b, 1), lambda i: (i, 0)),
        compiler_params=pltpu.CompilerParams(
            dimension_semantics=("parallel",)),
    )(*operands)
    return out[:B]


if __name__ == "__main__":
    key = jax.random.PRNGKey(0)
    kp, kx, kpos = jax.random.split(key, 3)

    params = init_params(kp)
    prep = prepare_params(params)   # one-time: transpose / split / scale-fold / bf16 cast

    B = 8
    x = jax.random.normal(kx, (B, 784), jnp.float32)          # flattened 28x28 input
    position = jax.random.uniform(kpos, (B, 2), jnp.float32)  # 2-D query position

    sdf = ae_lipmlp_forward(x, position, prep, tile_b=256)
    jax.block_until_ready(sdf)
    assert sdf.shape == (B, 1) and sdf.dtype == jnp.float32
    print("KERNEL_OK")
</pallas_src>

<mosaic_0001>
module attributes {stable_mosaic.version = 11 : i64} {
  func.func @ae_lipmlp_kernel(%arg0: i32, %arg1: memref<256x784xf32, #tpu.memory_space<vmem>>, %arg2: memref<256x2xf32, #tpu.memory_space<vmem>>, %arg3: memref<784x256xbf16, #tpu.memory_space<vmem>>, %arg4: memref<1x256xf32, #tpu.memory_space<vmem>>, %arg5: memref<256x128xbf16, #tpu.memory_space<vmem>>, %arg6: memref<1x128xf32, #tpu.memory_space<vmem>>, %arg7: memref<128x64xbf16, #tpu.memory_space<vmem>>, %arg8: memref<1x64xf32, #tpu.memory_space<vmem>>, %arg9: memref<64x32xbf16, #tpu.memory_space<vmem>>, %arg10: memref<1x32xf32, #tpu.memory_space<vmem>>, %arg11: memref<32x128xbf16, #tpu.memory_space<vmem>>, %arg12: memref<2x128xf32, #tpu.memory_space<vmem>>, %arg13: memref<1x128xf32, #tpu.memory_space<vmem>>, %arg14: memref<128x128xbf16, #tpu.memory_space<vmem>>, %arg15: memref<1x128xf32, #tpu.memory_space<vmem>>, %arg16: memref<128x128xbf16, #tpu.memory_space<vmem>>, %arg17: memref<1x128xf32, #tpu.memory_space<vmem>>, %arg18: memref<1x128xf32, #tpu.memory_space<vmem>>, %arg19: memref<1x1xf32, #tpu.memory_space<vmem>>, %arg20: memref<256x1xf32, #tpu.memory_space<vmem>>) attributes {dimension_semantics = [#tpu.dimension_semantics<parallel>], iteration_bounds = array<i64: 1>, scalar_prefetch = 0 : i64, scratch_operands = 0 : i64, tpu.core_type = #tpu.core_type<tc>, window_params = [{transform_indices = @transform_0, window_bounds = array<i64: 256, 784>}, {transform_indices = @transform_1, window_bounds = array<i64: 256, 2>}, {pipeline_mode = #tpu.pipeline_mode<synchronous>, transform_indices = @transform_2, window_bounds = array<i64: 784, 256>}, {pipeline_mode = #tpu.pipeline_mode<synchronous>, transform_indices = @transform_3, window_bounds = array<i64: 1, 256>}, {pipeline_mode = #tpu.pipeline_mode<synchronous>, transform_indices = @transform_4, window_bounds = array<i64: 256, 128>}, {pipeline_mode = #tpu.pipeline_mode<synchronous>, transform_indices = @transform_5, window_bounds = array<i64: 1, 128>}, {pipeline_mode = #tpu.pipeline_mode<synchronous>, transform_indices = @transform_6, window_bounds = array<i64: 128, 64>}, {pipeline_mode = #tpu.pipeline_mode<synchronous>, transform_indices = @transform_7, window_bounds = array<i64: 1, 64>}, {pipeline_mode = #tpu.pipeline_mode<synchronous>, transform_indices = @transform_8, window_bounds = array<i64: 64, 32>}, {pipeline_mode = #tpu.pipeline_mode<synchronous>, transform_indices = @transform_9, window_bounds = array<i64: 1, 32>}, {pipeline_mode = #tpu.pipeline_mode<synchronous>, transform_indices = @transform_10, window_bounds = array<i64: 32, 128>}, {pipeline_mode = #tpu.pipeline_mode<synchronous>, transform_indices = @transform_11, window_bounds = array<i64: 2, 128>}, {pipeline_mode = #tpu.pipeline_mode<synchronous>, transform_indices = @transform_12, window_bounds = array<i64: 1, 128>}, {pipeline_mode = #tpu.pipeline_mode<synchronous>, transform_indices = @transform_13, window_bounds = array<i64: 128, 128>}, {pipeline_mode = #tpu.pipeline_mode<synchronous>, transform_indices = @transform_14, window_bounds = array<i64: 1, 128>}, {pipeline_mode = #tpu.pipeline_mode<synchronous>, transform_indices = @transform_15, window_bounds = array<i64: 128, 128>}, {pipeline_mode = #tpu.pipeline_mode<synchronous>, transform_indices = @transform_16, window_bounds = array<i64: 1, 128>}, {pipeline_mode = #tpu.pipeline_mode<synchronous>, transform_indices = @transform_17, window_bounds = array<i64: 1, 128>}, {pipeline_mode = #tpu.pipeline_mode<synchronous>, transform_indices = @transform_18, window_bounds = array<i64: 1, 1>}, {transform_indices = @transform_19, window_bounds = array<i64: 256, 1>}]} {
    %c0 = arith.constant 0 : index
    %c0_0 = arith.constant 0 : index
    %0 = vector.load %arg1[%c0, %c0_0] : memref<256x784xf32, #tpu.memory_space<vmem>>, vector<256x784xf32>
    %c0_1 = arith.constant 0 : index
    %c0_2 = arith.constant 0 : index
    %1 = vector.load %arg2[%c0_1, %c0_2] : memref<256x2xf32, #tpu.memory_space<vmem>>, vector<256x2xf32>
    %2 = arith.truncf %0 : vector<256x784xf32> to vector<256x784xbf16>
    %c0_3 = arith.constant 0 : index
    %c0_4 = arith.constant 0 : index
    %3 = vector.load %arg3[%c0_3, %c0_4] : memref<784x256xbf16, #tpu.memory_space<vmem>>, vector<784x256xbf16>
    %cst = arith.constant dense<0.000000e+00> : vector<256x256xf32>
    %4 = tpu.matmul %2, %3, %cst {dimension_numbers = #tpu.dot_dimension_numbers<[1], [0], [0], [1], [0, 0, 1, 1], [], []>} : vector<256x784xbf16>, vector<784x256xbf16>, vector<256x256xf32> -> vector<256x256xf32>
    %c0_5 = arith.constant 0 : index
    %c0_6 = arith.constant 0 : index
    %5 = vector.load %arg4[%c0_5, %c0_6] : memref<1x256xf32, #tpu.memory_space<vmem>>, vector<1x256xf32>
    %6 = vector.broadcast %5 : vector<1x256xf32> to vector<256x256xf32>
    %7 = arith.addf %4, %6 : vector<256x256xf32>
    %cst_7 = arith.constant 0.000000e+00 : f32
    %8 = vector.broadcast %cst_7 : f32 to vector<256x256xf32>
    %9 = arith.cmpf ogt, %7, %8 : vector<256x256xf32>
    %cst_8 = arith.constant 0.00999999977 : f32
    %10 = vector.broadcast %cst_8 : f32 to vector<256x256xf32>
    %11 = arith.mulf %10, %7 : vector<256x256xf32>
    %12 = arith.select %9, %7, %11 : vector<256x256xi1>, vector<256x256xf32>
    %13 = arith.truncf %12 : vector<256x256xf32> to vector<256x256xbf16>
    %c0_9 = arith.constant 0 : index
    %c0_10 = arith.constant 0 : index
    %14 = vector.load %arg5[%c0_9, %c0_10] : memref<256x128xbf16, #tpu.memory_space<vmem>>, vector<256x128xbf16>
    %cst_11 = arith.constant dense<0.000000e+00> : vector<256x128xf32>
    %15 = tpu.matmul %13, %14, %cst_11 {dimension_numbers = #tpu.dot_dimension_numbers<[1], [0], [0], [1], [0, 0, 1, 1], [], []>} : vector<256x256xbf16>, vector<256x128xbf16>, vector<256x128xf32> -> vector<256x128xf32>
    %c0_12 = arith.constant 0 : index
    %c0_13 = arith.constant 0 : index
    %16 = vector.load %arg6[%c0_12, %c0_13] : memref<1x128xf32, #tpu.memory_space<vmem>>, vector<1x128xf32>
    %17 = vector.broadcast %16 : vector<1x128xf32> to vector<256x128xf32>
    %18 = arith.addf %15, %17 : vector<256x128xf32>
    %cst_14 = arith.constant 0.000000e+00 : f32
    %19 = vector.broadcast %cst_14 : f32 to vector<256x128xf32>
    %20 = arith.cmpf ogt, %18, %19 : vector<256x128xf32>
    %cst_15 = arith.constant 0.00999999977 : f32
    %21 = vector.broadcast %cst_15 : f32 to vector<256x128xf32>
    %22 = arith.mulf %21, %18 : vector<256x128xf32>
    %23 = arith.select %20, %18, %22 : vector<256x128xi1>, vector<256x128xf32>
    %24 = arith.truncf %23 : vector<256x128xf32> to vector<256x128xbf16>
    %c0_16 = arith.constant 0 : index
    %c0_17 = arith.constant 0 : index
    %25 = vector.load %arg7[%c0_16, %c0_17] : memref<128x64xbf16, #tpu.memory_space<vmem>>, vector<128x64xbf16>
    %cst_18 = arith.constant dense<0.000000e+00> : vector<256x64xf32>
    %26 = tpu.matmul %24, %25, %cst_18 {dimension_numbers = #tpu.dot_dimension_numbers<[1], [0], [0], [1], [0, 0, 1, 1], [], []>} : vector<256x128xbf16>, vector<128x64xbf16>, vector<256x64xf32> -> vector<256x64xf32>
    %c0_19 = arith.constant 0 : index
    %c0_20 = arith.constant 0 : index
    %27 = vector.load %arg8[%c0_19, %c0_20] : memref<1x64xf32, #tpu.memory_space<vmem>>, vector<1x64xf32>
    %28 = vector.broadcast %27 : vector<1x64xf32> to vector<256x64xf32>
    %29 = arith.addf %26, %28 : vector<256x64xf32>
    %cst_21 = arith.constant 0.000000e+00 : f32
    %30 = vector.broadcast %cst_21 : f32 to vector<256x64xf32>
    %31 = arith.cmpf ogt, %29, %30 : vector<256x64xf32>
    %cst_22 = arith.constant 0.00999999977 : f32
    %32 = vector.broadcast %cst_22 : f32 to vector<256x64xf32>
    %33 = arith.mulf %32, %29 : vector<256x64xf32>
    %34 = arith.select %31, %29, %33 : vector<256x64xi1>, vector<256x64xf32>
    %35 = arith.truncf %34 : vector<256x64xf32> to vector<256x64xbf16>
    %c0_23 = arith.constant 0 : index
    %c0_24 = arith.constant 0 : index
    %36 = vector.load %arg9[%c0_23, %c0_24] : memref<64x32xbf16, #tpu.memory_space<vmem>>, vector<64x32xbf16>
    %cst_25 = arith.constant dense<0.000000e+00> : vector<256x32xf32>
    %37 = tpu.matmul %35, %36, %cst_25 {dimension_numbers = #tpu.dot_dimension_numbers<[1], [0], [0], [1], [0, 0, 1, 1], [], []>} : vector<256x64xbf16>, vector<64x32xbf16>, vector<256x32xf32> -> vector<256x32xf32>
    %c0_26 = arith.constant 0 : index
    %c0_27 = arith.constant 0 : index
    %38 = vector.load %arg10[%c0_26, %c0_27] : memref<1x32xf32, #tpu.memory_space<vmem>>, vector<1x32xf32>
    %39 = vector.broadcast %38 : vector<1x32xf32> to vector<256x32xf32>
    %40 = arith.addf %37, %39 : vector<256x32xf32>
    %cst_28 = arith.constant 0.000000e+00 : f32
    %41 = vector.broadcast %cst_28 : f32 to vector<256x32xf32>
    %42 = arith.cmpf ogt, %40, %41 : vector<256x32xf32>
    %cst_29 = arith.constant 0.00999999977 : f32
    %43 = vector.broadcast %cst_29 : f32 to vector<256x32xf32>
    %44 = arith.mulf %43, %40 : vector<256x32xf32>
    %45 = arith.select %42, %40, %44 : vector<256x32xi1>, vector<256x32xf32>
    %46 = arith.negf %45 : vector<256x32xf32>
    %47 = math.exp %46 : vector<256x32xf32>
    %cst_30 = arith.constant 1.000000e+00 : f32
    %48 = vector.broadcast %cst_30 : f32 to vector<256x32xf32>
    %49 = arith.addf %48, %47 : vector<256x32xf32>
    %50 = arith.divf %48, %49 : vector<256x32xf32>
    %51 = vector.extract_strided_slice %1 {offsets = [0, 0], sizes = [256, 1], strides = [1, 1]} : vector<256x2xf32> to vector<256x1xf32>
    %c0_31 = arith.constant 0 : index
    %c0_32 = arith.constant 0 : index
    %52 = vector.load %arg12[%c0_31, %c0_32] : memref<2x128xf32, #tpu.memory_space<vmem>>, vector<1x128xf32>
    %53 = vector.broadcast %51 : vector<256x1xf32> to vector<256x128xf32>
    %54 = vector.broadcast %52 : vector<1x128xf32> to vector<256x128xf32>
    %55 = arith.mulf %53, %54 : vector<256x128xf32>
    %56 = vector.extract_strided_slice %1 {offsets = [0, 1], sizes = [256, 1], strides = [1, 1]} : vector<256x2xf32> to vector<256x1xf32>
    %c1 = arith.constant 1 : index
    %c0_33 = arith.constant 0 : index
    %57 = vector.load %arg12[%c1, %c0_33] : memref<2x128xf32, #tpu.memory_space<vmem>>, vector<1x128xf32>
    %58 = vector.broadcast %56 : vector<256x1xf32> to vector<256x128xf32>
    %59 = vector.broadcast %57 : vector<1x128xf32> to vector<256x128xf32>
    %60 = arith.mulf %58, %59 : vector<256x128xf32>
    %61 = arith.addf %55, %60 : vector<256x128xf32>
    %62 = arith.truncf %50 : vector<256x32xf32> to vector<256x32xbf16>
    %c0_34 = arith.constant 0 : index
    %c0_35 = arith.constant 0 : index
    %63 = vector.load %arg11[%c0_34, %c0_35] : memref<32x128xbf16, #tpu.memory_space<vmem>>, vector<32x128xbf16>
    %cst_36 = arith.constant dense<0.000000e+00> : vector<256x128xf32>
    %64 = tpu.matmul %62, %63, %cst_36 {dimension_numbers = #tpu.dot_dimension_numbers<[1], [0], [0], [1], [0, 0, 1, 1], [], []>} : vector<256x32xbf16>, vector<32x128xbf16>, vector<256x128xf32> -> vector<256x128xf32>
    %c0_37 = arith.constant 0 : index
    %c0_38 = arith.constant 0 : index
    %65 = vector.load %arg13[%c0_37, %c0_38] : memref<1x128xf32, #tpu.memory_space<vmem>>, vector<1x128xf32>
    %66 = vector.broadcast %65 : vector<1x128xf32> to vector<256x128xf32>
    %67 = arith.addf %64, %66 : vector<256x128xf32>
    %68 = arith.addf %67, %61 : vector<256x128xf32>
    %cst_39 = arith.constant 0.000000e+00 : f32
    %69 = vector.broadcast %cst_39 : f32 to vector<256x128xf32>
    %70 = arith.cmpf ogt, %68, %69 : vector<256x128xf32>
    %cst_40 = arith.constant 0.00999999977 : f32
    %71 = vector.broadcast %cst_40 : f32 to vector<256x128xf32>
    %72 = arith.mulf %71, %68 : vector<256x128xf32>
    %73 = arith.select %70, %68, %72 : vector<256x128xi1>, vector<256x128xf32>
    %74 = arith.truncf %73 : vector<256x128xf32> to vector<256x128xbf16>
    %c0_41 = arith.constant 0 : index
    %c0_42 = arith.constant 0 : index
    %75 = vector.load %arg14[%c0_41, %c0_42] : memref<128x128xbf16, #tpu.memory_space<vmem>>, vector<128x128xbf16>
    %cst_43 = arith.constant dense<0.000000e+00> : vector<256x128xf32>
    %76 = tpu.matmul %74, %75, %cst_43 {dimension_numbers = #tpu.dot_dimension_numbers<[1], [0], [0], [1], [0, 0, 1, 1], [], []>} : vector<256x128xbf16>, vector<128x128xbf16>, vector<256x128xf32> -> vector<256x128xf32>
    %c0_44 = arith.constant 0 : index
    %c0_45 = arith.constant 0 : index
    %77 = vector.load %arg15[%c0_44, %c0_45] : memref<1x128xf32, #tpu.memory_space<vmem>>, vector<1x128xf32>
    %78 = vector.broadcast %77 : vector<1x128xf32> to vector<256x128xf32>
    %79 = arith.addf %76, %78 : vector<256x128xf32>
    %cst_46 = arith.constant 0.000000e+00 : f32
    %80 = vector.broadcast %cst_46 : f32 to vector<256x128xf32>
    %81 = arith.cmpf ogt, %79, %80 : vector<256x128xf32>
    %cst_47 = arith.constant 0.00999999977 : f32
    %82 = vector.broadcast %cst_47 : f32 to vector<256x128xf32>
    %83 = arith.mulf %82, %79 : vector<256x128xf32>
    %84 = arith.select %81, %79, %83 : vector<256x128xi1>, vector<256x128xf32>
    %85 = arith.truncf %84 : vector<256x128xf32> to vector<256x128xbf16>
    %c0_48 = arith.constant 0 : index
    %c0_49 = arith.constant 0 : index
    %86 = vector.load %arg16[%c0_48, %c0_49] : memref<128x128xbf16, #tpu.memory_space<vmem>>, vector<128x128xbf16>
    %cst_50 = arith.constant dense<0.000000e+00> : vector<256x128xf32>
    %87 = tpu.matmul %85, %86, %cst_50 {dimension_numbers = #tpu.dot_dimension_numbers<[1], [0], [0], [1], [0, 0, 1, 1], [], []>} : vector<256x128xbf16>, vector<128x128xbf16>, vector<256x128xf32> -> vector<256x128xf32>
    %c0_51 = arith.constant 0 : index
    %c0_52 = arith.constant 0 : index
    %88 = vector.load %arg17[%c0_51, %c0_52] : memref<1x128xf32, #tpu.memory_space<vmem>>, vector<1x128xf32>
    %89 = vector.broadcast %88 : vector<1x128xf32> to vector<256x128xf32>
    %90 = arith.addf %87, %89 : vector<256x128xf32>
    %cst_53 = arith.constant 0.000000e+00 : f32
    %91 = vector.broadcast %cst_53 : f32 to vector<256x128xf32>
    %92 = arith.cmpf ogt, %90, %91 : vector<256x128xf32>
    %cst_54 = arith.constant 0.00999999977 : f32
    %93 = vector.broadcast %cst_54 : f32 to vector<256x128xf32>
    %94 = arith.mulf %93, %90 : vector<256x128xf32>
    %95 = arith.select %92, %90, %94 : vector<256x128xi1>, vector<256x128xf32>
    %c0_55 = arith.constant 0 : index
    %c0_56 = arith.constant 0 : index
    %96 = vector.load %arg18[%c0_55, %c0_56] : memref<1x128xf32, #tpu.memory_space<vmem>>, vector<1x128xf32>
    %97 = vector.broadcast %96 : vector<1x128xf32> to vector<256x128xf32>
    %98 = arith.mulf %95, %97 : vector<256x128xf32>
    %cst_57 = arith.constant dense<0.000000e+00> : vector<256xf32>
    %99 = vector.multi_reduction <add>, %98, %cst_57 [1] : vector<256x128xf32> to vector<256xf32>
    %100 = vector.shape_cast %99 : vector<256xf32> to vector<256x1xf32>
    %c0_58 = arith.constant 0 : index
    %c0_59 = arith.constant 0 : index
    %101 = vector.load %arg19[%c0_58, %c0_59] : memref<1x1xf32, #tpu.memory_space<vmem>>, vector<1x1xf32>
    %102 = vector.broadcast %101 : vector<1x1xf32> to vector<256x1xf32>
    %103 = arith.addf %100, %102 : vector<256x1xf32>
    %c0_60 = arith.constant 0 : index
    %c0_61 = arith.constant 0 : index
    %104 = vector.load %arg20[%c0_60, %c0_61] : memref<256x1xf32, #tpu.memory_space<vmem>>, vector<256x1xf32>
    tpu.vector_store %arg20[%c0_60, %c0_61], %103 {strides = array<i32>} : memref<256x1xf32, #tpu.memory_space<vmem>>, vector<256x1xf32>,
    return
  }
  func.func @transform_0(%arg0: i32) -> (i32, i32) {
    %c0_i32 = arith.constant 0 : i32
    %c0_i32_0 = arith.constant 0 : i32
    return %arg0, %c0_i32 : i32, i32
  }
  func.func @transform_1(%arg0: i32) -> (i32, i32) {
    %c0_i32 = arith.constant 0 : i32
    %c0_i32_0 = arith.constant 0 : i32
    return %arg0, %c0_i32 : i32, i32
  }
  func.func @transform_2(%arg0: i32) -> (i32, i32) {
    %c0_i32 = arith.constant 0 : i32
    %c0_i32_0 = arith.constant 0 : i32
    %c0_i32_1 = arith.constant 0 : i32
    return %c0_i32, %c0_i32_0 : i32, i32
  }
  func.func @transform_3(%arg0: i32) -> (i32, i32) {
    %c0_i32 = arith.constant 0 : i32
    %c0_i32_0 = arith.constant 0 : i32
    %c0_i32_1 = arith.constant 0 : i32
    return %c0_i32, %c0_i32_0 : i32, i32
  }
  func.func @transform_4(%arg0: i32) -> (i32, i32) {
    %c0_i32 = arith.constant 0 : i32
    %c0_i32_0 = arith.constant 0 : i32
    %c0_i32_1 = arith.constant 0 : i32
    return %c0_i32, %c0_i32_0 : i32, i32
  }
  func.func @transform_5(%arg0: i32) -> (i32, i32) {
    %c0_i32 = arith.constant 0 : i32
    %c0_i32_0 = arith.constant 0 : i32
    %c0_i32_1 = arith.constant 0 : i32
    return %c0_i32, %c0_i32_0 : i32, i32
  }
  func.func @transform_6(%arg0: i32) -> (i32, i32) {
    %c0_i32 = arith.constant 0 : i32
    %c0_i32_0 = arith.constant 0 : i32
    %c0_i32_1 = arith.constant 0 : i32
    return %c0_i32, %c0_i32_0 : i32, i32
  }
  func.func @transform_7(%arg0: i32) -> (i32, i32) {
    %c0_i32 = arith.constant 0 : i32
    %c0_i32_0 = arith.constant 0 : i32
    %c0_i32_1 = arith.constant 0 : i32
    return %c0_i32, %c0_i32_0 : i32, i32
  }
  func.func @transform_8(%arg0: i32) -> (i32, i32) {
    %c0_i32 = arith.constant 0 : i32
    %c0_i32_0 = arith.constant 0 : i32
    %c0_i32_1 = arith.constant 0 : i32
    return %c0_i32, %c0_i32_0 : i32, i32
  }
  func.func @transform_9(%arg0: i32) -> (i32, i32) {
    %c0_i32 = arith.constant 0 : i32
    %c0_i32_0 = arith.constant 0 : i32
    %c0_i32_1 = arith.constant 0 : i32
    return %c0_i32, %c0_i32_0 : i32, i32
  }
  func.func @transform_10(%arg0: i32) -> (i32, i32) {
    %c0_i32 = arith.constant 0 : i32
    %c0_i32_0 = arith.constant 0 : i32
    %c0_i32_1 = arith.constant 0 : i32
    return %c0_i32, %c0_i32_0 : i32, i32
  }
  func.func @transform_11(%arg0: i32) -> (i32, i32) {
    %c0_i32 = arith.constant 0 : i32
    %c0_i32_0 = arith.constant 0 : i32
    %c0_i32_1 = arith.constant 0 : i32
    return %c0_i32, %c0_i32_0 : i32, i32
  }
  func.func @transform_12(%arg0: i32) -> (i32, i32) {
    %c0_i32 = arith.constant 0 : i32
    %c0_i32_0 = arith.constant 0 : i32
    %c0_i32_1 = arith.constant 0 : i32
    return %c0_i32, %c0_i32_0 : i32, i32
  }
  func.func @transform_13(%arg0: i32) -> (i32, i32) {
    %c0_i32 = arith.constant 0 : i32
    %c0_i32_0 = arith.constant 0 : i32
    %c0_i32_1 = arith.constant 0 : i32
    return %c0_i32, %c0_i32_0 : i32, i32
  }
  func.func @transform_14(%arg0: i32) -> (i32, i32) {
    %c0_i32 = arith.constant 0 : i32
    %c0_i32_0 = arith.constant 0 : i32
    %c0_i32_1 = arith.constant 0 : i32
    return %c0_i32, %c0_i32_0 : i32, i32
  }
  func.func @transform_15(%arg0: i32) -> (i32, i32) {
    %c0_i32 = arith.constant 0 : i32
    %c0_i32_0 = arith.constant 0 : i32
    %c0_i32_1 = arith.constant 0 : i32
    return %c0_i32, %c0_i32_0 : i32, i32
  }
  func.func @transform_16(%arg0: i32) -> (i32, i32) {
    %c0_i32 = arith.constant 0 : i32
    %c0_i32_0 = arith.constant 0 : i32
    %c0_i32_1 = arith.constant 0 : i32
    return %c0_i32, %c0_i32_0 : i32, i32
  }
  func.func @transform_17(%arg0: i32) -> (i32, i32) {
    %c0_i32 = arith.constant 0 : i32
    %c0_i32_0 = arith.constant 0 : i32
    %c0_i32_1 = arith.constant 0 : i32
    return %c0_i32, %c0_i32_0 : i32, i32
  }
  func.func @transform_18(%arg0: i32) -> (i32, i32) {
    %c0_i32 = arith.constant 0 : i32
    %c0_i32_0 = arith.constant 0 : i32
    %c0_i32_1 = arith.constant 0 : i32
    return %c0_i32, %c0_i32_0 : i32, i32
  }
  func.func @transform_19(%arg0: i32) -> (i32, i32) {
    %c0_i32 = arith.constant 0 : i32
    %c0_i32_0 = arith.constant 0 : i32
    return %arg0, %c0_i32 : i32, i32
  }
}

</mosaic_0001>

<bundles_post_ra>
// kernel: tpu_custom_call.1
= control target key start
LH: loop header
LB: loop body
LE: loop exit
PB: predicated region body
PF: predicated region fallthrough
CT: control target
= control target key end

     0   :  { %vm1033_vm0 = vcmask 130048   ;;  %s8565_s2 = inlined_call_operand.vmem [shape: bf16[784,256], index: 2, kind: input, shape index: {}]   ;;  %s8566_s0 = inlined_call_operand.vmem [shape: f32[256,784], index: 0, kind: input, shape index: {}]   ;;  %s8567_s4 = inlined_call_operand.vmem [shape: bf16[256,128], index: 4, kind: input, shape index: {}]   ;;  %s8568_s3 = inlined_call_operand.vmem [shape: f32[1,256], index: 3, kind: input, shape index: {}]   ;;  %s8569_s6 = inlined_call_operand.vmem [shape: bf16[128,64], index: 6, kind: input, shape index: {}]   ;;  %s8570_s5 = inlined_call_operand.vmem [shape: f32[1,128], index: 5, kind: input, shape index: {}]   ;;  %s8571_s8 = inlined_call_operand.vmem [shape: bf16[64,32], index: 8, kind: input, shape index: {}]   ;;  %s8572_s7 = inlined_call_operand.vmem [shape: f32[1,64], index: 7, kind: input, shape index: {}]   ;;  %s8573_s10 = inlined_call_operand.vmem [shape: bf16[32,128], index: 10, kind: input, shape index: {}]   ;;  %s8574_s1 = inlined_call_operand.vmem [shape: f32[256,2], index: 1, kind: input, shape index: {}]   ;;  %s8575_s9 = inlined_call_operand.vmem [shape: f32[1,32], index: 9, kind: input, shape index: {}]   ;;  %s8576_s13 = inlined_call_operand.vmem [shape: bf16[128,128], index: 13, kind: input, shape index: {}]   ;;  %s8577_s11 = inlined_call_operand.vmem [shape: f32[2,128], index: 11, kind: input, shape index: {}]   ;;  %s8578_s12 = inlined_call_operand.vmem [shape: f32[1,128], index: 12, kind: input, shape index: {}]   ;;  %s8579_s15 = inlined_call_operand.vmem [shape: bf16[128,128], index: 15, kind: input, shape index: {}]   ;;  %s8580_s14 = inlined_call_operand.vmem [shape: f32[1,128], index: 14, kind: input, shape index: {}]   ;;  %s8581_s16 = inlined_call_operand.vmem [shape: f32[1,128], index: 16, kind: input, shape index: {}]   ;;  %s8582_s17 = inlined_call_operand.vmem [shape: f32[1,128], index: 17, kind: input, shape index: {}]   ;;  %s8583_s18 = inlined_call_operand.<no memory space> [shape: f32[1,1], index: 18, kind: input, shape index: {}]   ;;  %s8584_s19 = inlined_call_operand.vmem [shape: f32[256,1], index: 19, kind: output, shape index: {}]  }
   0x1   :  { %8590 = sst [smem:[#allocation56_spill]] %s8565_s2 }
   0x2   :  { %8591 = sst [smem:[#allocation57_spill]] %s8566_s0 }
   0x3   :  { %8592 = sst [smem:[#allocation58_spill]] %s8567_s4 }
   0x4   :  { %8593 = sst [smem:[#allocation59_spill]] %s8568_s3 }
   0x5   :  { %s8594_s20 = sld [smem:[#allocation56_spill]] }
   0x6   :  { %s8595_s26 = sld [smem:[#allocation57_spill]] }
   0x7   :  { %s8596_s23 = sld [smem:[#allocation58_spill]] }
   0x8   :  { %s8597_s2 = sld [smem:[#allocation59_spill]] }
   0xb   :  { %v5749_v0 = vld [vmem:[%s8594_s20 + $0x74] ss:$8 sps:$4 sm:$0xff]   ;;  %v5753_v2 = vld [vmem:[%s8594_s20 + $0x70] ss:$8 sps:$4 sm:$0xff]   ;;  %v5755_v4 = vld [vmem:[%s8594_s20 + $0x64] ss:$8 sps:$4 sm:$0xff]  }
   0xc   :  { %v5751_v1 = vld [vmem:[%s8594_s20 + $0x174] ss:$8 sps:$4 sm:$0xff]   ;;  %1082 = vmatprep.subr.bf16.mxu0 %v5749_v0  ;;  %v5754_v3 = vld [vmem:[%s8594_s20 + $0x170] ss:$8 sps:$4 sm:$0xff]   ;;  %v5757_v5 = vld [vmem:[%s8594_s20 + $0x164] ss:$8 sps:$4 sm:$0xff]  }
   0xd   :  { %1275 = vmatprep.subr.bf16.mxu1 %v5751_v1  ;;  %1083 = vmatpush1.bf16.msra.mxu0 %v5753_v2  ;;  %v5759_v6 = vld [vmem:[%s8594_s20 + $0x60] ss:$8 sps:$4 sm:$0xff]   ;;  %v5761_v8 = vld [vmem:[%s8594_s20 + $0x54] ss:$8 sps:$4 sm:$0xff]   ;;  %v5765_v10 = vld [vmem:[%s8594_s20 + $0x50] ss:$8 sps:$4 sm:$0xff]  }
   0xe   :  { %1276 = vmatpush1.bf16.msra.mxu1 %v5754_v3  ;;  %1084 = vmatprep.subr.bf16.mxu0 %v5755_v4  ;;  %v5760_v7 = vld [vmem:[%s8594_s20 + $0x160] ss:$8 sps:$4 sm:$0xff]   ;;  %v5763_v9 = vld [vmem:[%s8594_s20 + $0x154] ss:$8 sps:$4 sm:$0xff]   ;;  %v5766_v11 = vld [vmem:[%s8594_s20 + $0x150] ss:$8 sps:$4 sm:$0xff]  }
   0xf   :  { %1277 = vmatprep.subr.bf16.mxu1 %v5757_v5  ;;  %v5767_v12 = vld [vmem:[%s8594_s20 + $0x44] ss:$8 sps:$4 sm:$0xff]   ;;  %v5771_v14 = vld [vmem:[%s8594_s20 + $0x40] ss:$8 sps:$4 sm:$0xff]   ;;  %v5773_v16 = vld [vmem:[%s8594_s20 + $0x34] ss:$8 sps:$4 sm:$0xff]  }
  0x10   :  { %v5769_v13 = vld [vmem:[%s8594_s20 + $0x144] ss:$8 sps:$4 sm:$0xff]   ;;  %v5772_v15 = vld [vmem:[%s8594_s20 + $0x140] ss:$8 sps:$4 sm:$0xff]   ;;  %v5775_v17 = vld [vmem:[%s8594_s20 + $0x134] ss:$8 sps:$4 sm:$0xff]  }
  0x11   :  { %1085 = vmatpush1.bf16.msra.mxu0 %v5759_v6  ;;  %v5777_v18 = vld [vmem:[%s8594_s20 + $0x30] ss:$8 sps:$4 sm:$0xff]   ;;  %v5779_v20 = vld [vmem:[%s8594_s20 + $0x24] ss:$8 sps:$4 sm:$0xff]   ;;  %v5783_v22 = vld [vmem:[%s8594_s20 + $0x20] ss:$8 sps:$4 sm:$0xff]  }
  0x12   :  { %1278 = vmatpush1.bf16.msra.mxu1 %v5760_v7  ;;  %1086 = vmatprep.subr.bf16.mxu0 %v5761_v8  ;;  %v5778_v19 = vld [vmem:[%s8594_s20 + $0x130] ss:$8 sps:$4 sm:$0xff]   ;;  %v5781_v21 = vld [vmem:[%s8594_s20 + $0x124] ss:$8 sps:$4 sm:$0xff]   ;;  %v5784_v23 = vld [vmem:[%s8594_s20 + $0x120] ss:$8 sps:$4 sm:$0xff]  }
  0x13   :  { %1279 = vmatprep.subr.bf16.mxu1 %v5763_v9  ;;  %v5785_v24 = vld [vmem:[%s8594_s20 + $0x14] ss:$8 sps:$4 sm:$0xff]   ;;  %v5789_v26 = vld [vmem:[%s8594_s20 + $0x10] ss:$8 sps:$4 sm:$0xff]   ;;  %v5791_v28 = vld [vmem:[%s8594_s20 + $0x4] ss:$8 sps:$4 sm:$0xff]  }
  0x14   :  { %v5787_v25 = vld [vmem:[%s8594_s20 + $0x114] ss:$8 sps:$4 sm:$0xff]   ;;  %v5790_v27 = vld [vmem:[%s8594_s20 + $0x110] ss:$8 sps:$4 sm:$0xff]   ;;  %v5793_v29 = vld [vmem:[%s8594_s20 + $0x104] ss:$8 sps:$4 sm:$0xff]  }
  0x15   :  { %1087 = vmatpush1.bf16.msra.mxu0 %v5765_v10  ;;  %v5795_v30 = vld [vmem:[%s8594_s20] ss:$8 sps:$4 sm:$0xff]   ;;  %v5797_v32 = vld [vmem:[%s8594_s20 + $0xf4] ss:$8 sps:$4 sm:$0xff]   ;;  %v5801_v34 = vld [vmem:[%s8594_s20 + $0xf0] ss:$8 sps:$4 sm:$0xff]  }
  0x16   :  { %1280 = vmatpush1.bf16.msra.mxu1 %v5766_v11  ;;  %1088 = vmatprep.subr.bf16.mxu0 %v5767_v12  ;;  %v5796_v31 = vld [vmem:[%s8594_s20 + $0x100] ss:$8 sps:$4 sm:$0xff]   ;;  %v5799_v33 = vld [vmem:[%s8594_s20 + $0x1f4] ss:$8 sps:$4 sm:$0xff]   ;;  %v5802_v35 = vld [vmem:[%s8594_s20 + $0x1f0] ss:$8 sps:$4 sm:$0xff]  }
  0x17   :  { %1281 = vmatprep.subr.bf16.mxu1 %v5769_v13  ;;  %v5803_v36 = vld [vmem:[%s8594_s20 + $0xe4] ss:$8 sps:$4 sm:$0xff]   ;;  %v5807_v38 = vld [vmem:[%s8594_s20 + $0xe0] ss:$8 sps:$4 sm:$0xff]   ;;  %v5809_v40 = vld [vmem:[%s8594_s20 + $0xd4] ss:$8 sps:$4 sm:$0xff]  }
  0x18   :  { %v5805_v37 = vld [vmem:[%s8594_s20 + $0x1e4] ss:$8 sps:$4 sm:$0xff]   ;;  %v5808_v39 = vld [vmem:[%s8594_s20 + $0x1e0] ss:$8 sps:$4 sm:$0xff]   ;;  %v5811_v41 = vld [vmem:[%s8594_s20 + $0x1d4] ss:$8 sps:$4 sm:$0xff]  }
  0x19   :  { %1089 = vmatpush1.bf16.msra.mxu0 %v5771_v14  ;;  %v5813_v42 = vld [vmem:[%s8594_s20 + $0xd0] ss:$8 sps:$4 sm:$0xff]   ;;  %v5815_v44 = vld [vmem:[%s8594_s20 + $0xc4] ss:$8 sps:$4 sm:$0xff]   ;;  %v5819_v50 = vld [vmem:[%s8594_s20 + $0xc0] ss:$8 sps:$4 sm:$0xff]  }
  0x1a   :  { %1282 = vmatpush1.bf16.msra.mxu1 %v5772_v15  ;;  %1090 = vmatprep.subr.bf16.mxu0 %v5773_v16  ;;  %v5814_v43 = vld [vmem:[%s8594_s20 + $0x1d0] ss:$8 sps:$4 sm:$0xff]   ;;  %v5817_v45 = vld [vmem:[%s8594_s20 + $0x1c4] ss:$8 sps:$4 sm:$0xff]   ;;  %v5820_v51 = vld [vmem:[%s8594_s20 + $0x1c0] ss:$8 sps:$4 sm:$0xff]  }
  0x1b   :  { %1283 = vmatprep.subr.bf16.mxu1 %v5775_v17  ;;  %v66_v46 = vld [vmem:[%s8595_s26 + $0x8] sm:$0xff]  ;;  %v73_v47 = vld [vmem:[%s8595_s26 + $0x40] sm:$0xff]  ;;  %v68_v48 = vld [vmem:[%s8595_s26 + $0x18] sm:$0xff] }
  0x1c   :  { %v75_v49 = vld [vmem:[%s8595_s26 + $0x50] sm:$0xff]  ;;  %v322_v53 = vpack.c.bf16 %v73_v47, %v66_v46  ;;  %v5827_v58 = vld [vmem:[%s8594_s20 + $0xa4] ss:$8 sps:$4 sm:$0xff]   ;;  %v5831_v60 = vld [vmem:[%s8594_s20 + $0xa0] ss:$8 sps:$4 sm:$0xff]  }
  0x1d   :  { %1091 = vmatpush1.bf16.msra.mxu0 %v5777_v18  ;;  %v5821_v52 = vld [vmem:[%s8594_s20 + $0xb4] ss:$8 sps:$4 sm:$0xff]   ;;  %v324_v54 = vpack.c.bf16 %v75_v49, %v68_v48  ;;  %v5825_v56 = vld [vmem:[%s8594_s20 + $0xb0] ss:$8 sps:$4 sm:$0xff]   ;;  %v5829_v59 = vld [vmem:[%s8594_s20 + $0x1a4] ss:$8 sps:$4 sm:$0xff]  }
  0x1e   :  { %1284 = vmatpush1.bf16.msra.mxu1 %v5778_v19  ;;  %1092 = vmatprep.subr.bf16.mxu0 %v5779_v20  ;;  %v5823_v55 = vld [vmem:[%s8594_s20 + $0x1b4] ss:$8 sps:$4 sm:$0xff]   ;;  %v5826_v57 = vld [vmem:[%s8594_s20 + $0x1b0] ss:$8 sps:$4 sm:$0xff]   ;;  %v5832_v61 = vld [vmem:[%s8594_s20 + $0x1a0] ss:$8 sps:$4 sm:$0xff]  }
  0x1f   :  { %1285 = vmatprep.subr.bf16.mxu1 %v5781_v21  ;;  %1114 = vmatprep.mubr.bf16.mxu0 %v322_v53  ;;  %v5833_v62 = vld [vmem:[%s8594_s20 + $0x94] ss:$8 sps:$4 sm:$0xff]   ;;  %v5837_v0 = vld [vmem:[%s8594_s20 + $0x90] ss:$8 sps:$4 sm:$0xff]   ;;  %v5839_v2 = vld [vmem:[%s8594_s20 + $0x84] ss:$8 sps:$4 sm:$0xff]  }
  0x20   :  { %1307 = vmatprep.mubr.bf16.mxu1 %v324_v54  ;;  %v5835_v63 = vld [vmem:[%s8594_s20 + $0x194] ss:$8 sps:$4 sm:$0xff]   ;;  %v5838_v1 = vld [vmem:[%s8594_s20 + $0x190] ss:$8 sps:$4 sm:$0xff]   ;;  %v5841_v3 = vld [vmem:[%s8594_s20 + $0x184] ss:$8 sps:$4 sm:$0xff]  }
  0x21   :  { %1093 = vmatpush1.bf16.msra.mxu0 %v5783_v22  ;;  %v5843_v4 = vld [vmem:[%s8594_s20 + $0x80] ss:$8 sps:$4 sm:$0xff]   ;;  %v72_v7 = vld [vmem:[%s8595_s26 + $0x38] sm:$0xff]  ;;  %v67_v8 = vld [vmem:[%s8595_s26 + $0x10] sm:$0xff] }
  0x22   :  { %1286 = vmatpush1.bf16.msra.mxu1 %v5784_v23  ;;  %1094 = vmatprep.subr.bf16.mxu0 %v5785_v24  ;;  %v5844_v5 = vld [vmem:[%s8594_s20 + $0x180] ss:$8 sps:$4 sm:$0xff]   ;;  %v5847_v10 = vld [vmem:[%s8594_s20 + $0x274] ss:$8 sps:$4 sm:$0xff]   ;;  %v5845_v17 = vld [vmem:[%s8594_s20 + $0x270] ss:$8 sps:$4 sm:$0xff]  }
  0x23   :  { %1287 = vmatprep.subr.bf16.mxu1 %v5787_v25  ;;  %v65_v6 = vld [vmem:[%s8595_s26] sm:$0xff]  ;;  %v74_v9 = vld [vmem:[%s8595_s26 + $0x48] sm:$0xff]  ;;  %v80_v11 = vld [vmem:[%s8595_s26 + $0x78] sm:$0xff] }
  0x24   :  { %v87_v12 = vld [vmem:[%s8595_s26 + $0xb0] sm:$0xff]  ;;  %v82_v13 = vld [vmem:[%s8595_s26 + $0x88] sm:$0xff]  ;;  %v89_v14 = vld [vmem:[%s8595_s26 + $0xc0] sm:$0xff]  ;;  %v321_v15 = vpack.c.bf16 %v72_v7, %v65_v6  ;;  %v323_v16 = vpack.c.bf16 %v74_v9, %v67_v8 }
  0x25   :  { %1095 = vmatpush1.bf16.msra.mxu0 %v5789_v26  ;;  %v329_v18 = vpack.c.bf16 %v87_v12, %v80_v11  ;;  %v331_v19 = vpack.c.bf16 %v89_v14, %v82_v13  ;;  %v5850_v20 = vld [vmem:[%s8594_s20 + $0x264] ss:$8 sps:$4 sm:$0xff]   ;;  %v79_v21 = vld [vmem:[%s8595_s26 + $0x70] sm:$0xff]  ;;  %v88_v24 = vld [vmem:[%s8595_s26 + $0xb8] sm:$0xff] }
  0x26   :  { %1288 = vmatpush1.bf16.msra.mxu1 %v5790_v27  ;;  %1096 = vmatprep.subr.bf16.mxu0 %v5791_v28  ;;  %v86_v22 = vld [vmem:[%s8595_s26 + $0xa8] sm:$0xff]  ;;  %v81_v23 = vld [vmem:[%s8595_s26 + $0x80] sm:$0xff]  ;;  %v96_v28 = vld [vmem:[%s8595_s26 + $0xf8] sm:$0xff] }
  0x27   :  { %1289 = vmatprep.subr.bf16.mxu1 %v5793_v29  ;;  %v5848_v25 = vld [vmem:[%s8594_s20 + $0x260] ss:$8 sps:$4 sm:$0xff]   ;;  %v103_v29 = vld [vmem:[%s8595_s26 + $0x130] sm:$0xff]  ;;  %v5862_v54 = vld [vmem:[%s8594_s20 + $0x224] ss:$8 sps:$4 sm:$0xff]  }
  0x28   :  { %v94_v26 = vld [vmem:[%s8595_s26 + $0xe8] sm:$0xff]  ;;  %v101_v27 = vld [vmem:[%s8595_s26 + $0x120] sm:$0xff]  ;;  %v5859_v46 = vld [vmem:[%s8594_s20 + $0x234] ss:$8 sps:$4 sm:$0xff]  }
  0x29   :  { %1097 = vmatpush1.bf16.msra.mxu0 %v5795_v30  ;;  %v5853_v30 = vld [vmem:[%s8594_s20 + $0x254] ss:$8 sps:$4 sm:$0xff]   ;;  %v114_v53 = vld [vmem:[%s8595_s26 + $0x188] sm:$0xff]  ;;  %v145_v12 = vld [vmem:[%s8595_s26 + $0x280] sm:$0xff] }
  0x2a   :  { %1290 = vmatpush1.bf16.msra.mxu1 %v5796_v31  ;;  %1098 = vmatprep.subr.bf16.mxu0 %v5797_v32  ;;  %v328_v31 = vpack.c.bf16 %v86_v22, %v79_v21  ;;  %v330_v32 = vpack.c.bf16 %v88_v24, %v81_v23  ;;  %v5868_v6 = vld [vmem:[%s8594_s20 + $0x204] ss:$8 sps:$4 sm:$0xff]   ;;  %v123_v7 = vld [vmem:[%s8595_s26 + $0x1d0] sm:$0xff]  ;;  %v136_v9 = vld [vmem:[%s8595_s26 + $0x238] sm:$0xff] }
  0x2b   :  { %1291 = vmatprep.subr.bf16.mxu1 %v5799_v33  ;;  %v336_v33 = vpack.c.bf16 %v101_v27, %v94_v26  ;;  %v130_v8 = vld [vmem:[%s8595_s26 + $0x208] sm:$0xff]  ;;  %v5871_v14 = vld [vmem:[%s8594_s20 + $0x2f4] ss:$8 sps:$4 sm:$0xff]   ;;  %v137_v23 = vld [vmem:[%s8595_s26 + $0x240] sm:$0xff] }
  0x2c   :  { %v138_v11 = vld [vmem:[%s8595_s26 + $0x248] sm:$0xff]  ;;  %v144_v24 = vld [vmem:[%s8595_s26 + $0x278] sm:$0xff]  ;;  %v157_v26 = vld [vmem:[%s8595_s26 + $0x2e0] sm:$0xff] }
  0x2d   :  { %1099 = vmatpush2.bf16.msra.mxu0 %v5801_v34  ;;  %v338_v34 = vpack.c.bf16 %v103_v29, %v96_v28  ;;  %v5866_v13 = vld [vmem:[%s8594_s20 + $0x200] ss:$8 sps:$4 sm:$0xff]   ;;  %v5874_v22 = vld [vmem:[%s8594_s20 + $0x2e4] ss:$8 sps:$4 sm:$0xff]   ;;  %v152_v27 = vld [vmem:[%s8595_s26 + $0x2b8] sm:$0xff] }
  0x2e   :  { %1292 = vmatpush2.bf16.msra.mxu1 %v5802_v35  ;;  %1100 = vmatprep.subr.bf16.mxu0 %v5803_v36  ;;  %v5851_v35 = vld [vmem:[%s8594_s20 + $0x250] ss:$8 sps:$4 sm:$0xff]   ;;  %v93_v36 = vld [vmem:[%s8595_s26 + $0xe0] sm:$0xff]  ;;  %v142_v21 = vld [vmem:[%s8595_s26 + $0x268] sm:$0xff] }
  0x2f   :  { %1293 = vmatprep.subr.bf16.mxu1 %v5805_v37  ;;  %v100_v37 = vld [vmem:[%s8595_s26 + $0x118] sm:$0xff]  ;;  %v159_v28 = vld [vmem:[%s8595_s26 + $0x2f0] sm:$0xff]  ;;  %v5872_v29 = vld [vmem:[%s8594_s20 + $0x2e0] ss:$8 sps:$4 sm:$0xff]  }
  0x30   :  { %v335_v47 = vpack.c.bf16 %v100_v37, %v93_v36  ;;  %v149_v36 = vld [vmem:[%s8595_s26 + $0x2a0] sm:$0xff]  ;;  %v156_v37 = vld [vmem:[%s8595_s26 + $0x2d8] sm:$0xff] }
  0x31   :  { %1101 = vmatpush2.bf16.msra.mxu0 %v5807_v38  ;;  %v5856_v38 = vld [vmem:[%s8594_s20 + $0x244] ss:$8 sps:$4 sm:$0xff]  }
  0x32   :  { %1294 = vmatpush2.bf16.msra.mxu1 %v5808_v39  ;;  %1102 = vmatprep.subr.bf16.mxu0 %v5809_v40  ;;  %v95_v39 = vld [vmem:[%s8595_s26 + $0xf0] sm:$0xff]  ;;  %v102_v40 = vld [vmem:[%s8595_s26 + $0x128] sm:$0xff] }
  0x33   :  { %1295 = vmatprep.subr.bf16.mxu1 %v5811_v41  ;;  %v108_v41 = vld [vmem:[%s8595_s26 + $0x158] sm:$0xff]  ;;  %v337_v48 = vpack.c.bf16 %v102_v40, %v95_v39  ;;  %v151_v39 = vld [vmem:[%s8595_s26 + $0x2b0] sm:$0xff]  ;;  %v158_v40 = vld [vmem:[%s8595_s26 + $0x2e8] sm:$0xff] }
  0x35   :  { %1103 = vmatpush2.bf16.msra.mxu0 %v5813_v42  ;;  %v115_v42 = vld [vmem:[%s8595_s26 + $0x190] sm:$0xff] }
  0x36   :  { %1296 = vmatpush2.bf16.msra.mxu1 %v5814_v43  ;;  %1104 = vmatprep.subr.bf16.mxu0 %v5815_v44  ;;  %v110_v43 = vld [vmem:[%s8595_s26 + $0x168] sm:$0xff]  ;;  %v117_v44 = vld [vmem:[%s8595_s26 + $0x1a0] sm:$0xff]  ;;  %v343_v49 = vpack.c.bf16 %v115_v42, %v108_v41  ;;  %v164_v41 = vld [vmem:[%s8595_s26 + $0x318] sm:$0xff] }
  0x37   :  { %1297 = vmatprep.subr.bf16.mxu1 %v5817_v45  ;;  %v5854_v45 = vld [vmem:[%s8594_s20 + $0x240] ss:$8 sps:$4 sm:$0xff]   ;;  %v171_v42 = vld [vmem:[%s8595_s26 + $0x350] sm:$0xff] }
  0x39   :  { %1105 = vmatpush2.bf16.msra.mxu0 %v5819_v50  ;;  %v345_v50 = vpack.c.bf16 %v117_v44, %v110_v43  ;;  %v166_v43 = vld [vmem:[%s8595_s26 + $0x328] sm:$0xff]  ;;  %v173_v44 = vld [vmem:[%s8595_s26 + $0x360] sm:$0xff] }
  0x3a   :  { %1298 = vmatpush2.bf16.msra.mxu1 %v5820_v51  ;;  %1106 = vmatprep.subr.bf16.mxu0 %v5821_v52  ;;  %v5857_v51 = vld [vmem:[%s8594_s20 + $0x230] ss:$8 sps:$4 sm:$0xff]  }
  0x3b   :  { %1299 = vmatprep.subr.bf16.mxu1 %v5823_v55  ;;  %v107_v52 = vld [vmem:[%s8595_s26 + $0x150] sm:$0xff]  ;;  %v109_v55 = vld [vmem:[%s8595_s26 + $0x160] sm:$0xff] }
  0x3d   :  { %1107 = vmatpush2.bf16.msra.mxu0 %v5825_v56  ;;  %v116_v56 = vld [vmem:[%s8595_s26 + $0x198] sm:$0xff] }
  0x3e   :  { %1300 = vmatpush2.bf16.msra.mxu1 %v5826_v57  ;;  %1108 = vmatprep.subr.bf16.mxu0 %v5827_v58  ;;  %v122_v57 = vld [vmem:[%s8595_s26 + $0x1c8] sm:$0xff]  ;;  %v129_v58 = vld [vmem:[%s8595_s26 + $0x200] sm:$0xff] }
  0x3f   :  { %1301 = vmatprep.subr.bf16.mxu1 %v5829_v59  ;;  %v124_v59 = vld [vmem:[%s8595_s26 + $0x1d8] sm:$0xff] }
  0x41   :  { %1109 = vmatpush2.bf16.msra.mxu0 %v5831_v60  ;;  %v131_v60 = vld [vmem:[%s8595_s26 + $0x210] sm:$0xff] }
  0x42   :  { %1302 = vmatpush2.bf16.msra.mxu1 %v5832_v61  ;;  %1110 = vmatprep.subr.bf16.mxu0 %v5833_v62  ;;  %v5860_v61 = vld [vmem:[%s8594_s20 + $0x220] ss:$8 sps:$4 sm:$0xff]   ;;  %v5865_v62 = vld [vmem:[%s8594_s20 + $0x214] ss:$8 sps:$4 sm:$0xff]  }
  0x43   :  { %1303 = vmatprep.subr.bf16.mxu1 %v5835_v63  ;;  %v342_v63 = vpack.c.bf16 %v114_v53, %v107_v52  ;;  %v5886_v52 = vld [vmem:[%s8594_s20 + $0x2a4] ss:$8 sps:$4 sm:$0xff]   ;;  %v163_v53 = vld [vmem:[%s8595_s26 + $0x310] sm:$0xff] }
  0x45   :  { %1111 = vmatpush2.bf16.msra.mxu0 %v5837_v0  ;;  %v344_v0 = vpack.c.bf16 %v116_v56, %v109_v55  ;;  %v165_v55 = vld [vmem:[%s8595_s26 + $0x320] sm:$0xff]  ;;  %v172_v56 = vld [vmem:[%s8595_s26 + $0x358] sm:$0xff] }
  0x46   :  { %1304 = vmatpush2.bf16.msra.mxu1 %v5838_v1  ;;  %1112 = vmatprep.subr.bf16.mxu0 %v5839_v2  ;;  %v350_v1 = vpack.c.bf16 %v129_v58, %v122_v57  ;;  %v352_v2 = vpack.c.bf16 %v131_v60, %v124_v59  ;;  %v178_v57 = vld [vmem:[%s8595_s26 + $0x388] sm:$0xff]  ;;  %v185_v58 = vld [vmem:[%s8595_s26 + $0x3c0] sm:$0xff]  ;;  %v180_v59 = vld [vmem:[%s8595_s26 + $0x398] sm:$0xff] }
  0x47   :  { %1305 = vmatprep.subr.bf16.mxu1 %v5841_v3  ;;  %v5863_v3 = vld [vmem:[%s8594_s20 + $0x210] ss:$8 sps:$4 sm:$0xff]  }
  0x48   :  { %v187_v60 = vld [vmem:[%s8595_s26 + $0x3d0] sm:$0xff] }
  0x49   :  { %1113 = vmatpush2.bf16.msra.mxu0 %v5843_v4  ;;  %v121_v4 = vld [vmem:[%s8595_s26 + $0x1c0] sm:$0xff] }
  0x4a   :  { %1306 = vmatpush2.bf16.msra.mxu1 %v5844_v5  ;;  %1468 = vmatprep.subr.bf16.mxu0 %v5847_v10  ;;  %v128_v5 = vld [vmem:[%s8595_s26 + $0x1f8] sm:$0xff] }
  0x4b   :  { %5681 = vmatprep.subr.bf16.mxu1 %v5847_v10  ;;  %v143_v10 = vld [vmem:[%s8595_s26 + $0x270] sm:$0xff] }
  0x4c   :  { %1115 = vmatmul.mubr.bf16.vlgmr.msra.gmra.mxu0 %v321_v15  ;;  %v349_v15 = vpack.c.bf16 %v128_v5, %v121_v4  ;;  %v5892_v4 = vld [vmem:[%s8594_s20 + $0x284] ss:$8 sps:$4 sm:$0xff]  }
  0x4d   :  { %1308 = vmatmul.mubr.bf16.vlgmr.msra.gmra.mxu1 %v323_v16  ;;  %1124 = vmatprep.mubr.bf16.mxu0 %v329_v18  ;;  %v351_v16 = vpack.c.bf16 %v130_v8, %v123_v7  ;;  %v359_v18 = vpack.c.bf16 %v145_v12, %v138_v11  ;;  %v177_v5 = vld [vmem:[%s8595_s26 + $0x380] sm:$0xff]  ;;  %v179_v7 = vld [vmem:[%s8595_s26 + $0x390] sm:$0xff]  ;;  %v186_v8 = vld [vmem:[%s8595_s26 + $0x3c8] sm:$0xff] }
  0x4e   :  { %5697 = vmatpush1.bf16.msra.mxu1 %v5845_v17  ;;  %1317 = vmatprep.mubr.bf16.mxu1 %v331_v19  ;;  %v5869_v19 = vld [vmem:[%s8594_s20 + $0x2f0] ss:$8 sps:$4 sm:$0xff]   ;;  %v194_v11 = vld [vmem:[%s8595_s26 + $0x408] sm:$0xff]  ;;  %v201_v12 = vld [vmem:[%s8595_s26 + $0x440] sm:$0xff] }
  0x4f   :  { %5682 = vmatprep.subr.bf16.mxu1 %v5850_v20  ;;  %1469 = vmatpush1.bf16.msra.mxu0 %v5845_v17  ;;  %v357_v17 = vpack.c.bf16 %v143_v10, %v136_v9  ;;  %v192_v9 = vld [vmem:[%s8595_s26 + $0x3f8] sm:$0xff]  ;;  %v199_v10 = vld [vmem:[%s8595_s26 + $0x430] sm:$0xff] }
  0x50   :  { %1470 = vmatprep.subr.bf16.mxu0 %v5850_v20  ;;  %v135_v20 = vld [vmem:[%s8595_s26 + $0x230] sm:$0xff] }
  0x52   :  { %5698 = vmatpush1.bf16.msra.mxu1 %v5848_v25 }
  0x53   :  { %5683 = vmatprep.subr.bf16.mxu1 %v5853_v30  ;;  %1471 = vmatpush1.bf16.msra.mxu0 %v5848_v25  ;;  %v150_v25 = vld [vmem:[%s8595_s26 + $0x2a8] sm:$0xff] }
  0x54   :  { %1125 = vmatmul.mubr.bf16.gmra.mxu0 %v328_v31  ;;  %1472 = vmatprep.subr.bf16.mxu0 %v5853_v30  ;;  %v5877_v30 = vld [vmem:[%s8594_s20 + $0x2d4] ss:$8 sps:$4 sm:$0xff]   ;;  %v356_v31 = vpack.c.bf16 %v142_v21, %v135_v20  ;;  %v198_v20 = vld [vmem:[%s8595_s26 + $0x428] sm:$0xff]  ;;  %v193_v21 = vld [vmem:[%s8595_s26 + $0x400] sm:$0xff] }
  0x55   :  { %1318 = vmatmul.mubr.bf16.gmra.mxu1 %v330_v32  ;;  %1134 = vmatprep.mubr.bf16.mxu0 %v336_v33  ;;  %v358_v32 = vpack.c.bf16 %v144_v24, %v137_v23  ;;  %v364_v33 = vpack.c.bf16 %v157_v26, %v150_v25  ;;  %v206_v23 = vld [vmem:[%s8595_s26 + $0x468] sm:$0xff]  ;;  %v213_v24 = vld [vmem:[%s8595_s26 + $0x4a0] sm:$0xff]  ;;  %v208_v25 = vld [vmem:[%s8595_s26 + $0x478] sm:$0xff] }
  0x56   :  { %1327 = vmatprep.mubr.bf16.mxu1 %v338_v34  ;;  %5699 = vmatpush1.bf16.msra.mxu1 %v5851_v35  ;;  %v366_v34 = vpack.c.bf16 %v159_v28, %v152_v27  ;;  %v215_v26 = vld [vmem:[%s8595_s26 + $0x4b0] sm:$0xff] }
  0x57   :  { %5684 = vmatprep.subr.bf16.mxu1 %v5856_v38  ;;  %1473 = vmatpush1.bf16.msra.mxu0 %v5851_v35  ;;  %v5875_v35 = vld [vmem:[%s8594_s20 + $0x2d0] ss:$8 sps:$4 sm:$0xff]  }
  0x58   :  { %1474 = vmatprep.subr.bf16.mxu0 %v5856_v38  ;;  %v5880_v38 = vld [vmem:[%s8594_s20 + $0x2c4] ss:$8 sps:$4 sm:$0xff]  }
  0x5a   :  { %5700 = vmatpush1.bf16.msra.mxu1 %v5854_v45 }
  0x5b   :  { %5685 = vmatprep.subr.bf16.mxu1 %v5859_v46  ;;  %1475 = vmatpush1.bf16.msra.mxu0 %v5854_v45  ;;  %v5878_v45 = vld [vmem:[%s8594_s20 + $0x2c0] ss:$8 sps:$4 sm:$0xff]  }
  0x5c   :  { %1135 = vmatmul.mubr.bf16.gmra.mxu0 %v335_v47  ;;  %1476 = vmatprep.subr.bf16.mxu0 %v5859_v46  ;;  %v5883_v46 = vld [vmem:[%s8594_s20 + $0x2b4] ss:$8 sps:$4 sm:$0xff]   ;;  %v363_v47 = vpack.c.bf16 %v156_v37, %v149_v36  ;;  %v222_v37 = vld [vmem:[%s8595_s26 + $0x4e8] sm:$0xff] }
  0x5d   :  { %1328 = vmatmul.mubr.bf16.gmra.mxu1 %v337_v48  ;;  %1144 = vmatprep.mubr.bf16.mxu0 %v343_v49  ;;  %v365_v48 = vpack.c.bf16 %v158_v40, %v151_v39  ;;  %v371_v49 = vpack.c.bf16 %v171_v42, %v164_v41  ;;  %v227_v36 = vld [vmem:[%s8595_s26 + $0x510] sm:$0xff] }
  0x5e   :  { %1337 = vmatprep.mubr.bf16.mxu1 %v345_v50  ;;  %5701 = vmatpush1.bf16.msra.mxu1 %v5857_v51  ;;  %v373_v50 = vpack.c.bf16 %v173_v44, %v166_v43  ;;  %v219_v43 = vld [vmem:[%s8595_s26 + $0x4d0] sm:$0xff]  ;;  %v226_v44 = vld [vmem:[%s8595_s26 + $0x508] sm:$0xff] }
  0x5f   :  { %5686 = vmatprep.subr.bf16.mxu1 %v5862_v54  ;;  %1477 = vmatpush1.bf16.msra.mxu0 %v5857_v51  ;;  %v5881_v51 = vld [vmem:[%s8594_s20 + $0x2b0] ss:$8 sps:$4 sm:$0xff]  }
  0x60   :  { %1478 = vmatprep.subr.bf16.mxu0 %v5862_v54  ;;  %v170_v54 = vld [vmem:[%s8595_s26 + $0x348] sm:$0xff] }
  0x62   :  { %5702 = vmatpush1.bf16.msra.mxu1 %v5860_v61 }
  0x63   :  { %5687 = vmatprep.subr.bf16.mxu1 %v5865_v62  ;;  %1479 = vmatpush1.bf16.msra.mxu0 %v5860_v61  ;;  %v5884_v61 = vld [vmem:[%s8594_s20 + $0x2a0] ss:$8 sps:$4 sm:$0xff]  }
  0x64   :  { %1145 = vmatmul.mubr.bf16.gmra.mxu0 %v342_v63  ;;  %1480 = vmatprep.subr.bf16.mxu0 %v5865_v62  ;;  %v5889_v62 = vld [vmem:[%s8594_s20 + $0x294] ss:$8 sps:$4 sm:$0xff]   ;;  %v370_v63 = vpack.c.bf16 %v170_v54, %v163_v53 }
  0x65   :  { %1338 = vmatmul.mubr.bf16.gmra.mxu1 %v344_v0  ;;  %1154 = vmatprep.mubr.bf16.mxu0 %v350_v1  ;;  %v372_v0 = vpack.c.bf16 %v172_v56, %v165_v55  ;;  %v378_v1 = vpack.c.bf16 %v185_v58, %v178_v57  ;;  %v233_v55 = vld [vmem:[%s8595_s26 + $0x540] sm:$0xff]  ;;  %v240_v56 = vld [vmem:[%s8595_s26 + $0x578] sm:$0xff]  ;;  %v235_v57 = vld [vmem:[%s8595_s26 + $0x550] sm:$0xff] }
  0x66   :  { %1347 = vmatprep.mubr.bf16.mxu1 %v352_v2  ;;  %5703 = vmatpush1.bf16.msra.mxu1 %v5863_v3  ;;  %v380_v2 = vpack.c.bf16 %v187_v60, %v180_v59  ;;  %v242_v58 = vld [vmem:[%s8595_s26 + $0x588] sm:$0xff]  ;;  %v248_v59 = vld [vmem:[%s8595_s26 + $0x5b8] sm:$0xff]  ;;  %v255_v60 = vld [vmem:[%s8595_s26 + $0x5f0] sm:$0xff] }
  0x67   :  { %5688 = vmatprep.subr.bf16.mxu1 %v5868_v6  ;;  %1481 = vmatpush1.bf16.msra.mxu0 %v5863_v3  ;;  %v5887_v3 = vld [vmem:[%s8594_s20 + $0x290] ss:$8 sps:$4 sm:$0xff]  }
  0x68   :  { %1482 = vmatprep.subr.bf16.mxu0 %v5868_v6  ;;  %v184_v6 = vld [vmem:[%s8595_s26 + $0x3b8] sm:$0xff] }
  0x6a   :  { %5704 = vmatpush1.bf16.msra.mxu1 %v5866_v13 }
  0x6b   :  { %5689 = vmatprep.subr.bf16.mxu1 %v5871_v14  ;;  %1483 = vmatpush1.bf16.msra.mxu0 %v5866_v13  ;;  %v5890_v13 = vld [vmem:[%s8594_s20 + $0x280] ss:$8 sps:$4 sm:$0xff]  }
  0x6c   :  { %1155 = vmatmul.mubr.bf16.gmra.mxu0 %v349_v15  ;;  %1484 = vmatprep.subr.bf16.mxu0 %v5871_v14  ;;  %v5895_v14 = vld [vmem:[%s8594_s20 + $0x304] ss:$8 sps:$4 sm:$0xff]   ;;  %v377_v15 = vpack.c.bf16 %v184_v6, %v177_v5  ;;  %v256_v6 = vld [vmem:[%s8595_s26 + $0x5f8] sm:$0xff] }
  0x6d   :  { %1348 = vmatmul.mubr.bf16.gmra.mxu1 %v351_v16  ;;  %1164 = vmatprep.mubr.bf16.mxu0 %v357_v17  ;;  %v379_v16 = vpack.c.bf16 %v186_v8, %v179_v7  ;;  %v385_v17 = vpack.c.bf16 %v199_v10, %v192_v9  ;;  %v249_v5 = vld [vmem:[%s8595_s26 + $0x5c0] sm:$0xff]  ;;  %v262_v7 = vld [vmem:[%s8595_s26 + $0x628] sm:$0xff]  ;;  %v264_v9 = vld [vmem:[%s8595_s26 + $0x638] sm:$0xff] }
  0x6e   :  { %1357 = vmatprep.mubr.bf16.mxu1 %v359_v18  ;;  %5705 = vmatpush2.bf16.msra.mxu1 %v5869_v19  ;;  %v387_v18 = vpack.c.bf16 %v201_v12, %v194_v11  ;;  %v269_v8 = vld [vmem:[%s8595_s26 + $0x660] sm:$0xff]  ;;  %v271_v10 = vld [vmem:[%s8595_s26 + $0x670] sm:$0xff]  ;;  %v414_v12 = vpack.c.bf16 %v256_v6, %v249_v5  ;;  %v280_v6 = vld [vmem:[%s8595_s26 + $0x6b8] sm:$0xff] }
  0x6f   :  { %5690 = vmatprep.subr.bf16.mxu1 %v5874_v22  ;;  %1485 = vmatpush2.bf16.msra.mxu0 %v5869_v19  ;;  %v191_v19 = vld [vmem:[%s8595_s26 + $0x3f0] sm:$0xff] }
  0x70   :  { %1486 = vmatprep.subr.bf16.mxu0 %v5874_v22  ;;  %v200_v22 = vld [vmem:[%s8595_s26 + $0x438] sm:$0xff]  ;;  %v384_v27 = vpack.c.bf16 %v198_v20, %v191_v19  ;;  %v283_v20 = vld [vmem:[%s8595_s26 + $0x6d0] sm:$0xff] }
  0x71   :  { %v386_v28 = vpack.c.bf16 %v200_v22, %v193_v21  ;;  %v276_v19 = vld [vmem:[%s8595_s26 + $0x698] sm:$0xff]  ;;  %v278_v21 = vld [vmem:[%s8595_s26 + $0x6a8] sm:$0xff]  ;;  %v285_v22 = vld [vmem:[%s8595_s26 + $0x6e0] sm:$0xff] }
  0x72   :  { %5706 = vmatpush2.bf16.msra.mxu1 %v5872_v29  ;;  %v119_v5 = vld [vmem:[%s8595_s26 + $0x1b0] sm:$0xff] }
  0x73   :  { %5691 = vmatprep.subr.bf16.mxu1 %v5877_v30  ;;  %1487 = vmatpush2.bf16.msra.mxu0 %v5872_v29  ;;  %v392_v29 = vpack.c.bf16 %v213_v24, %v206_v23 }
  0x74   :  { %1165 = vmatmul.mubr.bf16.gmra.mxu0 %v356_v31  ;;  %1488 = vmatprep.subr.bf16.mxu0 %v5877_v30  ;;  %v394_v30 = vpack.c.bf16 %v215_v26, %v208_v25  ;;  %v205_v31 = vld [vmem:[%s8595_s26 + $0x460] sm:$0xff]  ;;  %v427_v25 = vpack.c.bf16 %v283_v20, %v276_v19  ;;  %v429_v26 = vpack.c.bf16 %v285_v22, %v278_v21  ;;  %v5897_v19 = vld [vmem:[%s8596_s23 + $0x38] sm:$0xff]  }
  0x75   :  { %1358 = vmatmul.mubr.bf16.gmra.mxu1 %v358_v32  ;;  %1174 = vmatprep.mubr.bf16.mxu0 %v364_v33  ;;  %v212_v32 = vld [vmem:[%s8595_s26 + $0x498] sm:$0xff]  ;;  %v207_v33 = vld [vmem:[%s8595_s26 + $0x470] sm:$0xff] }
  0x76   :  { %1367 = vmatprep.mubr.bf16.mxu1 %v366_v34  ;;  %5707 = vmatpush2.bf16.msra.mxu1 %v5875_v35  ;;  %v214_v34 = vld [vmem:[%s8595_s26 + $0x4a8] sm:$0xff]  ;;  %v391_v39 = vpack.c.bf16 %v212_v32, %v205_v31  ;;  %v77_v32 = vld [vmem:[%s8595_s26 + $0x60] sm:$0xff] }
  0x77   :  { %5692 = vmatprep.subr.bf16.mxu1 %v5880_v38  ;;  %1489 = vmatpush2.bf16.msra.mxu0 %v5875_v35  ;;  %v220_v35 = vld [vmem:[%s8595_s26 + $0x4d8] sm:$0xff]  ;;  %v393_v40 = vpack.c.bf16 %v214_v34, %v207_v33  ;;  %v70_v31 = vld [vmem:[%s8595_s26 + $0x28] sm:$0xff]  ;;  %v245_v34 = vld [vmem:[%s8595_s26 + $0x5a0] sm:$0xff] }
  0x78   :  { %1490 = vmatprep.subr.bf16.mxu0 %v5880_v38  ;;  %v229_v38 = vld [vmem:[%s8595_s26 + $0x520] sm:$0xff]  ;;  %v399_v41 = vpack.c.bf16 %v227_v36, %v220_v35  ;;  %v238_v33 = vld [vmem:[%s8595_s26 + $0x568] sm:$0xff] }
  0x79   :  { %v401_v42 = vpack.c.bf16 %v229_v38, %v222_v37  ;;  %v326_v37 = vpack.c.bf16 %v77_v32, %v70_v31  ;;  %v410_v38 = vpack.c.bf16 %v245_v34, %v238_v33  ;;  %v5898_v33 = vld [vmem:[%s8596_s23 + $0x70] sm:$0xff]  }
  0x7a   :  { %5708 = vmatpush2.bf16.msra.mxu1 %v5878_v45  ;;  %v5899_v34 = vld [vmem:[%s8596_s23 + $0x30] sm:$0xff]  }
  0x7b   :  { %5693 = vmatprep.subr.bf16.mxu1 %v5883_v46  ;;  %1491 = vmatpush2.bf16.msra.mxu0 %v5878_v45  ;;  %v221_v45 = vld [vmem:[%s8595_s26 + $0x4e0] sm:$0xff] }
  0x7c   :  { %1175 = vmatmul.mubr.bf16.gmra.mxu0 %v363_v47  ;;  %1492 = vmatprep.subr.bf16.mxu0 %v5883_v46  ;;  %v228_v46 = vld [vmem:[%s8595_s26 + $0x518] sm:$0xff]  ;;  %v234_v47 = vld [vmem:[%s8595_s26 + $0x548] sm:$0xff] }
  0x7d   :  { %1368 = vmatmul.mubr.bf16.gmra.mxu1 %v365_v48  ;;  %1184 = vmatprep.mubr.bf16.mxu0 %v371_v49  ;;  %v241_v48 = vld [vmem:[%s8595_s26 + $0x580] sm:$0xff]  ;;  %v236_v49 = vld [vmem:[%s8595_s26 + $0x558] sm:$0xff] }
  0x7e   :  { %1377 = vmatprep.mubr.bf16.mxu1 %v373_v50  ;;  %5709 = vmatpush2.bf16.msra.mxu1 %v5881_v51  ;;  %v243_v50 = vld [vmem:[%s8595_s26 + $0x590] sm:$0xff]  ;;  %v406_v53 = vpack.c.bf16 %v241_v48, %v234_v47 }
  0x7f   :  { %5694 = vmatprep.subr.bf16.mxu1 %v5886_v52  ;;  %1493 = vmatpush2.bf16.msra.mxu0 %v5881_v51  ;;  %v398_v51 = vpack.c.bf16 %v226_v44, %v219_v43  ;;  %v408_v54 = vpack.c.bf16 %v243_v50, %v236_v49  ;;  %v84_v43 = vld [vmem:[%s8595_s26 + $0x98] sm:$0xff]  ;;  %v91_v44 = vld [vmem:[%s8595_s26 + $0xd0] sm:$0xff]  ;;  %v5893_v49 = vld [vmem:[%s8594_s20 + $0x300] ss:$8 sps:$4 sm:$0xff]  }
  0x80   :  { %1494 = vmatprep.subr.bf16.mxu0 %v5886_v52  ;;  %v400_v52 = vpack.c.bf16 %v228_v46, %v221_v45  ;;  %v252_v45 = vld [vmem:[%s8595_s26 + $0x5d8] sm:$0xff]  ;;  %v259_v46 = vld [vmem:[%s8595_s26 + $0x610] sm:$0xff]  ;;  %v333_v50 = vpack.c.bf16 %v91_v44, %v84_v43  ;;  %v153_v44 = vld [vmem:[%s8595_s26 + $0x2c0] sm:$0xff] }
  0x82   :  { %5710 = vmatpush2.bf16.msra.mxu1 %v5884_v61 }
  0x83   :  { %5695 = vmatprep.subr.bf16.mxu1 %v5889_v62  ;;  %1495 = vmatpush2.bf16.msra.mxu0 %v5884_v61  ;;  %v250_v61 = vld [vmem:[%s8595_s26 + $0x5c8] sm:$0xff] }
  0x84   :  { %1185 = vmatmul.mubr.bf16.gmra.mxu0 %v370_v63  ;;  %1496 = vmatprep.subr.bf16.mxu0 %v5889_v62  ;;  %v257_v62 = vld [vmem:[%s8595_s26 + $0x600] sm:$0xff]  ;;  %v405_v63 = vpack.c.bf16 %v240_v56, %v233_v55  ;;  %v258_v55 = vld [vmem:[%s8595_s26 + $0x608] sm:$0xff] }
  0x85   :  { %1378 = vmatmul.mubr.bf16.gmra.mxu1 %v372_v0  ;;  %1194 = vmatprep.mubr.bf16.mxu0 %v378_v1  ;;  %v407_v0 = vpack.c.bf16 %v242_v58, %v235_v57  ;;  %v413_v1 = vpack.c.bf16 %v255_v60, %v248_v59  ;;  %v98_v56 = vld [vmem:[%s8595_s26 + $0x108] sm:$0xff]  ;;  %v105_v57 = vld [vmem:[%s8595_s26 + $0x140] sm:$0xff] }
  0x86   :  { %1387 = vmatprep.mubr.bf16.mxu1 %v380_v2  ;;  %5711 = vmatpush2.bf16.msra.mxu1 %v5887_v3  ;;  %v415_v2 = vpack.c.bf16 %v257_v62, %v250_v61  ;;  %v266_v58 = vld [vmem:[%s8595_s26 + $0x648] sm:$0xff]  ;;  %v273_v59 = vld [vmem:[%s8595_s26 + $0x680] sm:$0xff]  ;;  %v340_v62 = vpack.c.bf16 %v105_v57, %v98_v56 }
  0x87   :  { %5696 = vmatprep.subr.bf16.mxu1 %v5892_v4  ;;  %1497 = vmatpush2.bf16.msra.mxu0 %v5887_v3  ;;  %v247_v3 = vld [vmem:[%s8595_s26 + $0x5b0] sm:$0xff]  ;;  %v174_v56 = vld [vmem:[%s8595_s26 + $0x368] sm:$0xff]  ;;  %v113_v57 = vld [vmem:[%s8595_s26 + $0x180] sm:$0xff] }
  0x88   :  { %1498 = vmatprep.subr.bf16.mxu0 %v5892_v4  ;;  %v254_v4 = vld [vmem:[%s8595_s26 + $0x5e8] sm:$0xff] }
  0x89   :  { %v412_v11 = vpack.c.bf16 %v254_v4, %v247_v3  ;;  %v272_v3 = vld [vmem:[%s8595_s26 + $0x678] sm:$0xff] }
  0x8a   :  { %5712 = vmatpush2.bf16.msra.mxu1 %v5890_v13  ;;  %v112_v4 = vld [vmem:[%s8595_s26 + $0x178] sm:$0xff] }
  0x8b   :  { %1499 = vmatpush2.bf16.msra.mxu0 %v5890_v13  ;;  %1675 = vmatprep.subr.bf16.mxu1 %v5895_v14  ;;  %v420_v13 = vpack.c.bf16 %v269_v8, %v262_v7  ;;  %v422_v14 = vpack.c.bf16 %v271_v10, %v264_v9  ;;  %v287_v7 = vld [vmem:[%s8595_s26 + $0x6f0] sm:$0xff]  ;;  %v347_v10 = vpack.c.bf16 %v119_v5, %v112_v4  ;;  %v181_v4 = vld [vmem:[%s8595_s26 + $0x3a0] sm:$0xff] }
  0x8c   :  { %1195 = vmatmul.mubr.bf16.gmra.mxu0 %v377_v15  ;;  %v261_v15 = vld [vmem:[%s8595_s26 + $0x620] sm:$0xff] }
  0x8d   :  { %1388 = vmatmul.mubr.bf16.gmra.mxu1 %v379_v16  ;;  %1204 = vmatprep.mubr.bf16.mxu0 %v385_v17  ;;  %v268_v16 = vld [vmem:[%s8595_s26 + $0x658] sm:$0xff]  ;;  %v263_v17 = vld [vmem:[%s8595_s26 + $0x630] sm:$0xff] }
  0x8e   :  { %1397 = vmatprep.mubr.bf16.mxu1 %v387_v18  ;;  %v270_v18 = vld [vmem:[%s8595_s26 + $0x668] sm:$0xff]  ;;  %v419_v23 = vpack.c.bf16 %v268_v16, %v261_v15 }
  0x8f   :  { %v421_v24 = vpack.c.bf16 %v270_v18, %v263_v17  ;;  %v286_v15 = vld [vmem:[%s8595_s26 + $0x6e8] sm:$0xff]  ;;  %v133_v17 = vld [vmem:[%s8595_s26 + $0x220] sm:$0xff]  ;;  %v5896_v18 = vld [vmem:[%s8596_s23 + $0x78] sm:$0xff]  }
  0x90   :  { %v126_v16 = vld [vmem:[%s8595_s26 + $0x1e8] sm:$0xff]  ;;  %5239 = vmatprep.subr.bf16.mxu0 %v5896_v18 }
  0x91   :  { %v354_v22 = vpack.c.bf16 %v133_v17, %v126_v16 }
  0x94   :  { %1205 = vmatmul.mubr.bf16.gmra.mxu0 %v384_v27  ;;  %v275_v27 = vld [vmem:[%s8595_s26 + $0x690] sm:$0xff] }
  0x95   :  { %1398 = vmatmul.mubr.bf16.gmra.mxu1 %v386_v28  ;;  %1214 = vmatprep.mubr.bf16.mxu0 %v392_v29  ;;  %v282_v28 = vld [vmem:[%s8595_s26 + $0x6c8] sm:$0xff]  ;;  %v277_v29 = vld [vmem:[%s8595_s26 + $0x6a0] sm:$0xff] }
  0x96   :  { %1407 = vmatprep.mubr.bf16.mxu1 %v394_v30  ;;  %v284_v30 = vld [vmem:[%s8595_s26 + $0x6d8] sm:$0xff]  ;;  %v426_v35 = vpack.c.bf16 %v282_v28, %v275_v27  ;;  %v147_v28 = vld [vmem:[%s8595_s26 + $0x290] sm:$0xff] }
  0x97   :  { %v428_v36 = vpack.c.bf16 %v284_v30, %v277_v29  ;;  %v140_v27 = vld [vmem:[%s8595_s26 + $0x258] sm:$0xff]  ;;  %v8588_v29 = vmov 0  }
  0x98   :  { %v361_v32 = vpack.c.bf16 %v147_v28, %v140_v27 }
  0x9c   :  { %1215 = vmatmul.mubr.bf16.gmra.mxu0 %v391_v39  ;;  %v69_v39 = vld [vmem:[%s8595_s26 + $0x20] sm:$0xff] }
  0x9d   :  { %1408 = vmatmul.mubr.bf16.gmra.mxu1 %v393_v40  ;;  %1224 = vmatprep.mubr.bf16.mxu0 %v399_v41  ;;  %v76_v40 = vld [vmem:[%s8595_s26 + $0x58] sm:$0xff]  ;;  %v237_v41 = vld [vmem:[%s8595_s26 + $0x560] sm:$0xff] }
  0x9e   :  { %1417 = vmatprep.mubr.bf16.mxu1 %v401_v42  ;;  %v244_v42 = vld [vmem:[%s8595_s26 + $0x598] sm:$0xff]  ;;  %v325_v47 = vpack.c.bf16 %v76_v40, %v69_v39  ;;  %v154_v39 = vld [vmem:[%s8595_s26 + $0x2c8] sm:$0xff]  ;;  %v161_v40 = vld [vmem:[%s8595_s26 + $0x300] sm:$0xff] }
  0x9f   :  { %v409_v48 = vpack.c.bf16 %v244_v42, %v237_v41  ;;  %v368_v43 = vpack.c.bf16 %v161_v40, %v154_v39 }
  0xa4   :  { %1225 = vmatmul.mubr.bf16.gmra.mxu0 %v398_v51  ;;  %v417_v51 = vpack.c.bf16 %v259_v46, %v252_v45  ;;  %v160_v45 = vld [vmem:[%s8595_s26 + $0x2f8] sm:$0xff]  ;;  %v99_v46 = vld [vmem:[%s8595_s26 + $0x110] sm:$0xff] }
  0xa5   :  { %1418 = vmatmul.mubr.bf16.gmra.mxu1 %v400_v52  ;;  %1234 = vmatprep.mubr.bf16.mxu0 %v406_v53  ;;  %v83_v52 = vld [vmem:[%s8595_s26 + $0x90] sm:$0xff]  ;;  %v90_v53 = vld [vmem:[%s8595_s26 + $0xc8] sm:$0xff] }
  0xa6   :  { %1427 = vmatprep.mubr.bf16.mxu1 %v408_v54  ;;  %v251_v54 = vld [vmem:[%s8595_s26 + $0x5d0] sm:$0xff]  ;;  %v332_v60 = vpack.c.bf16 %v90_v53, %v83_v52  ;;  %v367_v52 = vpack.c.bf16 %v160_v45, %v153_v44 }
  0xa7   :  { %v416_v61 = vpack.c.bf16 %v258_v55, %v251_v54  ;;  %v167_v55 = vld [vmem:[%s8595_s26 + $0x330] sm:$0xff] }
  0xac   :  { %1235 = vmatmul.mubr.bf16.gmra.mxu0 %v405_v63  ;;  %v424_v63 = vpack.c.bf16 %v273_v59, %v266_v58  ;;  %v120_v58 = vld [vmem:[%s8595_s26 + $0x1b8] sm:$0xff]  ;;  %v533_v59 = vlaneseq }
  0xad   :  { %1428 = vmatmul.mubr.bf16.gmra.mxu1 %v407_v0  ;;  %1244 = vmatprep.mubr.bf16.mxu0 %v413_v1  ;;  %v97_v0 = vld [vmem:[%s8595_s26 + $0x100] sm:$0xff]  ;;  %v104_v1 = vld [vmem:[%s8595_s26 + $0x138] sm:$0xff] }
  0xae   :  { %1437 = vmatprep.mubr.bf16.mxu1 %v415_v2  ;;  %v265_v2 = vld [vmem:[%s8595_s26 + $0x640] sm:$0xff]  ;;  %v339_v8 = vpack.c.bf16 %v104_v1, %v97_v0  ;;  %v534_v1 = vshrl.u32 %v533_v59, 7 }
  0xaf   :  { %v423_v9 = vpack.c.bf16 %v272_v3, %v265_v2  ;;  %v5902_v2 = vld [vmem:[%s8596_s23 + $0x60] sm:$0xff]  }
  0xb0   :  { %v5903_v3 = vld [vmem:[%s8596_s23 + $0x20] sm:$0xff]   ;;  %v535_v5 = vsub.s32 0, %v534_v1 }
  0xb4   :  { %1245 = vmatmul.mubr.bf16.gmra.mxu0 %v412_v11  ;;  %v431_v11 = vpack.c.bf16 %v287_v7, %v280_v6  ;;  %v188_v6 = vld [vmem:[%s8595_s26 + $0x3d8] sm:$0xff]  ;;  %v127_v7 = vld [vmem:[%s8595_s26 + $0x1f0] sm:$0xff] }
  0xb5   :  { %1438 = vmatmul.mubr.bf16.gmra.mxu1 %v414_v12  ;;  %1254 = vmatprep.mubr.bf16.mxu0 %v420_v13  ;;  %v111_v12 = vld [vmem:[%s8595_s26 + $0x170] sm:$0xff]  ;;  %v118_v13 = vld [vmem:[%s8595_s26 + $0x1a8] sm:$0xff] }
  0xb6   :  { %1447 = vmatprep.mubr.bf16.mxu1 %v422_v14  ;;  %v279_v14 = vld [vmem:[%s8595_s26 + $0x6b0] sm:$0xff]  ;;  %v346_v20 = vpack.c.bf16 %v118_v13, %v111_v12  ;;  %v539_v12 = vsub.s32 1, %v534_v1  ;;  %v381_v13 = vpack.c.bf16 %v188_v6, %v181_v4 }
  0xb7   :  { %v430_v21 = vpack.c.bf16 %v286_v15, %v279_v14  ;;  %v5907_v1 = vld [vmem:[%s8596_s23 + $0x10] sm:$0xff]  }
  0xbc   :  { %1255 = vmatmul.mubr.bf16.gmra.mxu0 %v419_v23  ;;  %v125_v23 = vld [vmem:[%s8595_s26 + $0x1e0] sm:$0xff] }
  0xbd   :  { %1448 = vmatmul.mubr.bf16.gmra.mxu1 %v421_v24  ;;  %1264 = vmatprep.mubr.bf16.mxu0 %v427_v25  ;;  %v132_v24 = vld [vmem:[%s8595_s26 + $0x218] sm:$0xff]  ;;  %v71_v25 = vld [vmem:[%s8595_s26 + $0x30] sm:$0xff] }
  0xbe   :  { %1457 = vmatprep.mubr.bf16.mxu1 %v429_v26  ;;  %v78_v26 = vld [vmem:[%s8595_s26 + $0x68] sm:$0xff]  ;;  %v353_v30 = vpack.c.bf16 %v132_v24, %v125_v23  ;;  %v148_v24 = vld [vmem:[%s8595_s26 + $0x298] sm:$0xff] }
  0xbf   :  { %v327_v31 = vpack.c.bf16 %v78_v26, %v71_v25  ;;  %v5904_v25 = vld [vmem:[%s8596_s23 + $0x58] sm:$0xff]  }
  0xc0   :  { %v5905_v26 = vld [vmem:[%s8596_s23 + $0x18] sm:$0xff]  }
  0xc4   :  { %1265 = vmatmul.mubr.bf16.gmra.mxu0 %v426_v35  ;;  %v139_v35 = vld [vmem:[%s8595_s26 + $0x250] sm:$0xff] }
  0xc5   :  { %1458 = vmatmul.mubr.bf16.gmra.mxu1 %v428_v36  ;;  %1500 = vmatprep.mubr.bf16.mxu0 %v326_v37  ;;  %v146_v36 = vld [vmem:[%s8595_s26 + $0x288] sm:$0xff]  ;;  %v85_v37 = vld [vmem:[%s8595_s26 + $0xa0] sm:$0xff] }
  0xc6   :  { %1620 = vmatprep.mubr.bf16.mxu1 %v410_v38  ;;  %v92_v38 = vld [vmem:[%s8595_s26 + $0xd8] sm:$0xff]  ;;  %v360_v41 = vpack.c.bf16 %v146_v36, %v139_v35 }
  0xc7   :  { %v334_v42 = vpack.c.bf16 %v92_v38, %v85_v37 }
  0xcc   :  { %1501 = vmatmul.mubr.bf16.vlgmr.msra.gmra.mxu0 %v325_v47  ;;  %v106_v47 = vld [vmem:[%s8595_s26 + $0x148] sm:$0xff] }
  0xcd   :  { %1621 = vmatmul.mubr.bf16.vlgmr.msra.gmra.mxu1 %v409_v48  ;;  %1510 = vmatprep.mubr.bf16.mxu0 %v333_v50  ;;  %v5900_v48 = vld [vmem:[%s8596_s23 + $0x68] sm:$0xff]   ;;  %v175_v50 = vld [vmem:[%s8595_s26 + $0x370] sm:$0xff]  ;;  %v341_v53 = vpack.c.bf16 %v106_v47, %v99_v46  ;;  %v209_v46 = vld [vmem:[%s8595_s26 + $0x480] sm:$0xff] }
  0xce   :  { %1676 = vmatpush1.bf16.msra.mxu1 %v5893_v49  ;;  %1630 = vmatprep.mubr.bf16.mxu1 %v417_v51  ;;  %v168_v49 = vld [vmem:[%s8595_s26 + $0x338] sm:$0xff]  ;;  %v5901_v51 = vld [vmem:[%s8596_s23 + $0x28] sm:$0xff]  }
  0xcf   :  { %5240 = vmatpush3.bf16.msra.mxu0 %v5897_v19  ;;  %v375_v54 = vpack.c.bf16 %v175_v50, %v168_v49  ;;  %v155_v49 = vld [vmem:[%s8595_s26 + $0x2d0] sm:$0xff]  ;;  %v162_v50 = vld [vmem:[%s8595_s26 + $0x308] sm:$0xff] }
  0xd0   :  { %5241 = vmatprep.subr.bf16.mxu0 %v5898_v33 }
  0xd3   :  { %5242 = vmatpush3.bf16.msra.mxu0 %v5899_v34 }
  0xd4   :  { %1511 = vmatmul.mubr.bf16.gmra.mxu0 %v332_v60  ;;  %5243 = vmatprep.subr.bf16.mxu0 %v5900_v48  ;;  %v182_v60 = vld [vmem:[%s8595_s26 + $0x3a8] sm:$0xff]  ;;  %v216_v48 = vld [vmem:[%s8595_s26 + $0x4b8] sm:$0xff] }
  0xd5   :  { %1631 = vmatmul.mubr.bf16.gmra.mxu1 %v416_v61  ;;  %1520 = vmatprep.mubr.bf16.mxu0 %v340_v62  ;;  %v189_v61 = vld [vmem:[%s8595_s26 + $0x3e0] sm:$0xff]  ;;  %v374_v62 = vpack.c.bf16 %v174_v56, %v167_v55 }
  0xd6   :  { %1640 = vmatprep.mubr.bf16.mxu1 %v424_v63  ;;  %v348_v63 = vpack.c.bf16 %v120_v58, %v113_v57  ;;  %v382_v0 = vpack.c.bf16 %v189_v61, %v182_v60  ;;  %v5906_v57 = vld [vmem:[%s8596_s23 + $0x50] sm:$0xff]   ;;  %v395_v60 = vpack.c.bf16 %v216_v48, %v209_v46  ;;  %v369_v61 = vpack.c.bf16 %v162_v50, %v155_v49 }
  0xd7   :  { %5244 = vmatpush3.bf16.msra.mxu0 %v5901_v51 }
  0xd8   :  { %5245 = vmatprep.subr.bf16.mxu0 %v5902_v2 }
  0xdb   :  { %5246 = vmatpush3.bf16.msra.mxu0 %v5903_v3 }
  0xdc   :  { %1521 = vmatmul.mubr.bf16.gmra.mxu0 %v339_v8  ;;  %v134_v8 = vld [vmem:[%s8595_s26 + $0x228] sm:$0xff]  ;;  %5247 = vmatprep.subr.bf16.mxu0 %v5904_v25 }
  0xdd   :  { %1641 = vmatmul.mubr.bf16.gmra.mxu1 %v423_v9  ;;  %1530 = vmatprep.mubr.bf16.mxu0 %v347_v10  ;;  %v531_v9 = vld [vmem:[%s8597_s2] sm:$0x3]  ;;  %v196_v10 = vld [vmem:[%s8595_s26 + $0x418] sm:$0xff]  ;;  %v355_v14 = vpack.c.bf16 %v134_v8, %v127_v7  ;;  %v223_v7 = vld [vmem:[%s8595_s26 + $0x4f0] sm:$0xff] }
  0xde   :  { %1650 = vmatprep.mubr.bf16.mxu1 %v431_v11  ;;  %v203_v11 = vld [vmem:[%s8595_s26 + $0x450] sm:$0xff]  ;;  %v7078_v15 = vrot.slane %v531_v9, %v535_v5  ;;  %v7080_v17 = vrot.slane %v531_v9, %v539_v12  ;;  %v230_v9 = vld [vmem:[%s8595_s26 + $0x528] sm:$0xff] }
  0xdf   :  { %v389_v16 = vpack.c.bf16 %v203_v11, %v196_v10  ;;  %5248 = vmatpush3.bf16.msra.mxu0 %v5905_v26  ;;  %v169_v10 = vld [vmem:[%s8595_s26 + $0x340] sm:$0xff]  ;;  %v176_v11 = vld [vmem:[%s8595_s26 + $0x378] sm:$0xff] }
  0xe0   :  { %5249 = vmatprep.subr.bf16.mxu0 %v5906_v57  ;;  %v204_v57 = vld [vmem:[%s8595_s26 + $0x458] sm:$0xff] }
  0xe3   :  { %5250 = vmatpush3.bf16.msra.mxu0 %v5907_v1 }
  0xe4   :  { %1531 = vmatmul.mubr.bf16.gmra.mxu0 %v346_v20  ;;  %v195_v20 = vld [vmem:[%s8595_s26 + $0x410] sm:$0xff] }
  0xe5   :  { %1651 = vmatmul.mubr.bf16.gmra.mxu1 %v430_v21  ;;  %1540 = vmatprep.mubr.bf16.mxu0 %v354_v22  ;;  %v202_v21 = vld [vmem:[%s8595_s26 + $0x448] sm:$0xff]  ;;  %v141_v22 = vld [vmem:[%s8595_s26 + $0x260] sm:$0xff] }
  0xe6   :  { %1693 = vmatprep.mubr.bf16.mxu1 %v8588_v29  ;;  %v388_v36 = vpack.c.bf16 %v202_v21, %v195_v20  ;;  %v362_v37 = vpack.c.bf16 %v148_v24, %v141_v22  ;;  %v402_v20 = vpack.c.bf16 %v230_v9, %v223_v7  ;;  %v376_v21 = vpack.c.bf16 %v176_v11, %v169_v10  ;;  %v5910_v7 = vld [vmem:[%s8596_s23 + $0x40] sm:$0xff]  }
  0xec   :  { %1541 = vmatmul.mubr.bf16.gmra.mxu0 %v353_v30  ;;  %v210_v30 = vld [vmem:[%s8595_s26 + $0x488] sm:$0xff] }
  0xed   :  { %5103 = vmatmul.mubr.msk.bf16.vlgmr.msra.gmra.mxu1 %vm1033_vm0, %v327_v31  ;;  %1550 = vmatprep.mubr.bf16.mxu0 %v361_v32  ;;  %v217_v31 = vld [vmem:[%s8595_s26 + $0x4c0] sm:$0xff] }
  0xee   :  { %1703 = vmatprep.mubr.bf16.mxu1 %v8588_v29  ;;  %v396_v40 = vpack.c.bf16 %v217_v31, %v210_v30 }
  0xf4   :  { %1551 = vmatmul.mubr.bf16.gmra.mxu0 %v360_v41 }
  0xf5   :  { %5104 = vmatmul.mubr.msk.bf16.gmra.mxu1 %vm1033_vm0, %v334_v42  ;;  %1560 = vmatprep.mubr.bf16.mxu0 %v368_v43 }
  0xf6   :  { %1713 = vmatprep.mubr.bf16.mxu1 %v8588_v29 }
  0xfc   :  { %1561 = vmatmul.mubr.bf16.gmra.mxu0 %v367_v52 }
  0xfd   :  { %5105 = vmatmul.mubr.msk.bf16.gmra.mxu1 %vm1033_vm0, %v341_v53  ;;  %1570 = vmatprep.mubr.bf16.mxu0 %v375_v54  ;;  %v224_v53 = vld [vmem:[%s8595_s26 + $0x4f8] sm:$0xff]  ;;  %v231_v54 = vld [vmem:[%s8595_s26 + $0x530] sm:$0xff] }
  0xfe   :  { %1723 = vmatprep.mubr.bf16.mxu1 %v8588_v29 }
 0x104   :  { %1571 = vmatmul.mubr.bf16.gmra.mxu0 %v374_v62 }
 0x105   :  { %5106 = vmatmul.mubr.msk.bf16.gmra.mxu1 %vm1033_vm0, %v348_v63  ;;  %1580 = vmatprep.mubr.bf16.mxu0 %v382_v0  ;;  %v403_v0 = vpack.c.bf16 %v231_v54, %v224_v53 }
 0x106   :  { %1733 = vmatprep.mubr.bf16.mxu1 %v8588_v29 }
 0x10c   :  { %v1116_v18 = vpop.f32.mrf.mxu0  ;;  %1581 = vmatmul.mubr.bf16.gmra.mxu0 %v381_v13 }
 0x10d   :  { %v1309_v19 = vpop.f32.mrf.mxu1  ;;  %5107 = vmatmul.mubr.msk.bf16.gmra.mxu1 %vm1033_vm0, %v355_v14  ;;  %v1117_v23 = vadd.f32 %v1116_v18, %v7078_v15  ;;  %1590 = vmatprep.mubr.bf16.mxu0 %v389_v16 }
 0x10e   :  { %1743 = vmatprep.mubr.bf16.mxu1 %v8588_v29  ;;  %v1118_v27 = vpop.f32.mrf.mxu0 }
 0x10f   :  { %v1311_v28 = vpop.f32.mrf.mxu1  ;;  %v7109_v32 = vadd.f32 %v1309_v19, %v1117_v23  ;;  %v1119_v33 = vadd.f32 %v1118_v27, %v7080_v17  ;;  %v5908_v27 = vld [vmem:[%s8596_s23 + $0x48] sm:$0xff]  }
 0x110   :  { %v1120_v34 = vpop.f32.mrf.mxu0  ;;  %5251 = vmatprep.subr.bf16.mxu0 %v5908_v27  ;;  %v5911_v27 = vld [vmem:[%s8596_s23] sm:$0xff]  }
 0x111   :  { %v1313_v35 = vpop.f32.mrf.mxu1  ;;  %v7112_v38 = vadd.f32 %v1311_v28, %v1119_v33  ;;  %v1121_v39 = vadd.f32 %v1120_v34, %v7078_v15  ;;  %v183_v33 = vld [vmem:[%s8595_s26 + $0x3b0] sm:$0xff]  ;;  %v190_v34 = vld [vmem:[%s8595_s26 + $0x3e8] sm:$0xff] }
 0x112   :  { %v7115_v41 = vpop.f32.mrf.mxu0  ;;  %v383_v46 = vpack.c.bf16 %v190_v34, %v183_v33 }
 0x113   :  { %v7117_v42 = vpop.f32.mrf.mxu1  ;;  %v7119_v43 = vadd.f32 %v1313_v35, %v1121_v39  ;;  %v5909_v35 = vld [vmem:[%s8596_s23 + $0x8] sm:$0xff]  }
 0x114   :  { %v1126_v44 = vpop.f32.mrf.mxu0  ;;  %1591 = vmatmul.mubr.bf16.gmra.mxu0 %v388_v36 }
 0x115   :  { %v1319_v45 = vpop.f32.mrf.mxu1  ;;  %5108 = vmatmul.mubr.msk.bf16.gmra.mxu1 %vm1033_vm0, %v362_v37  ;;  %v1127_v47 = vadd.f32 %v1126_v44, %v7078_v15  ;;  %1600 = vmatprep.mubr.bf16.mxu0 %v396_v40 }
 0x116   :  { %1753 = vmatprep.mubr.bf16.mxu1 %v8588_v29  ;;  %v1128_v51 = vpop.f32.mrf.mxu0  ;;  %5252 = vmatpush3.bf16.msra.mxu0 %v5909_v35 }
 0x117   :  { %v1321_v52 = vpop.f32.mrf.mxu1  ;;  %v7142_v55 = vadd.f32 %v1319_v45, %v1127_v47  ;;  %v1129_v56 = vadd.f32 %v1128_v51, %v7080_v17  ;;  %5253 = vmatprep.subr.bf16.mxu0 %v5910_v7 }
 0x118   :  { %v1130_v58 = vpop.f32.mrf.mxu0 }
 0x119   :  { %v1323_v59 = vpop.f32.mrf.mxu1  ;;  %v7148_v62 = vadd.f32 %v1321_v52, %v1129_v56  ;;  %v1131_v63 = vadd.f32 %v1130_v58, %v7078_v15  ;;  %v197_v56 = vld [vmem:[%s8595_s26 + $0x420] sm:$0xff] }
 0x11a   :  { %v7154_v2 = vpop.f32.mrf.mxu0  ;;  %v390_v1 = vpack.c.bf16 %v204_v57, %v197_v56  ;;  %5254 = vmatpush3.bf16.msra.mxu0 %v5911_v27 }
 0x11b   :  { %v7156_v3 = vpop.f32.mrf.mxu1  ;;  %v7158_v4 = vadd.f32 %v1323_v59, %v1131_v63 }
 0x11c   :  { %v1136_v5 = vpop.f32.mrf.mxu0  ;;  %1601 = vmatmul.mubr.bf16.gmra.mxu0 %v395_v60 }
 0x11d   :  { %v1329_v6 = vpop.f32.mrf.mxu1  ;;  %5109 = vmatmul.mubr.msk.bf16.gmra.mxu1 %vm1033_vm0, %v369_v61  ;;  %v1137_v8 = vadd.f32 %v1136_v5, %v7078_v15  ;;  %1610 = vmatprep.mubr.bf16.mxu0 %v403_v0 }
 0x11e   :  { %1763 = vmatprep.mubr.bf16.mxu1 %v8588_v29  ;;  %v1138_v12 = vpop.f32.mrf.mxu0 }
 0x11f   :  { %v1331_v13 = vpop.f32.mrf.mxu1  ;;  %v7175_v14 = vadd.f32 %v1329_v6, %v1137_v8  ;;  %v1139_v16 = vadd.f32 %v1138_v12, %v7080_v17 }
 0x120   :  { %v1140_v18 = vpop.f32.mrf.mxu0 }
 0x121   :  { %v1333_v19 = vpop.f32.mrf.mxu1  ;;  %v7178_v22 = vadd.f32 %v1331_v13, %v1139_v16  ;;  %v1141_v23 = vadd.f32 %v1140_v18, %v7078_v15  ;;  %v211_v16 = vld [vmem:[%s8595_s26 + $0x490] sm:$0xff]  ;;  %v218_v18 = vld [vmem:[%s8595_s26 + $0x4c8] sm:$0xff] }
 0x122   :  { %v7181_v24 = vpop.f32.mrf.mxu0 }
 0x123   :  { %v7183_v25 = vpop.f32.mrf.mxu1  ;;  %v7185_v26 = vadd.f32 %v1333_v19, %v1141_v23 }
 0x124   :  { %v1146_v28 = vpop.f32.mrf.mxu0  ;;  %1611 = vmatmul.mubr.bf16.gmra.mxu0 %v402_v20 }
 0x125   :  { %v1339_v30 = vpop.f32.mrf.mxu1  ;;  %5110 = vmatmul.mubr.msk.bf16.gmra.mxu1 %vm1033_vm0, %v376_v21  ;;  %v1147_v31 = vadd.f32 %v1146_v28, %v7078_v15 }
 0x126   :  { %1773 = vmatprep.mubr.bf16.mxu1 %v8588_v29  ;;  %v1148_v36 = vpop.f32.mrf.mxu0 }
 0x127   :  { %v1341_v37 = vpop.f32.mrf.mxu1  ;;  %v7202_v39 = vadd.f32 %v1339_v30, %v1147_v31  ;;  %v1149_v40 = vadd.f32 %v1148_v36, %v7080_v17  ;;  %v397_v31 = vpack.c.bf16 %v218_v18, %v211_v16  ;;  %v246_v16 = vld [vmem:[%s8595_s26 + $0x5a8] sm:$0xff] }
 0x128   :  { %v1150_v44 = vpop.f32.mrf.mxu0 }
 0x129   :  { %v1343_v45 = vpop.f32.mrf.mxu1  ;;  %v7205_v47 = vadd.f32 %v1341_v37, %v1149_v40  ;;  %v1151_v48 = vadd.f32 %v1150_v44, %v7078_v15 }
 0x12a   :  { %v7208_v49 = vpop.f32.mrf.mxu0 }
 0x12b   :  { %v7210_v50 = vpop.f32.mrf.mxu1  ;;  %v7212_v51 = vadd.f32 %v1343_v45, %v1151_v48  ;;  %v232_v48 = vld [vmem:[%s8595_s26 + $0x538] sm:$0xff] }
 0x12c   :  { %v1156_v52 = vpop.f32.mrf.mxu0 }
 0x12d   :  { %v1349_v53 = vpop.f32.mrf.mxu1  ;;  %5111 = vmatmul.mubr.msk.bf16.gmra.mxu1 %vm1033_vm0, %v383_v46  ;;  %v1157_v54 = vadd.f32 %v1156_v52, %v7078_v15  ;;  %v225_v46 = vld [vmem:[%s8595_s26 + $0x500] sm:$0xff] }
 0x12e   :  { %1783 = vmatprep.mubr.bf16.mxu1 %v8588_v29  ;;  %v1158_v58 = vpop.f32.mrf.mxu0 }
 0x12f   :  { %v1351_v59 = vpop.f32.mrf.mxu1  ;;  %v7223_v60 = vadd.f32 %v1349_v53, %v1157_v54  ;;  %v1159_v61 = vadd.f32 %v1158_v58, %v7080_v17 }
 0x130   :  { %v1160_v63 = vpop.f32.mrf.mxu0 }
 0x131   :  { %v1353_v0 = vpop.f32.mrf.mxu1  ;;  %v7226_v5 = vadd.f32 %v1351_v59, %v1159_v61  ;;  %v1161_v6 = vadd.f32 %v1160_v63, %v7078_v15  ;;  %v404_v59 = vpack.c.bf16 %v232_v48, %v225_v46 }
 0x132   :  { %v7232_v8 = vpop.f32.mrf.mxu0 }
 0x133   :  { %v7234_v9 = vpop.f32.mrf.mxu1  ;;  %v7236_v10 = vadd.f32 %v1353_v0, %v1161_v6 }
 0x134   :  { %v1166_v11 = vpop.f32.mrf.mxu0 }
 0x135   :  { %v1359_v12 = vpop.f32.mrf.mxu1  ;;  %5112 = vmatmul.mubr.msk.bf16.gmra.mxu1 %vm1033_vm0, %v390_v1  ;;  %v1167_v13 = vadd.f32 %v1166_v11, %v7078_v15 }
 0x136   :  { %1793 = vmatprep.mubr.bf16.mxu1 %v8588_v29  ;;  %v1168_v19 = vpop.f32.mrf.mxu0 }
 0x137   :  { %v1361_v20 = vpop.f32.mrf.mxu1  ;;  %v7247_v21 = vadd.f32 %v1359_v12, %v1167_v13  ;;  %v1169_v23 = vadd.f32 %v1168_v19, %v7080_v17  ;;  %v239_v13 = vld [vmem:[%s8595_s26 + $0x570] sm:$0xff] }
 0x138   :  { %v1170_v28 = vpop.f32.mrf.mxu0 }
 0x139   :  { %v1363_v30 = vpop.f32.mrf.mxu1  ;;  %v7253_v33 = vadd.f32 %v1361_v20, %v1169_v23  ;;  %v1171_v34 = vadd.f32 %v1170_v28, %v7078_v15 }
 0x13a   :  { %v7256_v35 = vpop.f32.mrf.mxu0 }
 0x13b   :  { %v7258_v36 = vpop.f32.mrf.mxu1  ;;  %v7260_v37 = vadd.f32 %v1363_v30, %v1171_v34  ;;  %v411_v30 = vpack.c.bf16 %v246_v16, %v239_v13 }
 0x13c   :  { %v1176_v40 = vpop.f32.mrf.mxu0 }
 0x13d   :  { %v1369_v44 = vpop.f32.mrf.mxu1  ;;  %5113 = vmatmul.mubr.msk.bf16.gmra.mxu1 %vm1033_vm0, %v397_v31  ;;  %v1177_v45 = vadd.f32 %v1176_v40, %v7078_v15 }
 0x13e   :  { %1803 = vmatprep.mubr.bf16.mxu1 %v8588_v29  ;;  %v1178_v52 = vpop.f32.mrf.mxu0 }
 0x13f   :  { %v1371_v53 = vpop.f32.mrf.mxu1  ;;  %v7271_v54 = vadd.f32 %v1369_v44, %v1177_v45  ;;  %v1179_v56 = vadd.f32 %v1178_v52, %v7080_v17 }
 0x140   :  { %v1180_v57 = vpop.f32.mrf.mxu0 }
 0x141   :  { %8598 = vst [vmem:[#allocation3_spill] sm:$0xff] %v7271_v54  ;;  %v1373_v58 = vpop.f32.mrf.mxu1  ;;  %v7274_v61 = vadd.f32 %v1371_v53, %v1179_v56  ;;  %v1181_v63 = vadd.f32 %v1180_v57, %v7078_v15  ;;  %v253_v53 = vld [vmem:[%s8595_s26 + $0x5e0] sm:$0xff]  ;;  %v260_v56 = vld [vmem:[%s8595_s26 + $0x618] sm:$0xff] }
 0x142   :  { %v7277_v0 = vpop.f32.mrf.mxu0 }
 0x143   :  { %8599 = vst [vmem:[#allocation4_spill] sm:$0xff] %v7274_v61  ;;  %v7279_v1 = vpop.f32.mrf.mxu1  ;;  %v7281_v6 = vadd.f32 %v1373_v58, %v1181_v63 }
 0x144   :  { %8600 = vst [vmem:[#allocation5_spill] sm:$0xff] %v7279_v1  ;;  %v1186_v7 = vpop.f32.mrf.mxu0 }
 0x145   :  { %8601 = vst [vmem:[#allocation6_spill] sm:$0xff] %v7281_v6  ;;  %v1379_v11 = vpop.f32.mrf.mxu1  ;;  %5114 = vmatmul.mubr.msk.bf16.gmra.mxu1 %vm1033_vm0, %v404_v59  ;;  %v1187_v12 = vadd.f32 %v1186_v7, %v7078_v15 }
 0x146   :  { %1813 = vmatprep.mubr.bf16.mxu1 %v8588_v29  ;;  %v1188_v18 = vpop.f32.mrf.mxu0 }
 0x147   :  { %v1381_v19 = vpop.f32.mrf.mxu1  ;;  %v7292_v20 = vadd.f32 %v1379_v11, %v1187_v12  ;;  %v1189_v23 = vadd.f32 %v1188_v18, %v7080_v17  ;;  %v418_v12 = vpack.c.bf16 %v260_v56, %v253_v53 }
 0x148   :  { %v1190_v27 = vpop.f32.mrf.mxu0 }
 0x149   :  { %8602 = vst [vmem:[#allocation7_spill] sm:$0xff] %v7292_v20  ;;  %v1383_v28 = vpop.f32.mrf.mxu1  ;;  %v7295_v31 = vadd.f32 %v1381_v19, %v1189_v23  ;;  %v1191_v34 = vadd.f32 %v1190_v27, %v7078_v15 }
 0x14a   :  { %v7298_v40 = vpop.f32.mrf.mxu0 }
 0x14b   :  { %8603 = vst [vmem:[#allocation8_spill] sm:$0xff] %v7295_v31  ;;  %8604 = vst [vmem:[#allocation9_spill] sm:$0xff] %v7298_v40  ;;  %v7300_v44 = vpop.f32.mrf.mxu1  ;;  %v7302_v45 = vadd.f32 %v1383_v28, %v1191_v34  ;;  %v267_v34 = vld [vmem:[%s8595_s26 + $0x650] sm:$0xff] }
 0x14c   :  { %8605 = vst [vmem:[#allocation10_spill] sm:$0xff] %v7300_v44  ;;  %v1196_v46 = vpop.f32.mrf.mxu0 }
 0x14d   :  { %8606 = vst [vmem:[#allocation11_spill] sm:$0xff] %v7302_v45  ;;  %v1389_v48 = vpop.f32.mrf.mxu1  ;;  %5115 = vmatmul.mubr.msk.bf16.gmra.mxu1 %vm1033_vm0, %v411_v30  ;;  %v1197_v52 = vadd.f32 %v1196_v46, %v7078_v15  ;;  %v274_v46 = vld [vmem:[%s8595_s26 + $0x688] sm:$0xff] }
 0x14e   :  { %1823 = vmatprep.mubr.bf16.mxu1 %v8588_v29  ;;  %v1198_v57 = vpop.f32.mrf.mxu0 }
 0x14f   :  { %v1391_v58 = vpop.f32.mrf.mxu1  ;;  %v7313_v59 = vadd.f32 %v1389_v48, %v1197_v52  ;;  %v1199_v63 = vadd.f32 %v1198_v57, %v7080_v17 }
 0x150   :  { %v1200_v7 = vpop.f32.mrf.mxu0 }
 0x151   :  { %8607 = vst [vmem:[#allocation12_spill] sm:$0xff] %v7313_v59  ;;  %v1393_v11 = vpop.f32.mrf.mxu1  ;;  %v7316_v13 = vadd.f32 %v1391_v58, %v1199_v63  ;;  %v1201_v16 = vadd.f32 %v1200_v7, %v7078_v15  ;;  %v425_v63 = vpack.c.bf16 %v274_v46, %v267_v34  ;;  %v281_v34 = vld [vmem:[%s8595_s26 + $0x6c0] sm:$0xff]  ;;  %v288_v46 = vld [vmem:[%s8595_s26 + $0x6f8] sm:$0xff] }
 0x152   :  { %v7319_v18 = vpop.f32.mrf.mxu0 }
 0x153   :  { %8608 = vst [vmem:[#allocation13_spill] sm:$0xff] %v7316_v13  ;;  %8609 = vst [vmem:[#allocation14_spill] sm:$0xff] %v7319_v18  ;;  %v7321_v19 = vpop.f32.mrf.mxu1  ;;  %v7323_v23 = vadd.f32 %v1393_v11, %v1201_v16 }
 0x154   :  { %8610 = vst [vmem:[#allocation15_spill] sm:$0xff] %v7321_v19  ;;  %v1206_v27 = vpop.f32.mrf.mxu0 }
 0x155   :  { %8611 = vst [vmem:[#allocation16_spill] sm:$0xff] %v7323_v23  ;;  %v1399_v28 = vpop.f32.mrf.mxu1  ;;  %5116 = vmatmul.mubr.msk.bf16.gmra.mxu1 %vm1033_vm0, %v418_v12  ;;  %v1207_v30 = vadd.f32 %v1206_v27, %v7078_v15 }
 0x156   :  { %1833 = vmatprep.mubr.bf16.mxu1 %v8588_v29  ;;  %v1208_v48 = vpop.f32.mrf.mxu0 }
 0x157   :  { %v1401_v52 = vpop.f32.mrf.mxu1  ;;  %v7334_v53 = vadd.f32 %v1399_v28, %v1207_v30  ;;  %v1209_v56 = vadd.f32 %v1208_v48, %v7080_v17  ;;  %v8617_v30 = vmov 0  }
 0x158   :  { %v1210_v57 = vpop.f32.mrf.mxu0 }
 0x159   :  { %8612 = vst [vmem:[#allocation17_spill] sm:$0xff] %v7334_v53  ;;  %v1403_v58 = vpop.f32.mrf.mxu1  ;;  %v7337_v7 = vadd.f32 %v1401_v52, %v1209_v56  ;;  %v1211_v11 = vadd.f32 %v1210_v57, %v7078_v15 }
 0x15a   :  { %v7340_v12 = vpop.f32.mrf.mxu0 }
 0x15b   :  { %8613 = vst [vmem:[#allocation18_spill] sm:$0xff] %v7337_v7  ;;  %8614 = vst [vmem:[#allocation19_spill] sm:$0xff] %v7340_v12  ;;  %v7342_v16 = vpop.f32.mrf.mxu1  ;;  %v7344_v27 = vadd.f32 %v1403_v58, %v1211_v11  ;;  %v432_v11 = vpack.c.bf16 %v288_v46, %v281_v34 }
 0x15c   :  { %8615 = vst [vmem:[#allocation20_spill] sm:$0xff] %v7342_v16  ;;  %v1216_v29 = vpop.f32.mrf.mxu0 }
 0x15d   :  { %8616 = vst [vmem:[#allocation21_spill] sm:$0xff] %v7344_v27  ;;  %v1409_v23 = vpop.f32.mrf.mxu1  ;;  %5117 = vmatmul.mubr.msk.bf16.gmra.mxu1 %vm1033_vm0, %v425_v63  ;;  %v1217_v28 = vadd.f32 %v1216_v29, %v7078_v15 }
 0x15e   :  { %1843 = vmatprep.mubr.bf16.mxu1 %v8617_v30  ;;  %v1218_v48 = vpop.f32.mrf.mxu0 }
 0x15f   :  { %v1411_v52 = vpop.f32.mrf.mxu1  ;;  %v7355_v56 = vadd.f32 %v1409_v23, %v1217_v28  ;;  %v1219_v57 = vadd.f32 %v1218_v48, %v7080_v17 }
 0x160   :  { %v1220_v58 = vpop.f32.mrf.mxu0 }
 0x161   :  { %8618 = vst [vmem:[#allocation22_spill] sm:$0xff] %v7355_v56  ;;  %v1413_v63 = vpop.f32.mrf.mxu1  ;;  %v7358_v29 = vadd.f32 %v1411_v52, %v1219_v57  ;;  %v1221_v30 = vadd.f32 %v1220_v58, %v7078_v15 }
 0x162   :  { %v7361_v27 = vpop.f32.mrf.mxu0 }
 0x163   :  { %8619 = vst [vmem:[#allocation23_spill] sm:$0xff] %v7358_v29  ;;  %8620 = vst [vmem:[#allocation24_spill] sm:$0xff] %v7361_v27  ;;  %v7363_v16 = vpop.f32.mrf.mxu1  ;;  %v7365_v7 = vadd.f32 %v1413_v63, %v1221_v30 }
 0x164   :  { %8621 = vst [vmem:[#allocation25_spill] sm:$0xff] %v7363_v16  ;;  %v1226_v53 = vpop.f32.mrf.mxu0 }
 0x165   :  { %8622 = vst [vmem:[#allocation26_spill] sm:$0xff] %v7365_v7  ;;  %v1419_v12 = vpop.f32.mrf.mxu1  ;;  %5118 = vmatmul.mubr.msk.bf16.gmra.mxu1 %vm1033_vm0, %v432_v11  ;;  %v1227_v23 = vadd.f32 %v1226_v53, %v7078_v15 }
 0x166   :  { %v1228_v28 = vpop.f32.mrf.mxu0 }
 0x167   :  { %v1421_v48 = vpop.f32.mrf.mxu1  ;;  %v7369_v56 = vadd.f32 %v1419_v12, %v1227_v23  ;;  %v1229_v34 = vadd.f32 %v1228_v28, %v7080_v17 }
 0x168   :  { %v1230_v46 = vpop.f32.mrf.mxu0 }
 0x169   :  { %8623 = vst [vmem:[#allocation27_spill] sm:$0xff] %v7369_v56  ;;  %v1423_v52 = vpop.f32.mrf.mxu1  ;;  %v7372_v57 = vadd.f32 %v1421_v48, %v1229_v34  ;;  %v1231_v58 = vadd.f32 %v1230_v46, %v7078_v15 }
 0x16a   :  { %v7375_v30 = vpop.f32.mrf.mxu0 }
 0x16b   :  { %8624 = vst [vmem:[#allocation28_spill] sm:$0xff] %v7372_v57  ;;  %8625 = vst [vmem:[#allocation29_spill] sm:$0xff] %v7375_v30  ;;  %v7377_v63 = vpop.f32.mrf.mxu1  ;;  %v7379_v7 = vadd.f32 %v1423_v52, %v1231_v58 }
 0x16c   :  { %8626 = vst [vmem:[#allocation30_spill] sm:$0xff] %v7377_v63  ;;  %v1236_v11 = vpop.f32.mrf.mxu0 }
 0x16d   :  { %8627 = vst [vmem:[#allocation31_spill] sm:$0xff] %v7379_v7  ;;  %v1429_v53 = vpop.f32.mrf.mxu1  ;;  %v1237_v16 = vadd.f32 %v1236_v11, %v7078_v15 }
 0x16e   :  { %v1238_v12 = vpop.f32.mrf.mxu0 }
 0x16f   :  { %v1431_v23 = vpop.f32.mrf.mxu1  ;;  %v1430_v56 = vadd.f32 %v1429_v53, %v1237_v16  ;;  %v1239_v28 = vadd.f32 %v1238_v12, %v7080_v17 }
 0x170   :  { %v1240_v29 = vpop.f32.mrf.mxu0 }
 0x171   :  { %v1433_v48 = vpop.f32.mrf.mxu1  ;;  %v1432_v34 = vadd.f32 %v1431_v23, %v1239_v28  ;;  %v1241_v46 = vadd.f32 %v1240_v29, %v7078_v15 }
 0x172   :  { %v7384_v57 = vpop.f32.mrf.mxu0 }
 0x173   :  { %8628 = vst [vmem:[#allocation32_spill] sm:$0xff] %v7384_v57  ;;  %v7386_v30 = vpop.f32.mrf.mxu1  ;;  %v1434_v52 = vadd.f32 %v1433_v48, %v1241_v46 }
 0x174   :  { %8629 = vst [vmem:[#allocation33_spill] sm:$0xff] %v7386_v30  ;;  %v1246_v58 = vpop.f32.mrf.mxu0 }
 0x175   :  { %v1439_v7 = vpop.f32.mrf.mxu1  ;;  %v1247_v63 = vadd.f32 %v1246_v58, %v7078_v15 }
 0x176   :  { %v1248_v11 = vpop.f32.mrf.mxu0 }
 0x177   :  { %v1441_v27 = vpop.f32.mrf.mxu1  ;;  %v1440_v19 = vadd.f32 %v1439_v7, %v1247_v63  ;;  %v1249_v16 = vadd.f32 %v1248_v11, %v7080_v17 }
 0x178   :  { %v1250_v53 = vpop.f32.mrf.mxu0 }
 0x179   :  { %v1443_v12 = vpop.f32.mrf.mxu1  ;;  %v1442_v13 = vadd.f32 %v1441_v27, %v1249_v16  ;;  %v1251_v23 = vadd.f32 %v1250_v53, %v7078_v15 }
 0x17a   :  { %v7391_v29 = vpop.f32.mrf.mxu0 }
 0x17b   :  { %8630 = vst [vmem:[#allocation34_spill] sm:$0xff] %v7391_v29  ;;  %v7393_v28 = vpop.f32.mrf.mxu1  ;;  %v1444_v30 = vadd.f32 %v1443_v12, %v1251_v23 }
 0x17c   :  { %8631 = vst [vmem:[#allocation35_spill] sm:$0xff] %v7393_v28  ;;  %v1256_v48 = vpop.f32.mrf.mxu0 }
 0x17d   :  { %v1449_v46 = vpop.f32.mrf.mxu1  ;;  %v1257_v57 = vadd.f32 %v1256_v48, %v7078_v15 }
 0x17e   :  { %v1258_v58 = vpop.f32.mrf.mxu0 }
 0x17f   :  { %v1451_v59 = vpop.f32.mrf.mxu1  ;;  %v1450_v18 = vadd.f32 %v1449_v46, %v1257_v57  ;;  %v1259_v7 = vadd.f32 %v1258_v58, %v7080_v17 }
 0x180   :  { %v1260_v63 = vpop.f32.mrf.mxu0 }
 0x181   :  { %v1453_v11 = vpop.f32.mrf.mxu1  ;;  %v1452_v45 = vadd.f32 %v1451_v59, %v1259_v7  ;;  %v1261_v27 = vadd.f32 %v1260_v63, %v7078_v15 }
 0x182   :  { %v7398_v16 = vpop.f32.mrf.mxu0 }
 0x183   :  { %8632 = vst [vmem:[#allocation36_spill] sm:$0xff] %v7398_v16  ;;  %v7400_v53 = vpop.f32.mrf.mxu1  ;;  %v1454_v28 = vadd.f32 %v1453_v11, %v1261_v27 }
 0x184   :  { %8633 = vst [vmem:[#allocation37_spill] sm:$0xff] %v7400_v53  ;;  %v1266_v12 = vpop.f32.mrf.mxu0 }
 0x185   :  { %v1459_v23 = vpop.f32.mrf.mxu1  ;;  %v1267_v29 = vadd.f32 %v1266_v12, %v7078_v15 }
 0x186   :  { %v1268_v48 = vpop.f32.mrf.mxu0 }
 0x187   :  { %v1461_v44 = vpop.f32.mrf.mxu1  ;;  %v1460_v31 = vadd.f32 %v1459_v23, %v1267_v29  ;;  %v1269_v57 = vadd.f32 %v1268_v48, %v7080_v17 }
 0x188   :  { %v1270_v46 = vpop.f32.mrf.mxu0 }
 0x189   :  { %v1463_v58 = vpop.f32.mrf.mxu1  ;;  %v1462_v20 = vadd.f32 %v1461_v44, %v1269_v57  ;;  %v1271_v59 = vadd.f32 %v1270_v46, %v7078_v15 }
 0x18a   :  { %v7405_v7 = vpop.f32.mrf.mxu0 }
 0x18b   :  { %8634 = vst [vmem:[#allocation38_spill] sm:$0xff] %v7405_v7  ;;  %v7407_v63 = vpop.f32.mrf.mxu1  ;;  %v1464_v53 = vadd.f32 %v1463_v58, %v1271_v59 }
 0x18c   :  { %8635 = vst [vmem:[#allocation39_spill] sm:$0xff] %v7407_v63  ;;  %v1502_v11 = vpop.f32.mrf.mxu0 }
 0x18d   :  { %v1622_v27 = vpop.f32.mrf.mxu1 }
 0x18e   :  { %v7409_v16 = vadd.f32 %v1622_v27, %v1430_v56  ;;  %v1504_v12 = vpop.f32.mrf.mxu0 }
 0x18f   :  { %v1624_v40 = vpop.f32.mrf.mxu1 }
 0x190   :  { %8636 = vst [vmem:[#allocation40_spill] sm:$0xff] %v7409_v16  ;;  %v7411_v6 = vadd.f32 %v1624_v40, %v1432_v34  ;;  %v1506_v29 = vpop.f32.mrf.mxu0 }
 0x191   :  { %v1626_v23 = vpop.f32.mrf.mxu1 }
 0x192   :  { %8637 = vst [vmem:[#allocation41_spill] sm:$0xff] %v7411_v6  ;;  %v7413_v48 = vadd.f32 %v1626_v23, %v1434_v52  ;;  %v1508_v44 = vpop.f32.mrf.mxu0 }
 0x193   :  { %v7415_v57 = vpop.f32.mrf.mxu1 }
 0x194   :  { %8638 = vst [vmem:[#allocation42_spill] sm:$0xff] %v7413_v48  ;;  %8639 = vst [vmem:[#allocation43_spill] sm:$0xff] %v7415_v57  ;;  %v1512_v15 = vpop.f32.mrf.mxu0 }
 0x195   :  { %v1632_v46 = vpop.f32.mrf.mxu1 }
 0x196   :  { %v7417_v7 = vadd.f32 %v1632_v46, %v1440_v19  ;;  %v7419_v58 = vpop.f32.mrf.mxu0 }
 0x197   :  { %v1634_v59 = vpop.f32.mrf.mxu1 }
 0x198   :  { %8640 = vst [vmem:[#allocation44_spill] sm:$0xff] %v7417_v7  ;;  %v7421_v56 = vadd.f32 %v1634_v59, %v1442_v13  ;;  %v7423_v27 = vpop.f32.mrf.mxu0 }
 0x199   :  { %v1636_v40 = vpop.f32.mrf.mxu1 }
 0x19a   :  { %8641 = vst [vmem:[#allocation45_spill] sm:$0xff] %v7421_v56  ;;  %v7425_v34 = vadd.f32 %v1636_v40, %v1444_v30  ;;  %v7427_v63 = vpop.f32.mrf.mxu0 }
 0x19b   :  { %v7429_v52 = vpop.f32.mrf.mxu1 }
 0x19c   :  { %8642 = vst [vmem:[#allocation46_spill] sm:$0xff] %v7425_v34  ;;  %8643 = vst [vmem:[#allocation47_spill] sm:$0xff] %v7429_v52  ;;  %v7431_v23 = vpop.f32.mrf.mxu0 }
 0x19d   :  { %v1642_v48 = vpop.f32.mrf.mxu1 }
 0x19e   :  { %v7433_v57 = vadd.f32 %v1642_v48, %v1450_v18  ;;  %v7435_v19 = vpop.f32.mrf.mxu0 }
 0x19f   :  { %v1644_v46 = vpop.f32.mrf.mxu1 }
 0x1a0   :  { %8644 = vst [vmem:[#allocation48_spill] sm:$0xff] %v7433_v57  ;;  %v7437_v7 = vadd.f32 %v1644_v46, %v1452_v45  ;;  %v7439_v13 = vpop.f32.mrf.mxu0 }
 0x1a1   :  { %v1646_v59 = vpop.f32.mrf.mxu1 }
 0x1a2   :  { %8645 = vst [vmem:[#allocation49_spill] sm:$0xff] %v7437_v7  ;;  %v7441_v56 = vadd.f32 %v1646_v59, %v1454_v28  ;;  %v7443_v30 = vpop.f32.mrf.mxu0 }
 0x1a3   :  { %v7445_v40 = vpop.f32.mrf.mxu1 }
 0x1a4   :  { %8646 = vst [vmem:[#allocation50_spill] sm:$0xff] %v7441_v56  ;;  %8647 = vst [vmem:[#allocation51_spill] sm:$0xff] %v7445_v40  ;;  %v7447_v34 = vpop.f32.mrf.mxu0  ;;  %v1123_v56 = vadd.f32 %v7115_v41, %v7080_v17 }
 0x1a5   :  { %v1652_v52 = vpop.f32.mrf.mxu1 }
 0x1a6   :  { %v7449_v6 = vadd.f32 %v1652_v52, %v1460_v31  ;;  %v7451_v18 = vpop.f32.mrf.mxu0  ;;  %v1503_v31 = vadd.f32 %v1502_v11, %v7109_v32 }
 0x1a7   :  { %v1654_v48 = vpop.f32.mrf.mxu1 }
 0x1a8   :  { %8648 = vst [vmem:[#allocation52_spill] sm:$0xff] %v7449_v6  ;;  %v7453_v57 = vadd.f32 %v1654_v48, %v1462_v20  ;;  %v7455_v45 = vpop.f32.mrf.mxu0  ;;  %v1505_v20 = vadd.f32 %v1504_v12, %v7112_v38  ;;  %v1133_v38 = vadd.f32 %v7154_v2, %v7080_v17  ;;  %v1515_v2 = vadd.f32 %v7419_v58, %v7148_v62 }
 0x1a9   :  { %v1656_v46 = vpop.f32.mrf.mxu1 }
 0x1aa   :  { %8649 = vst [vmem:[#allocation53_spill] sm:$0xff] %v7453_v57  ;;  %v7457_v7 = vadd.f32 %v1656_v46, %v1464_v53  ;;  %v7459_v28 = vpop.f32.mrf.mxu0  ;;  %v1316_v53 = vadd.f32 %v7117_v42, %v1123_v56  ;;  %v1507_v46 = vadd.f32 %v1506_v29, %v7119_v43 }
 0x1ab   :  { %v7461_v59 = vpop.f32.mrf.mxu1 }
 0x1ac   :  { %8650 = vst [vmem:[#allocation54_spill] sm:$0xff] %v7457_v7  ;;  %8651 = vst [vmem:[#allocation55_spill] sm:$0xff] %v7461_v59  ;;  %v7466_v52 = vpop.f32.mrf.mxu0  ;;  %v1509_v41 = vadd.f32 %v1508_v44, %v1316_v53  ;;  %v1517_v53 = vadd.f32 %v7423_v27, %v7158_v4 }
 0x1ad   :  { %v1695_v6 = vpop.f32.mrf.mxu1 }
 0x1ae   :  { %v1696_v48 = vadd.f32 %v1695_v6, %v1503_v31  ;;  %v7469_v57 = vpop.f32.mrf.mxu0  ;;  %v1513_v6 = vadd.f32 %v1512_v15, %v7142_v55 }
 0x1af   :  { %v1697_v40 = vpop.f32.mrf.mxu1 }
 0x1b0   :  { %v1698_v7 = vadd.f32 %v1697_v40, %v1505_v20  ;;  %v7473_v59 = vpop.f32.mrf.mxu0  ;;  %v1918_v1 = vmul.f32 0.01, %v1696_v48  ;;  %vm1854_vm1 = vcmp.gt.f32.partialorder %v1696_v48, 0.0  ;;  %v5912_v40 = vld [vmem:[%s8569_s6 + $0x38] sm:$0xff]   ;;  %v1326_v20 = vadd.f32 %v7156_v3, %v1133_v38  ;;  %v5914_v3 = vld [vmem:[%s8569_s6 + $0x28] sm:$0xff]  }
 0x1b1   :  { %v1699_v16 = vpop.f32.mrf.mxu1  ;;  %5461 = vmatprep.subr.bf16.mxu1 %v5912_v40 }
 0x1b2   :  { %v1700_v32 = vadd.f32 %v1699_v16, %v1507_v46  ;;  %v7475_v11 = vpop.f32.mrf.mxu0  ;;  %vm1855_vm2 = vcmp.gt.f32.partialorder %v1698_v7, 0.0  ;;  %v1919_v42 = vmul.f32 0.01, %v1698_v7  ;;  %v1982_v55 = vsel %vm1854_vm1, %v1696_v48, %v1918_v1  ;;  %5462 = vmatpush3.bf16.msra.mxu1 %v5912_v40 }
 0x1b3   :  { %v1701_v61 = vpop.f32.mrf.mxu1  ;;  %v1519_v4 = vadd.f32 %v7427_v63, %v1326_v20  ;;  %v1525_v63 = vadd.f32 %v7435_v19, %v7178_v22  ;;  %v1527_v22 = vadd.f32 %v7439_v13, %v7185_v26 }
 0x1b4   :  { %v1702_v12 = vadd.f32 %v1701_v61, %v1509_v41  ;;  %vm1856_vm3 = vcmp.gt.f32.partialorder %v1700_v32, 0.0  ;;  %v1920_v43 = vmul.f32 0.01, %v1700_v32  ;;  %v7480_v29 = vpop.f32.mrf.mxu0  ;;  %v1983_v1 = vsel %vm1855_vm2, %v1698_v7, %v1919_v42 }
 0x1b5   :  { %v1705_v56 = vpop.f32.mrf.mxu1 }
 0x1b6   :  { %vm1857_vm4 = vcmp.gt.f32.partialorder %v1702_v12, 0.0  ;;  %v1921_v44 = vmul.f32 0.01, %v1702_v12  ;;  %v1706_v16 = vadd.f32 %v1705_v56, %v1513_v6  ;;  %v1984_v15 = vsel %vm1856_vm3, %v1700_v32, %v1920_v43  ;;  %v7487_v61 = vpop.f32.mrf.mxu0  ;;  %v5913_v6 = vld [vmem:[%s8569_s6 + $0x30] sm:$0xff]  }
 0x1b7   :  { %v1707_v31 = vpop.f32.mrf.mxu1  ;;  %v2046_v46 = vpack.c.bf16 %v1984_v15, %v1982_v55  ;;  %5463 = vmatprep.subr.bf16.mxu1 %v5913_v6  ;;  %v1143_v32 = vadd.f32 %v7181_v24, %v7080_v17 }
 0x1b8   :  { %v1922_v41 = vmul.f32 0.01, %v1706_v16  ;;  %v1708_v56 = vadd.f32 %v1707_v31, %v1515_v2  ;;  %v7495_v54 = vpop.f32.mrf.mxu0  ;;  %v1985_v58 = vsel %vm1857_vm4, %v1702_v12, %v1921_v44  ;;  %vm1858_vm5 = vcmp.gt.f32.partialorder %v1706_v16, 0.0  ;;  %5464 = vmatpush3.bf16.msra.mxu1 %v5913_v6 }
 0x1b9   :  { %v1709_v62 = vpop.f32.mrf.mxu1  ;;  %v2047_v48 = vpack.c.bf16 %v1985_v58, %v1983_v1  ;;  %v1523_v44 = vadd.f32 %v7431_v23, %v7175_v14  ;;  %5465 = vmatprep.subr.bf16.mxu1 %v5914_v3  ;;  %v1336_v31 = vadd.f32 %v7183_v25, %v1143_v32  ;;  %v1533_v32 = vadd.f32 %v7447_v34, %v7202_v39 }
 0x1ba   :  { %v1710_v27 = vadd.f32 %v1709_v62, %v1517_v53  ;;  %v1923_v38 = vmul.f32 0.01, %v1708_v56  ;;  %v7505_v43 = vpop.f32.mrf.mxu0  ;;  %vm1859_vm6 = vcmp.gt.f32.partialorder %v1708_v56, 0.0  ;;  %v1986_v2 = vsel %vm1858_vm5, %v1706_v16, %v1922_v41 }
 0x1bb   :  { %v1711_v7 = vpop.f32.mrf.mxu1  ;;  %2245 = vmatprep.mubr.bf16.mxu0 %v2047_v48  ;;  %v1529_v1 = vadd.f32 %v7443_v30, %v1336_v31  ;;  %v1535_v30 = vadd.f32 %v7451_v18, %v7205_v47  ;;  %v1537_v39 = vadd.f32 %v7455_v45, %v7212_v51 }
 0x1bc   :  { %vm1860_vm7 = vcmp.gt.f32.partialorder %v1710_v27, 0.0  ;;  %v1924_v12 = vmul.f32 0.01, %v1710_v27  ;;  %v1712_v42 = vadd.f32 %v1711_v7, %v1519_v4  ;;  %2246 = vmatmul.mubr.bf16.vlgmr.msra.gmra.mxu0 %v2046_v46  ;;  %v7511_v40 = vpop.f32.mrf.mxu0  ;;  %v1987_v19 = vsel %vm1859_vm6, %v1708_v56, %v1923_v38  ;;  %5466 = vmatpush3.bf16.msra.mxu1 %v5914_v3 }
 0x1bd   :  { %v1715_v24 = vpop.f32.mrf.mxu1  ;;  %v1153_v4 = vadd.f32 %v7208_v49, %v7080_v17 }
 0x1be   :  { %v1988_v55 = vsel %vm1860_vm7, %v1710_v27, %v1924_v12  ;;  %vm1861_vm8 = vcmp.gt.f32.partialorder %v1712_v42, 0.0  ;;  %v1925_v15 = vmul.f32 0.01, %v1712_v42  ;;  %v1716_v53 = vadd.f32 %v1715_v24, %v1523_v44  ;;  %v7514_v62 = vpop.f32.mrf.mxu0 }
 0x1bf   :  { %v2048_v20 = vpack.c.bf16 %v1988_v55, %v1986_v2  ;;  %v1717_v14 = vpop.f32.mrf.mxu1 }
 0x1c0   :  { %v1718_v23 = vadd.f32 %v1717_v14, %v1525_v63  ;;  %v1989_v46 = vsel %vm1861_vm8, %v1712_v42, %v1925_v15  ;;  %v7519_v6 = vpop.f32.mrf.mxu0  ;;  %v1926_v25 = vmul.f32 0.01, %v1716_v53  ;;  %vm1862_vm9 = vcmp.gt.f32.partialorder %v1716_v53, 0.0 }
 0x1c1   :  { %v1719_v16 = vpop.f32.mrf.mxu1  ;;  %v2049_v41 = vpack.c.bf16 %v1989_v46, %v1987_v19  ;;  %v1346_v42 = vadd.f32 %v7210_v50, %v1153_v4  ;;  %v1163_v50 = vadd.f32 %v7232_v8, %v7080_v17  ;;  %v1543_v46 = vadd.f32 %v7466_v52, %v7223_v60 }
 0x1c2   :  { %v1720_v58 = vadd.f32 %v1719_v16, %v1527_v22  ;;  %v7524_v27 = vpop.f32.mrf.mxu0  ;;  %v1927_v13 = vmul.f32 0.01, %v1718_v23  ;;  %vm1863_vm11 = vcmp.gt.f32.partialorder %v1718_v23, 0.0  ;;  %v1990_v38 = vsel %vm1862_vm9, %v1716_v53, %v1926_v25 }
 0x1c3   :  { %v1721_v26 = vpop.f32.mrf.mxu1  ;;  %2253 = vmatprep.mubr.bf16.mxu0 %v2049_v41  ;;  %v1547_v60 = vadd.f32 %v7473_v59, %v7236_v10 }
 0x1c4   :  { %vm1864_vm10 = vcmp.gt.f32.partialorder %v1720_v58, 0.0  ;;  %v1928_v56 = vmul.f32 0.01, %v1720_v58  ;;  %v1722_v48 = vadd.f32 %v1721_v26, %v1529_v1  ;;  %2254 = vmatmul.mubr.bf16.gmra.mxu0 %v2048_v20  ;;  %v7530_v3 = vpop.f32.mrf.mxu0  ;;  %v1991_v34 = vsel %vm1863_vm11, %v1718_v23, %v1927_v13 }
 0x1c5   :  { %v1725_v49 = vpop.f32.mrf.mxu1  ;;  %v1539_v20 = vadd.f32 %v7459_v28, %v1346_v42  ;;  %v1545_v28 = vadd.f32 %v7469_v57, %v7226_v5 }
 0x1c6   :  { %v1992_v7 = vsel %vm1864_vm10, %v1720_v58, %v1928_v56  ;;  %vm1865_vm12 = vcmp.gt.f32.partialorder %v1722_v48, 0.0  ;;  %v1929_v12 = vmul.f32 0.01, %v1722_v48  ;;  %v1726_v63 = vadd.f32 %v1725_v49, %v1533_v32  ;;  %v7533_v24 = vpop.f32.mrf.mxu0 }
 0x1c7   :  { %v2050_v44 = vpack.c.bf16 %v1992_v7, %v1990_v38  ;;  %v1727_v2 = vpop.f32.mrf.mxu1  ;;  %v1356_v58 = vadd.f32 %v7234_v9, %v1163_v50  ;;  %v1173_v9 = vadd.f32 %v7256_v35, %v7080_v17 }
 0x1c8   :  { %v1728_v47 = vadd.f32 %v1727_v2, %v1535_v30  ;;  %v1993_v18 = vsel %vm1865_vm12, %v1722_v48, %v1929_v12  ;;  %v7537_v55 = vpop.f32.mrf.mxu0  ;;  %v1930_v53 = vmul.f32 0.01, %v1726_v63  ;;  %vm1866_vm13 = vcmp.gt.f32.partialorder %v1726_v63, 0.0 }
 0x1c9   :  { %v1729_v15 = vpop.f32.mrf.mxu1  ;;  %v2051_v31 = vpack.c.bf16 %v1993_v18, %v1991_v34  ;;  %v1549_v30 = vadd.f32 %v7475_v11, %v1356_v58  ;;  %v1555_v11 = vadd.f32 %v7487_v61, %v7253_v33  ;;  %v8654_v58 = vld [vmem:[#allocation5_spill] sm:$0xff] }
 0x1ca   :  { %v1730_v14 = vadd.f32 %v1729_v15, %v1537_v39  ;;  %v7542_v22 = vpop.f32.mrf.mxu0  ;;  %v1931_v51 = vmul.f32 0.01, %v1728_v47  ;;  %vm1867_vm15 = vcmp.gt.f32.partialorder %v1728_v47, 0.0  ;;  %v1994_v41 = vsel %vm1866_vm13, %v1726_v63, %v1930_v53 }
 0x1cb   :  { %v1731_v19 = vpop.f32.mrf.mxu1  ;;  %2261 = vmatprep.mubr.bf16.mxu0 %v2051_v31 }
 0x1cc   :  { %vm1868_vm14 = vcmp.gt.f32.partialorder %v1730_v14, 0.0  ;;  %v1932_v45 = vmul.f32 0.01, %v1730_v14  ;;  %v1732_v23 = vadd.f32 %v1731_v19, %v1539_v20  ;;  %2262 = vmatmul.mubr.bf16.gmra.mxu0 %v2050_v44  ;;  %v7548_v16 = vpop.f32.mrf.mxu0  ;;  %v1995_v57 = vsel %vm1867_vm15, %v1728_v47, %v1931_v51 }
 0x1cd   :  { %v1735_v8 = vpop.f32.mrf.mxu1  ;;  %v1553_v44 = vadd.f32 %v7480_v29, %v7247_v21  ;;  %v1366_v47 = vadd.f32 %v7258_v36, %v1173_v9  ;;  %v1557_v21 = vadd.f32 %v7495_v54, %v7260_v37  ;;  %v1183_v36 = vadd.f32 %v7277_v0, %v7080_v17 }
 0x1ce   :  { %v1996_v1 = vsel %vm1868_vm14, %v1730_v14, %v1932_v45  ;;  %vm1869_vm0 = vcmp.gt.f32.partialorder %v1732_v23, 0.0  ;;  %v1933_v25 = vmul.f32 0.01, %v1732_v23  ;;  %v1736_v26 = vadd.f32 %v1735_v8, %v1543_v46  ;;  %v7551_v13 = vpop.f32.mrf.mxu0  ;;  %v8652_v46 = vld [vmem:[#allocation3_spill] sm:$0xff]  ;;  %v8653_v8 = vld [vmem:[#allocation4_spill] sm:$0xff] }
 0x1cf   :  { %v2052_v4 = vpack.c.bf16 %v1996_v1, %v1994_v41  ;;  %v1737_v56 = vpop.f32.mrf.mxu1  ;;  %v1559_v14 = vadd.f32 %v7505_v43, %v1366_v47  ;;  %v1565_v43 = vadd.f32 %v7514_v62, %v8653_v8 }
 0x1d0   :  { %v1738_v5 = vadd.f32 %v1737_v56, %v1545_v28  ;;  %v1997_v52 = vsel %vm1869_vm0, %v1732_v23, %v1933_v25  ;;  %v1934_v49 = vmul.f32 0.01, %v1736_v26  ;;  %vm1870_vm1 = vcmp.gt.f32.partialorder %v1736_v26, 0.0  ;;  %v7558_v7 = vpop.f32.mrf.mxu0 }
 0x1d1   :  { %v1739_v48 = vpop.f32.mrf.mxu1  ;;  %v2053_v32 = vpack.c.bf16 %v1997_v52, %v1995_v57  ;;  %v1563_v28 = vadd.f32 %v7511_v40, %v8652_v46  ;;  %v8655_v57 = vld [vmem:[#allocation6_spill] sm:$0xff] }
 0x1d2   :  { %v1740_v38 = vadd.f32 %v1739_v48, %v1547_v60  ;;  %v1935_v42 = vmul.f32 0.01, %v1738_v5  ;;  %vm1871_vm3 = vcmp.gt.f32.partialorder %v1738_v5, 0.0  ;;  %v1998_v2 = vsel %vm1870_vm1, %v1736_v26, %v1934_v49  ;;  %v7565_v18 = vpop.f32.mrf.mxu0 }
 0x1d3   :  { %v1741_v12 = vpop.f32.mrf.mxu1  ;;  %2269 = vmatprep.mubr.bf16.mxu0 %v2053_v32  ;;  %v1567_v40 = vadd.f32 %v7519_v6, %v8655_v57 }
 0x1d4   :  { %vm1872_vm2 = vcmp.gt.f32.partialorder %v1740_v38, 0.0  ;;  %v1936_v10 = vmul.f32 0.01, %v1740_v38  ;;  %v1742_v59 = vadd.f32 %v1741_v12, %v1549_v30  ;;  %2270 = vmatmul.mubr.bf16.gmra.mxu0 %v2052_v4  ;;  %v1999_v20 = vsel %vm1871_vm3, %v1738_v5, %v1935_v42  ;;  %v7572_v51 = vpop.f32.mrf.mxu0  ;;  %v8656_v12 = vld [vmem:[#allocation9_spill] sm:$0xff] }
 0x1d5   :  { %v1745_v63 = vpop.f32.mrf.mxu1  ;;  %v1376_v4 = vadd.f32 %v8654_v58, %v1183_v36  ;;  %v1193_v42 = vadd.f32 %v8656_v12, %v7080_v17 }
 0x1d6   :  { %v2000_v35 = vsel %vm1872_vm2, %v1740_v38, %v1936_v10  ;;  %vm1873_vm4 = vcmp.gt.f32.partialorder %v1742_v59, 0.0  ;;  %v1937_v39 = vmul.f32 0.01, %v1742_v59  ;;  %v1746_v15 = vadd.f32 %v1745_v63, %v1553_v44  ;;  %v7579_v26 = vpop.f32.mrf.mxu0  ;;  %v8657_v63 = vld [vmem:[#allocation7_spill] sm:$0xff] }
 0x1d7   :  { %v2054_v34 = vpack.c.bf16 %v2000_v35, %v1998_v2  ;;  %v1747_v31 = vpop.f32.mrf.mxu1  ;;  %v1569_v49 = vadd.f32 %v7524_v27, %v1376_v4  ;;  %v1573_v2 = vadd.f32 %v7530_v3, %v8657_v63  ;;  %v8658_v35 = vld [vmem:[#allocation8_spill] sm:$0xff] }
 0x1d8   :  { %v1748_v29 = vadd.f32 %v1747_v31, %v1555_v11  ;;  %v2001_v33 = vsel %vm1873_vm4, %v1742_v59, %v1937_v39  ;;  %v1938_v50 = vmul.f32 0.01, %v1746_v15  ;;  %vm1874_vm5 = vcmp.gt.f32.partialorder %v1746_v15, 0.0  ;;  %v7586_v10 = vpop.f32.mrf.mxu0  ;;  %v8659_v31 = vld [vmem:[#allocation10_spill] sm:$0xff] }
 0x1d9   :  { %v1749_v61 = vpop.f32.mrf.mxu1  ;;  %v2055_v53 = vpack.c.bf16 %v2001_v33, %v1999_v20  ;;  %v1575_v27 = vadd.f32 %v7533_v24, %v8658_v35 }
 0x1da   :  { %v1750_v19 = vadd.f32 %v1749_v61, %v1557_v21  ;;  %v1939_v23 = vmul.f32 0.01, %v1748_v29  ;;  %vm1875_vm7 = vcmp.gt.f32.partialorder %v1748_v29, 0.0  ;;  %v2002_v1 = vsel %vm1874_vm5, %v1746_v15, %v1938_v50 }
 0x1db   :  { %v1751_v45 = vpop.f32.mrf.mxu1  ;;  %2277 = vmatprep.mubr.bf16.mxu0 %v2055_v53  ;;  %v1386_v21 = vadd.f32 %v8659_v31, %v1193_v42  ;;  %v8660_v53 = vld [vmem:[#allocation11_spill] sm:$0xff] }
 0x1dc   :  { %vm1876_vm6 = vcmp.gt.f32.partialorder %v1750_v19, 0.0  ;;  %v1940_v37 = vmul.f32 0.01, %v1750_v19  ;;  %v1752_v54 = vadd.f32 %v1751_v45, %v1559_v14  ;;  %2278 = vmatmul.mubr.bf16.gmra.mxu0 %v2054_v34  ;;  %v2003_v48 = vsel %vm1875_vm7, %v1748_v29, %v1939_v23  ;;  %v7593_v29 = vpop.f32.mrf.mxu0 }
 0x1dd   :  { %v1755_v41 = vpop.f32.mrf.mxu1  ;;  %v1577_v3 = vadd.f32 %v7537_v55, %v8660_v53  ;;  %v1579_v23 = vadd.f32 %v7542_v22, %v1386_v21 }
 0x1de   :  { %v2004_v0 = vsel %vm1876_vm6, %v1750_v19, %v1940_v37  ;;  %vm1877_vm8 = vcmp.gt.f32.partialorder %v1752_v54, 0.0  ;;  %v1941_v25 = vmul.f32 0.01, %v1752_v54  ;;  %v1756_v60 = vadd.f32 %v1755_v41, %v1563_v28  ;;  %v8662_v28 = vld [vmem:[#allocation12_spill] sm:$0xff] }
 0x1df   :  { %v2056_v56 = vpack.c.bf16 %v2004_v0, %v2002_v1  ;;  %v1757_v5 = vpop.f32.mrf.mxu1  ;;  %v1583_v8 = vadd.f32 %v7548_v16, %v8662_v28  ;;  %v8664_v16 = vld [vmem:[#allocation15_spill] sm:$0xff] }
 0x1e0   :  { %v1758_v52 = vadd.f32 %v1757_v5, %v1565_v43  ;;  %v2005_v62 = vsel %vm1877_vm8, %v1752_v54, %v1941_v25  ;;  %v1942_v38 = vmul.f32 0.01, %v1756_v60  ;;  %vm1878_vm9 = vcmp.gt.f32.partialorder %v1756_v60, 0.0  ;;  %v8661_v54 = vld [vmem:[#allocation14_spill] sm:$0xff]  ;;  %v7602_v43 = vpop.f32.mrf.mxu0  ;;  %v8663_v25 = vld [vmem:[#allocation13_spill] sm:$0xff] }
 0x1e1   :  { %v1759_v32 = vpop.f32.mrf.mxu1  ;;  %v2057_v30 = vpack.c.bf16 %v2005_v62, %v2003_v48  ;;  %v1203_v46 = vadd.f32 %v8661_v54, %v7080_v17  ;;  %v1585_v58 = vadd.f32 %v7551_v13, %v8663_v25  ;;  %v8665_v62 = vld [vmem:[#allocation16_spill] sm:$0xff] }
 0x1e2   :  { %v1760_v9 = vadd.f32 %v1759_v32, %v1567_v40  ;;  %v1943_v44 = vmul.f32 0.01, %v1758_v52  ;;  %vm1879_vm11 = vcmp.gt.f32.partialorder %v1758_v52, 0.0  ;;  %v2006_v47 = vsel %vm1878_vm9, %v1756_v60, %v1942_v38  ;;  %v1604_v40 = vpop.f32.mrf.mxu0 }
 0x1e3   :  { %v1761_v59 = vpop.f32.mrf.mxu1  ;;  %2285 = vmatprep.mubr.bf16.mxu0 %v2057_v30  ;;  %v1396_v57 = vadd.f32 %v8664_v16, %v1203_v46  ;;  %v1587_v32 = vadd.f32 %v7558_v7, %v8665_v62  ;;  %v8671_v46 = vld [vmem:[#allocation24_spill] sm:$0xff]  ;;  %v8674_v16 = vld [vmem:[#allocation25_spill] sm:$0xff] }
 0x1e4   :  { %vm1880_vm10 = vcmp.gt.f32.partialorder %v1760_v9, 0.0  ;;  %v1944_v6 = vmul.f32 0.01, %v1760_v9  ;;  %v1762_v11 = vadd.f32 %v1761_v59, %v1569_v49  ;;  %2286 = vmatmul.mubr.bf16.gmra.mxu0 %v2056_v56  ;;  %v2007_v50 = vsel %vm1879_vm11, %v1758_v52, %v1943_v44  ;;  %v8666_v44 = vld [vmem:[#allocation19_spill] sm:$0xff] }
 0x1e5   :  { %v1765_v39 = vpop.f32.mrf.mxu1  ;;  %v1589_v42 = vadd.f32 %v7565_v18, %v1396_v57  ;;  %v1223_v28 = vadd.f32 %v8671_v46, %v7080_v17 }
 0x1e6   :  { %v2008_v34 = vsel %vm1880_vm10, %v1760_v9, %v1944_v6  ;;  %vm1881_vm12 = vcmp.gt.f32.partialorder %v1762_v11, 0.0  ;;  %v1945_v15 = vmul.f32 0.01, %v1762_v11  ;;  %v1766_v33 = vadd.f32 %v1765_v39, %v1573_v2  ;;  %v1606_v2 = vpop.f32.mrf.mxu0 }
 0x1e7   :  { %v2058_v20 = vpack.c.bf16 %v2008_v34, %v2006_v47  ;;  %v1767_v61 = vpop.f32.mrf.mxu1  ;;  %v1213_v6 = vadd.f32 %v8666_v44, %v7080_v17  ;;  %v8668_v47 = vld [vmem:[#allocation18_spill] sm:$0xff]  ;;  %v1416_v57 = vadd.f32 %v8674_v16, %v1223_v28  ;;  %v8676_v44 = vld [vmem:[#allocation29_spill] sm:$0xff] }
 0x1e8   :  { %v1768_v14 = vadd.f32 %v1767_v61, %v1575_v27  ;;  %v2009_v24 = vsel %vm1881_vm12, %v1762_v11, %v1945_v15  ;;  %v1946_v19 = vmul.f32 0.01, %v1766_v33  ;;  %vm1882_vm13 = vcmp.gt.f32.partialorder %v1766_v33, 0.0  ;;  %v8667_v11 = vld [vmem:[#allocation17_spill] sm:$0xff]  ;;  %v1608_v61 = vpop.f32.mrf.mxu0  ;;  %v5919_v16 = vld [vmem:[%s8569_s6] sm:$0xff]  }
 0x1e9   :  { %v1769_v36 = vpop.f32.mrf.mxu1  ;;  %v2059_v45 = vpack.c.bf16 %v2009_v24, %v2007_v50  ;;  %v1593_v63 = vadd.f32 %v7572_v51, %v8667_v11  ;;  %v1595_v34 = vadd.f32 %v7579_v26, %v8668_v47  ;;  %v8677_v11 = vld [vmem:[#allocation27_spill] sm:$0xff] }
 0x1ea   :  { %v1770_v37 = vadd.f32 %v1769_v36, %v1577_v3  ;;  %v1947_v55 = vmul.f32 0.01, %v1768_v14  ;;  %v2010_v22 = vsel %vm1882_vm13, %v1766_v33, %v1946_v19  ;;  %vm1883_vm15 = vcmp.gt.f32.partialorder %v1768_v14, 0.0  ;;  %v8669_v33 = vld [vmem:[#allocation20_spill] sm:$0xff] }
 0x1eb   :  { %v1771_v41 = vpop.f32.mrf.mxu1  ;;  %2293 = vmatprep.mubr.bf16.mxu0 %v2059_v45  ;;  %v1406_v51 = vadd.f32 %v8669_v33, %v1213_v6  ;;  %v1233_v6 = vadd.f32 %v8676_v44, %v7080_v17 }
 0x1ec   :  { %vm1884_vm14 = vcmp.gt.f32.partialorder %v1770_v37, 0.0  ;;  %v1948_v1 = vmul.f32 0.01, %v1770_v37  ;;  %v1772_v0 = vadd.f32 %v1771_v41, %v1579_v23  ;;  %2294 = vmatmul.mubr.bf16.gmra.mxu0 %v2058_v20  ;;  %v2011_v49 = vsel %vm1883_vm15, %v1768_v14, %v1947_v55  ;;  %v8670_v14 = vld [vmem:[#allocation21_spill] sm:$0xff]  ;;  %v1612_v55 = vpop.f32.mrf.mxu0 }
 0x1ed   :  { %v1775_v4 = vpop.f32.mrf.mxu1  ;;  %v1597_v50 = vadd.f32 %v7586_v10, %v8670_v14 }
 0x1ee   :  { %v2012_v56 = vsel %vm1884_vm14, %v1770_v37, %v1948_v1  ;;  %vm1885_vm0 = vcmp.gt.f32.partialorder %v1772_v0, 0.0  ;;  %v1949_v60 = vmul.f32 0.01, %v1772_v0  ;;  %v1776_v5 = vadd.f32 %v1775_v4, %v1583_v8  ;;  %v8672_v8 = vld [vmem:[#allocation22_spill] sm:$0xff] }
 0x1ef   :  { %v2060_v52 = vpack.c.bf16 %v2012_v56, %v2010_v22  ;;  %v1777_v48 = vpop.f32.mrf.mxu1  ;;  %v1599_v37 = vadd.f32 %v7593_v29, %v1406_v51  ;;  %v1603_v41 = vadd.f32 %v7602_v43, %v8672_v8  ;;  %v5915_v56 = vld [vmem:[%s8569_s6 + $0x20] sm:$0xff]   ;;  %v8681_v8 = vld [vmem:[#allocation32_spill] sm:$0xff] }
 0x1f0   :  { %v1778_v30 = vadd.f32 %v1777_v48, %v1585_v58  ;;  %v2013_v38 = vsel %vm1885_vm0, %v1772_v0, %v1949_v60  ;;  %v1950_v13 = vmul.f32 0.01, %v1776_v5  ;;  %vm1886_vm1 = vcmp.gt.f32.partialorder %v1776_v5, 0.0  ;;  %v8673_v58 = vld [vmem:[#allocation23_spill] sm:$0xff]  ;;  %5467 = vmatprep.subr.bf16.mxu1 %v5915_v56  ;;  %v8679_v51 = vld [vmem:[#allocation30_spill] sm:$0xff] }
 0x1f1   :  { %v1779_v9 = vpop.f32.mrf.mxu1  ;;  %v2061_v12 = vpack.c.bf16 %v2013_v38, %v2011_v49  ;;  %v1605_v22 = vadd.f32 %v1604_v40, %v8673_v58  ;;  %5468 = vmatpush3.bf16.msra.mxu1 %v5915_v56  ;;  %v8682_v56 = vld [vmem:[#allocation40_spill] sm:$0xff] }
 0x1f2   :  { %v1780_v59 = vadd.f32 %v1779_v9, %v1587_v32  ;;  %v1951_v7 = vmul.f32 0.01, %v1778_v30  ;;  %v2014_v15 = vsel %vm1886_vm1, %v1776_v5, %v1950_v13  ;;  %vm1887_vm3 = vcmp.gt.f32.partialorder %v1778_v30, 0.0  ;;  %v8675_v32 = vld [vmem:[#allocation26_spill] sm:$0xff] }
 0x1f3   :  { %v1781_v35 = vpop.f32.mrf.mxu1  ;;  %2301 = vmatprep.mubr.bf16.mxu0 %v2061_v12  ;;  %v1607_v40 = vadd.f32 %v1606_v2, %v8675_v32  ;;  %v5916_v2 = vld [vmem:[%s8569_s6 + $0x18] sm:$0xff]  }
 0x1f4   :  { %vm1888_vm2 = vcmp.gt.f32.partialorder %v1780_v59, 0.0  ;;  %v1952_v27 = vmul.f32 0.01, %v1780_v59  ;;  %v1782_v39 = vadd.f32 %v1781_v35, %v1589_v42  ;;  %2302 = vmatmul.mubr.bf16.gmra.mxu0 %v2060_v52  ;;  %v2015_v19 = vsel %vm1887_vm3, %v1778_v30, %v1951_v7  ;;  %v1614_v52 = vpop.f32.mrf.mxu0  ;;  %5469 = vmatprep.subr.bf16.mxu1 %v5916_v2 }
 0x1f5   :  { %v1785_v18 = vpop.f32.mrf.mxu1  ;;  %v1609_v42 = vadd.f32 %v1608_v61, %v1416_v57  ;;  %5470 = vmatpush3.bf16.msra.mxu1 %v5916_v2  ;;  %v1426_v61 = vadd.f32 %v8679_v51, %v1233_v6  ;;  %v8683_v57 = vld [vmem:[#allocation33_spill] sm:$0xff] }
 0x1f6   :  { %v2016_v31 = vsel %vm1888_vm2, %v1780_v59, %v1952_v27  ;;  %vm1889_vm4 = vcmp.gt.f32.partialorder %v1782_v39, 0.0  ;;  %v1953_v21 = vmul.f32 0.01, %v1782_v39  ;;  %v1786_v20 = vadd.f32 %v1785_v18, %v1593_v63  ;;  %v1616_v35 = vpop.f32.mrf.mxu0 }
 0x1f7   :  { %v2062_v53 = vpack.c.bf16 %v2016_v31, %v2014_v15  ;;  %v1787_v3 = vpop.f32.mrf.mxu1  ;;  %v1613_v63 = vadd.f32 %v1612_v55, %v8677_v11 }
 0x1f8   :  { %v1788_v24 = vadd.f32 %v1787_v3, %v1595_v34  ;;  %v2017_v36 = vsel %vm1889_vm4, %v1782_v39, %v1953_v21  ;;  %v1954_v26 = vmul.f32 0.01, %v1786_v20  ;;  %vm1890_vm5 = vcmp.gt.f32.partialorder %v1786_v20, 0.0  ;;  %v8678_v34 = vld [vmem:[#allocation28_spill] sm:$0xff] }
 0x1f9   :  { %v1789_v45 = vpop.f32.mrf.mxu1  ;;  %v2063_v23 = vpack.c.bf16 %v2017_v36, %v2015_v19  ;;  %v1615_v15 = vadd.f32 %v1614_v52, %v8678_v34 }
 0x1fa   :  { %v1790_v54 = vadd.f32 %v1789_v45, %v1597_v50  ;;  %v1955_v10 = vmul.f32 0.01, %v1788_v24  ;;  %v2018_v4 = vsel %vm1890_vm5, %v1786_v20, %v1954_v26  ;;  %vm1891_vm7 = vcmp.gt.f32.partialorder %v1788_v24, 0.0  ;;  %v5917_v50 = vld [vmem:[%s8569_s6 + $0x10] sm:$0xff]  }
 0x1fb   :  { %v1791_v1 = vpop.f32.mrf.mxu1  ;;  %2309 = vmatprep.mubr.bf16.mxu0 %v2063_v23  ;;  %5471 = vmatprep.subr.bf16.mxu1 %v5917_v50 }
 0x1fc   :  { %vm1892_vm6 = vcmp.gt.f32.partialorder %v1790_v54, 0.0  ;;  %v1956_v0 = vmul.f32 0.01, %v1790_v54  ;;  %v1792_v25 = vadd.f32 %v1791_v1, %v1599_v37  ;;  %2310 = vmatmul.mubr.bf16.gmra.mxu0 %v2062_v53  ;;  %v2019_v49 = vsel %vm1891_vm7, %v1788_v24, %v1955_v10  ;;  %v1618_v53 = vpop.f32.mrf.mxu0  ;;  %v8680_v24 = vld [vmem:[#allocation31_spill] sm:$0xff]  ;;  %5472 = vmatpush3.bf16.msra.mxu1 %v5917_v50 }
 0x1fd   :  { %v1795_v29 = vpop.f32.mrf.mxu1  ;;  %v1617_v19 = vadd.f32 %v1616_v35, %v8680_v24  ;;  %v1619_v46 = vadd.f32 %v1618_v53, %v1426_v61  ;;  %v5918_v1 = vld [vmem:[%s8569_s6 + $0x8] sm:$0xff]  }
 0x1fe   :  { %v2020_v60 = vsel %vm1892_vm6, %v1790_v54, %v1956_v0  ;;  %vm1893_vm8 = vcmp.gt.f32.partialorder %v1792_v25, 0.0  ;;  %v1957_v43 = vmul.f32 0.01, %v1792_v25  ;;  %v1796_v5 = vadd.f32 %v1795_v29, %v1603_v41  ;;  %5473 = vmatprep.subr.bf16.mxu1 %v5918_v1  ;;  %v8691_v50 = vld [vmem:[#allocation47_spill] sm:$0xff] }
 0x1ff   :  { %v2064_v48 = vpack.c.bf16 %v2020_v60, %v2018_v4  ;;  %v1797_v62 = vpop.f32.mrf.mxu1  ;;  %v1243_v41 = vadd.f32 %v8681_v8, %v7080_v17 }
 0x200   :  { %v1798_v30 = vadd.f32 %v1797_v62, %v1605_v22  ;;  %v2021_v38 = vsel %vm1893_vm8, %v1792_v25, %v1957_v43  ;;  %v1958_v13 = vmul.f32 0.01, %v1796_v5  ;;  %vm1894_vm9 = vcmp.gt.f32.partialorder %v1796_v5, 0.0  ;;  %5474 = vmatpush3.bf16.msra.mxu1 %v5918_v1  ;;  %v8694_v1 = vld [vmem:[#allocation48_spill] sm:$0xff] }
 0x201   :  { %v1799_v9 = vpop.f32.mrf.mxu1  ;;  %v2065_v12 = vpack.c.bf16 %v2021_v38, %v2019_v49  ;;  %v1436_v52 = vadd.f32 %v8683_v57, %v1243_v41  ;;  %5475 = vmatprep.subr.bf16.mxu1 %v5919_v16  ;;  %v8697_v57 = vld [vmem:[#allocation51_spill] sm:$0xff] }
 0x202   :  { %v1800_v59 = vadd.f32 %v1799_v9, %v1607_v40  ;;  %v1959_v27 = vmul.f32 0.01, %v1798_v30  ;;  %v2022_v18 = vsel %vm1894_vm9, %v1796_v5, %v1958_v13  ;;  %vm1895_vm11 = vcmp.gt.f32.partialorder %v1798_v30, 0.0  ;;  %v8685_v13 = vld [vmem:[#allocation43_spill] sm:$0xff] }
 0x203   :  { %v1801_v7 = vpop.f32.mrf.mxu1  ;;  %2317 = vmatprep.mubr.bf16.mxu0 %v2065_v12  ;;  %v1629_v9 = vadd.f32 %v8685_v13, %v1436_v52  ;;  %v8686_v12 = vld [vmem:[#allocation42_spill] sm:$0xff] }
 0x204   :  { %vm1896_vm10 = vcmp.gt.f32.partialorder %v1800_v59, 0.0  ;;  %v1960_v39 = vmul.f32 0.01, %v1800_v59  ;;  %v1802_v47 = vadd.f32 %v1801_v7, %v1609_v42  ;;  %2318 = vmatmul.mubr.bf16.gmra.mxu0 %v2064_v48  ;;  %v2023_v26 = vsel %vm1895_vm11, %v1798_v30, %v1959_v27  ;;  %v8684_v48 = vld [vmem:[#allocation41_spill] sm:$0xff]  ;;  %5476 = vmatpush3.bf16.msra.mxu1 %v5919_v16 }
 0x205   :  { %v1805_v31 = vpop.f32.mrf.mxu1 }
 0x206   :  { %v2024_v21 = vsel %vm1896_vm10, %v1800_v59, %v1960_v39  ;;  %vm1897_vm12 = vcmp.gt.f32.partialorder %v1802_v47, 0.0  ;;  %v1961_v20 = vmul.f32 0.01, %v1802_v47  ;;  %v1806_v33 = vadd.f32 %v1805_v31, %v1613_v63  ;;  %v8687_v59 = vld [vmem:[#allocation34_spill] sm:$0xff]  ;;  %v8689_v31 = vld [vmem:[#allocation35_spill] sm:$0xff] }
 0x207   :  { %v2066_v3 = vpack.c.bf16 %v2024_v21, %v2022_v18  ;;  %v1807_v14 = vpop.f32.mrf.mxu1  ;;  %v1253_v44 = vadd.f32 %v8687_v59, %v7080_v17 }
 0x208   :  { %v1808_v36 = vadd.f32 %v1807_v14, %v1615_v15  ;;  %v2025_v45 = vsel %vm1897_vm12, %v1802_v47, %v1961_v20  ;;  %v1962_v23 = vmul.f32 0.01, %v1806_v33  ;;  %vm1898_vm13 = vcmp.gt.f32.partialorder %v1806_v33, 0.0  ;;  %v8688_v47 = vld [vmem:[#allocation44_spill] sm:$0xff]  ;;  %v8690_v20 = vld [vmem:[#allocation45_spill] sm:$0xff] }
 0x209   :  { %v1809_v37 = vpop.f32.mrf.mxu1  ;;  %v2067_v54 = vpack.c.bf16 %v2025_v45, %v2023_v26  ;;  %v1446_v21 = vadd.f32 %v8689_v31, %v1253_v44  ;;  %v8693_v26 = vld [vmem:[#allocation36_spill] sm:$0xff] }
 0x20a   :  { %v1810_v28 = vadd.f32 %v1809_v37, %v1617_v19  ;;  %v1963_v10 = vmul.f32 0.01, %v1808_v36  ;;  %v2026_v58 = vsel %vm1898_vm13, %v1806_v33, %v1962_v23  ;;  %vm1899_vm15 = vcmp.gt.f32.partialorder %v1808_v36, 0.0  ;;  %v8692_v19 = vld [vmem:[#allocation46_spill] sm:$0xff]  ;;  %v8700_v44 = vld [vmem:[#allocation52_spill] sm:$0xff] }
 0x20b   :  { %v1811_v55 = vpop.f32.mrf.mxu1  ;;  %2325 = vmatprep.mubr.bf16.mxu0 %v2067_v54  ;;  %v1639_v24 = vadd.f32 %v8691_v50, %v1446_v21  ;;  %v1263_v45 = vadd.f32 %v8693_v26, %v7080_v17  ;;  %v8704_v21 = vld [vmem:[#allocation54_spill] sm:$0xff] }
 0x20c   :  { %vm1900_vm14 = vcmp.gt.f32.partialorder %v1810_v28, 0.0  ;;  %v1964_v0 = vmul.f32 0.01, %v1810_v28  ;;  %v1812_v25 = vadd.f32 %v1811_v55, %v1619_v46  ;;  %2326 = vmatmul.mubr.bf16.gmra.mxu0 %v2066_v3  ;;  %v2027_v32 = vsel %vm1899_vm15, %v1808_v36, %v1963_v10 }
 0x20d   :  { %v1815_v22 = vpop.f32.mrf.mxu1 }
 0x20e   :  { %v2028_v4 = vsel %vm1900_vm14, %v1810_v28, %v1964_v0  ;;  %vm1901_vm0 = vcmp.gt.f32.partialorder %v1812_v25, 0.0  ;;  %v1965_v29 = vmul.f32 0.01, %v1812_v25  ;;  %v1816_v60 = vadd.f32 %v1815_v22, %v8682_v56 }
 0x20f   :  { %v2068_v43 = vpack.c.bf16 %v2028_v4, %v2026_v58  ;;  %v1817_v5 = vpop.f32.mrf.mxu1  ;;  %v8695_v58 = vld [vmem:[#allocation37_spill] sm:$0xff] }
 0x210   :  { %v1818_v62 = vadd.f32 %v1817_v5, %v8684_v48  ;;  %v2029_v40 = vsel %vm1901_vm0, %v1812_v25, %v1965_v29  ;;  %v1966_v30 = vmul.f32 0.01, %v1816_v60  ;;  %vm1902_vm1 = vcmp.gt.f32.partialorder %v1816_v60, 0.0  ;;  %v8696_v4 = vld [vmem:[#allocation49_spill] sm:$0xff]  ;;  %v8698_v48 = vld [vmem:[#allocation50_spill] sm:$0xff] }
 0x211   :  { %v1819_v49 = vpop.f32.mrf.mxu1  ;;  %v2069_v38 = vpack.c.bf16 %v2029_v40, %v2027_v32  ;;  %v1456_v22 = vadd.f32 %v8695_v58, %v1263_v45  ;;  %v8699_v32 = vld [vmem:[#allocation38_spill] sm:$0xff] }
 0x212   :  { %v1820_v42 = vadd.f32 %v1819_v49, %v8686_v12  ;;  %v1967_v11 = vmul.f32 0.01, %v1818_v62  ;;  %v2030_v7 = vsel %vm1902_vm1, %v1816_v60, %v1966_v30  ;;  %vm1903_vm3 = vcmp.gt.f32.partialorder %v1818_v62, 0.0 }
 0x213   :  { %v1821_v6 = vpop.f32.mrf.mxu1  ;;  %2333 = vmatprep.mubr.bf16.mxu0 %v2069_v38  ;;  %v1649_v52 = vadd.f32 %v8697_v57, %v1456_v22  ;;  %v1273_v40 = vadd.f32 %v8699_v32, %v7080_v17  ;;  %v8702_v17 = vld [vmem:[#allocation53_spill] sm:$0xff] }
 0x214   :  { %vm1904_vm2 = vcmp.gt.f32.partialorder %v1820_v42, 0.0  ;;  %v1968_v63 = vmul.f32 0.01, %v1820_v42  ;;  %v1822_v35 = vadd.f32 %v1821_v6, %v1629_v9  ;;  %2334 = vmatmul.mubr.bf16.gmra.mxu0 %v2068_v43  ;;  %v2031_v51 = vsel %vm1903_vm3, %v1818_v62, %v1967_v11 }
 0x215   :  { %v1825_v2 = vpop.f32.mrf.mxu1 }
 0x216   :  { %v2032_v27 = vsel %vm1904_vm2, %v1820_v42, %v1968_v63  ;;  %vm1905_vm4 = vcmp.gt.f32.partialorder %v1822_v35, 0.0  ;;  %v1969_v39 = vmul.f32 0.01, %v1822_v35  ;;  %v1826_v34 = vadd.f32 %v1825_v2, %v8688_v47 }
 0x217   :  { %v2070_v15 = vpack.c.bf16 %v2032_v27, %v2030_v7  ;;  %v1827_v18 = vpop.f32.mrf.mxu1 }
 0x218   :  { %v1828_v33 = vadd.f32 %v1827_v18, %v8690_v20  ;;  %v2033_v61 = vsel %vm1905_vm4, %v1822_v35, %v1969_v39  ;;  %v1970_v53 = vmul.f32 0.01, %v1826_v34  ;;  %vm1906_vm5 = vcmp.gt.f32.partialorder %v1826_v34, 0.0  ;;  %v8701_v35 = vld [vmem:[#allocation39_spill] sm:$0xff] }
 0x219   :  { %v1829_v3 = vpop.f32.mrf.mxu1  ;;  %v2071_v14 = vpack.c.bf16 %v2033_v61, %v2031_v51  ;;  %v1466_v7 = vadd.f32 %v8701_v35, %v1273_v40 }
 0x21a   :  { %v1830_v36 = vadd.f32 %v1829_v3, %v8692_v19  ;;  %v1971_v37 = vmul.f32 0.01, %v1828_v33  ;;  %v2034_v28 = vsel %vm1906_vm5, %v1826_v34, %v1970_v53  ;;  %vm1907_vm7 = vcmp.gt.f32.partialorder %v1828_v33, 0.0 }
 0x21b   :  { %v1831_v23 = vpop.f32.mrf.mxu1  ;;  %2341 = vmatprep.mubr.bf16.mxu0 %v2071_v14 }
 0x21c   :  { %vm1908_vm6 = vcmp.gt.f32.partialorder %v1830_v36, 0.0  ;;  %v1972_v54 = vmul.f32 0.01, %v1830_v36  ;;  %v1832_v46 = vadd.f32 %v1831_v23, %v1639_v24  ;;  %2342 = vmatmul.mubr.bf16.gmra.mxu0 %v2070_v15  ;;  %v2035_v56 = vsel %vm1907_vm7, %v1828_v33, %v1971_v37  ;;  %v8703_v15 = vld [vmem:[#allocation55_spill] sm:$0xff]  ;;  %v7680_v23 = vld [vmem:[%s8570_s5] ss:$0 sm:$0xff] }
 0x21d   :  { %v1835_v8 = vpop.f32.mrf.mxu1  ;;  %v1659_v18 = vadd.f32 %v8703_v15, %v1466_v7 }
 0x21e   :  { %v2036_v41 = vsel %vm1908_vm6, %v1830_v36, %v1972_v54  ;;  %vm1909_vm8 = vcmp.gt.f32.partialorder %v1832_v46, 0.0  ;;  %v1973_v55 = vmul.f32 0.01, %v1832_v46  ;;  %v1836_v10 = vadd.f32 %v1835_v8, %v8694_v1 }
 0x21f   :  { %v2072_v0 = vpack.c.bf16 %v2036_v41, %v2034_v28  ;;  %v1837_v25 = vpop.f32.mrf.mxu1 }
 0x220   :  { %v1838_v29 = vadd.f32 %v1837_v25, %v8696_v4  ;;  %v2037_v60 = vsel %vm1909_vm8, %v1832_v46, %v1973_v55  ;;  %v1974_v43 = vmul.f32 0.01, %v1836_v10  ;;  %vm1910_vm9 = vcmp.gt.f32.partialorder %v1836_v10, 0.0 }
 0x221   :  { %v1839_v5 = vpop.f32.mrf.mxu1  ;;  %v2073_v16 = vpack.c.bf16 %v2037_v60, %v2035_v56 }
 0x222   :  { %v1840_v62 = vadd.f32 %v1839_v5, %v8698_v48  ;;  %v1975_v49 = vmul.f32 0.01, %v1838_v29  ;;  %v2038_v9 = vsel %vm1910_vm9, %v1836_v10, %v1974_v43  ;;  %vm1911_vm11 = vcmp.gt.f32.partialorder %v1838_v29, 0.0 }
 0x223   :  { %v1841_v30 = vpop.f32.mrf.mxu1  ;;  %2349 = vmatprep.mubr.bf16.mxu0 %v2073_v16 }
 0x224   :  { %vm1912_vm10 = vcmp.gt.f32.partialorder %v1840_v62, 0.0  ;;  %v1976_v38 = vmul.f32 0.01, %v1840_v62  ;;  %v1842_v13 = vadd.f32 %v1841_v30, %v1649_v52  ;;  %2350 = vmatmul.mubr.bf16.gmra.mxu0 %v2072_v0  ;;  %v2039_v27 = vsel %vm1911_vm11, %v1838_v29, %v1975_v49  ;;  %v5920_v0 = vld [vmem:[%s8571_s8 + $0x18] sm:$0xff]  }
 0x225   :  { %v1845_v12 = vpop.f32.mrf.mxu1  ;;  %5509 = vmatprep.subr.bf16.mxu1 %v5920_v0 }
 0x226   :  { %v2040_v42 = vsel %vm1912_vm10, %v1840_v62, %v1976_v38  ;;  %vm1913_vm12 = vcmp.gt.f32.partialorder %v1842_v13, 0.0  ;;  %v1977_v59 = vmul.f32 0.01, %v1842_v13  ;;  %v1846_v6 = vadd.f32 %v1845_v12, %v8700_v44 }
 0x227   :  { %v2074_v11 = vpack.c.bf16 %v2040_v42, %v2038_v9  ;;  %v1847_v63 = vpop.f32.mrf.mxu1 }
 0x228   :  { %v1848_v2 = vadd.f32 %v1847_v63, %v8702_v17  ;;  %v2041_v39 = vsel %vm1913_vm12, %v1842_v13, %v1977_v59  ;;  %v1978_v31 = vmul.f32 0.01, %v1846_v6  ;;  %vm1914_vm13 = vcmp.gt.f32.partialorder %v1846_v6, 0.0 }
 0x229   :  { %v1849_v47 = vpop.f32.mrf.mxu1  ;;  %v2075_v34 = vpack.c.bf16 %v2041_v39, %v2039_v27 }
 0x22a   :  { %v1850_v20 = vadd.f32 %v1849_v47, %v8704_v21  ;;  %v1979_v51 = vmul.f32 0.01, %v1848_v2  ;;  %vm1915_vm15 = vcmp.gt.f32.partialorder %v1848_v2, 0.0  ;;  %v2042_v3 = vsel %vm1914_vm13, %v1846_v6, %v1978_v31 }
 0x22b   :  { %v1851_v33 = vpop.f32.mrf.mxu1  ;;  %2357 = vmatprep.mubr.bf16.mxu0 %v2075_v34 }
 0x22c   :  { %vm1916_vm14 = vcmp.gt.f32.partialorder %v1850_v20, 0.0  ;;  %v1980_v61 = vmul.f32 0.01, %v1850_v20  ;;  %v1852_v53 = vadd.f32 %v1851_v33, %v1659_v18  ;;  %2358 = vmatmul.mubr.bf16.gmra.mxu0 %v2074_v11  ;;  %v2043_v19 = vsel %vm1915_vm15, %v1848_v2, %v1979_v51 }
 0x22e   :  { %v2044_v14 = vsel %vm1916_vm14, %v1850_v20, %v1980_v61  ;;  %vm1917_vm0 = vcmp.gt.f32.partialorder %v1852_v53, 0.0  ;;  %v1981_v50 = vmul.f32 0.01, %v1852_v53 }
 0x22f   :  { %v2076_v24 = vpack.c.bf16 %v2044_v14, %v2042_v3 }
 0x230   :  { %v2045_v36 = vsel %vm1917_vm0, %v1852_v53, %v1981_v50 }
 0x231   :  { %v2077_v26 = vpack.c.bf16 %v2045_v36, %v2043_v19 }
 0x233   :  { %2365 = vmatprep.mubr.bf16.mxu0 %v2077_v26 }
 0x234   :  { %2366 = vmatmul.mubr.bf16.gmra.mxu0 %v2076_v24 }
 0x27c   :  { %v5255_v45 = vpop.f32.mrf.mxu0 }
 0x27e   :  { %v5256_v37 = vpop.f32.mrf.mxu0 }
 0x27f   :  { %v5257_v54 = vadd.f32 %v5256_v37, %v5255_v45 }
 0x280   :  { %v5258_v46 = vpop.f32.mrf.mxu0 }
 0x281   :  { %v2248_v28 = vadd.f32 %v5257_v54, %v7680_v23 }
 0x282   :  { %v5259_v8 = vpop.f32.mrf.mxu0 }
 0x283   :  { %v5260_v41 = vadd.f32 %v5259_v8, %v5258_v46  ;;  %v2406_v55 = vmul.f32 0.01, %v2248_v28  ;;  %vm2374_vm1 = vcmp.gt.f32.partialorder %v2248_v28, 0.0 }
 0x284   :  { %v5261_v1 = vpop.f32.mrf.mxu0 }
 0x285   :  { %v2251_v10 = vadd.f32 %v5260_v41, %v7680_v23  ;;  %v2438_v56 = vsel %vm2374_vm1, %v2248_v28, %v2406_v55 }
 0x286   :  { %v5262_v25 = vpop.f32.mrf.mxu0 }
 0x287   :  { %v2407_v58 = vmul.f32 0.01, %v2251_v10  ;;  %v5263_v22 = vadd.f32 %v5262_v25, %v5261_v1  ;;  %vm2375_vm2 = vcmp.gt.f32.partialorder %v2251_v10, 0.0 }
 0x288   :  { %v5264_v4 = vpop.f32.mrf.mxu0 }
 0x289   :  { %v2256_v29 = vadd.f32 %v5263_v22, %v7680_v23  ;;  %v2439_v60 = vsel %vm2375_vm2, %v2251_v10, %v2407_v58 }
 0x28a   :  { %v5265_v43 = vpop.f32.mrf.mxu0  ;;  %v2470_v5 = vpack.c.bf16 %v2439_v60, %v2438_v56 }
 0x28b   :  { %v5266_v16 = vadd.f32 %v5265_v43, %v5264_v4  ;;  %v2408_v52 = vmul.f32 0.01, %v2256_v29  ;;  %vm2376_vm3 = vcmp.gt.f32.partialorder %v2256_v29, 0.0 }
 0x28c   :  { %v5267_v57 = vpop.f32.mrf.mxu0  ;;  %5477 = vmatprep.mubr.bf16.mxu1 %v2470_v5 }
 0x28d   :  { %v2259_v48 = vadd.f32 %v5266_v16, %v7680_v23  ;;  %v2440_v49 = vsel %vm2376_vm3, %v2256_v29, %v2408_v52 }
 0x28e   :  { %v5268_v62 = vpop.f32.mrf.mxu0 }
 0x28f   :  { %vm2377_vm4 = vcmp.gt.f32.partialorder %v2259_v48, 0.0  ;;  %v2409_v32 = vmul.f32 0.01, %v2259_v48  ;;  %v5269_v40 = vadd.f32 %v5268_v62, %v5267_v57 }
 0x290   :  { %v5270_v30 = vpop.f32.mrf.mxu0 }
 0x291   :  { %v2441_v38 = vsel %vm2377_vm4, %v2259_v48, %v2409_v32  ;;  %v2264_v13 = vadd.f32 %v5269_v40, %v7680_v23 }
 0x292   :  { %v2471_v9 = vpack.c.bf16 %v2441_v38, %v2440_v49  ;;  %v5271_v12 = vpop.f32.mrf.mxu0 }
 0x293   :  { %v5272_v42 = vadd.f32 %v5271_v12, %v5270_v30  ;;  %v2410_v44 = vmul.f32 0.01, %v2264_v13  ;;  %vm2378_vm5 = vcmp.gt.f32.partialorder %v2264_v13, 0.0 }
 0x294   :  { %v5273_v59 = vpop.f32.mrf.mxu0  ;;  %5478 = vmatmul.mubr.bf16.vlgmr.msra.gmra.mxu1 %v2471_v9 }
 0x295   :  { %v2267_v6 = vadd.f32 %v5272_v42, %v7680_v23  ;;  %5510 = vmatpush3.bf16.msra.mxu1 %v5920_v0  ;;  %v2442_v2 = vsel %vm2378_vm5, %v2264_v13, %v2410_v44 }
 0x296   :  { %v5274_v11 = vpop.f32.mrf.mxu0 }
 0x297   :  { %v2411_v63 = vmul.f32 0.01, %v2267_v6  ;;  %v5275_v35 = vadd.f32 %v5274_v11, %v5273_v59  ;;  %vm2379_vm6 = vcmp.gt.f32.partialorder %v2267_v6, 0.0 }
 0x298   :  { %v5276_v7 = vpop.f32.mrf.mxu0 }
 0x299   :  { %v2272_v17 = vadd.f32 %v5275_v35, %v7680_v23  ;;  %v2443_v27 = vsel %vm2379_vm6, %v2267_v6, %v2411_v63 }
 0x29a   :  { %v5277_v39 = vpop.f32.mrf.mxu0  ;;  %v2472_v47 = vpack.c.bf16 %v2443_v27, %v2442_v2 }
 0x29b   :  { %v5278_v34 = vadd.f32 %v5277_v39, %v5276_v7  ;;  %v2412_v18 = vmul.f32 0.01, %v2272_v17  ;;  %vm2380_vm7 = vcmp.gt.f32.partialorder %v2272_v17, 0.0 }
 0x29c   :  { %v5279_v15 = vpop.f32.mrf.mxu0  ;;  %5481 = vmatprep.mubr.bf16.mxu1 %v2472_v47 }
 0x29d   :  { %v2275_v31 = vadd.f32 %v5278_v34, %v7680_v23  ;;  %v2444_v61 = vsel %vm2380_vm7, %v2272_v17, %v2412_v18 }
 0x29e   :  { %v5280_v21 = vpop.f32.mrf.mxu0 }
 0x29f   :  { %vm2381_vm8 = vcmp.gt.f32.partialorder %v2275_v31, 0.0  ;;  %v2413_v20 = vmul.f32 0.01, %v2275_v31  ;;  %v5281_v33 = vadd.f32 %v5280_v21, %v5279_v15 }
 0x2a0   :  { %v5282_v51 = vpop.f32.mrf.mxu0 }
 0x2a1   :  { %v2445_v53 = vsel %vm2381_vm8, %v2275_v31, %v2413_v20  ;;  %v2280_v3 = vadd.f32 %v5281_v33, %v7680_v23 }
 0x2a2   :  { %v5283_v14 = vpop.f32.mrf.mxu0  ;;  %v2473_v50 = vpack.c.bf16 %v2445_v53, %v2444_v61 }
 0x2a3   :  { %v5284_v24 = vadd.f32 %v5283_v14, %v5282_v51  ;;  %v2414_v36 = vmul.f32 0.01, %v2280_v3  ;;  %vm2382_vm9 = vcmp.gt.f32.partialorder %v2280_v3, 0.0 }
 0x2a4   :  { %v5285_v19 = vpop.f32.mrf.mxu0  ;;  %5482 = vmatmul.mubr.bf16.gmra.mxu1 %v2473_v50 }
 0x2a5   :  { %v2283_v26 = vadd.f32 %v5284_v24, %v7680_v23  ;;  %v2446_v8 = vsel %vm2382_vm9, %v2280_v3, %v2414_v36 }
 0x2a6   :  { %v5286_v45 = vpop.f32.mrf.mxu0 }
 0x2a7   :  { %vm2383_vm10 = vcmp.gt.f32.partialorder %v2283_v26, 0.0  ;;  %v2415_v37 = vmul.f32 0.01, %v2283_v26  ;;  %v5287_v54 = vadd.f32 %v5286_v45, %v5285_v19 }
 0x2a8   :  { %v5288_v46 = vpop.f32.mrf.mxu0 }
 0x2a9   :  { %v2288_v28 = vadd.f32 %v5287_v54, %v7680_v23  ;;  %v2447_v41 = vsel %vm2383_vm10, %v2283_v26, %v2415_v37 }
 0x2aa   :  { %v5289_v55 = vpop.f32.mrf.mxu0  ;;  %v2474_v1 = vpack.c.bf16 %v2447_v41, %v2446_v8 }
 0x2ab   :  { %v5290_v10 = vadd.f32 %v5289_v55, %v5288_v46  ;;  %v2416_v25 = vmul.f32 0.01, %v2288_v28  ;;  %vm2384_vm11 = vcmp.gt.f32.partialorder %v2288_v28, 0.0 }
 0x2ac   :  { %v5291_v0 = vpop.f32.mrf.mxu0  ;;  %5485 = vmatprep.mubr.bf16.mxu1 %v2474_v1 }
 0x2ad   :  { %v2291_v58 = vadd.f32 %v5290_v10, %v7680_v23  ;;  %v2448_v60 = vsel %vm2384_vm11, %v2288_v28, %v2416_v25 }
 0x2ae   :  { %v5292_v22 = vpop.f32.mrf.mxu0 }
 0x2af   :  { %vm2385_vm12 = vcmp.gt.f32.partialorder %v2291_v58, 0.0  ;;  %v2417_v4 = vmul.f32 0.01, %v2291_v58  ;;  %v5293_v29 = vadd.f32 %v5292_v22, %v5291_v0 }
 0x2b0   :  { %v5294_v56 = vpop.f32.mrf.mxu0 }
 0x2b1   :  { %v2449_v43 = vsel %vm2385_vm12, %v2291_v58, %v2417_v4  ;;  %v2296_v5 = vadd.f32 %v5293_v29, %v7680_v23  ;;  %v5921_v29 = vld [vmem:[%s8571_s8 + $0x10] sm:$0xff]  }
 0x2b2   :  { %v5295_v16 = vpop.f32.mrf.mxu0  ;;  %v2475_v57 = vpack.c.bf16 %v2449_v43, %v2448_v60  ;;  %5511 = vmatprep.subr.bf16.mxu1 %v5921_v29 }
 0x2b3   :  { %v5296_v52 = vadd.f32 %v5295_v16, %v5294_v56  ;;  %v2418_v62 = vmul.f32 0.01, %v2296_v5  ;;  %vm2386_vm13 = vcmp.gt.f32.partialorder %v2296_v5, 0.0  ;;  %5512 = vmatpush3.bf16.msra.mxu1 %v5921_v29 }
 0x2b4   :  { %v5297_v48 = vpop.f32.mrf.mxu0  ;;  %5486 = vmatmul.mubr.bf16.gmra.mxu1 %v2475_v57 }
 0x2b5   :  { %v2299_v32 = vadd.f32 %v5296_v52, %v7680_v23  ;;  %v2450_v9 = vsel %vm2386_vm13, %v2296_v5, %v2418_v62 }
 0x2b6   :  { %v5298_v40 = vpop.f32.mrf.mxu0 }
 0x2b7   :  { %vm2387_vm14 = vcmp.gt.f32.partialorder %v2299_v32, 0.0  ;;  %v2419_v30 = vmul.f32 0.01, %v2299_v32  ;;  %v5299_v49 = vadd.f32 %v5298_v40, %v5297_v48  ;;  %v5922_v48 = vld [vmem:[%s8571_s8 + $0x8] sm:$0xff]  }
 0x2b8   :  { %v5300_v38 = vpop.f32.mrf.mxu0  ;;  %5513 = vmatprep.subr.bf16.mxu1 %v5922_v48 }
 0x2b9   :  { %v2304_v13 = vadd.f32 %v5299_v49, %v7680_v23  ;;  %v2451_v12 = vsel %vm2387_vm14, %v2299_v32, %v2419_v30  ;;  %5514 = vmatpush3.bf16.msra.mxu1 %v5922_v48 }
 0x2ba   :  { %v5301_v42 = vpop.f32.mrf.mxu0  ;;  %v2476_v59 = vpack.c.bf16 %v2451_v12, %v2450_v9 }
 0x2bb   :  { %v5302_v44 = vadd.f32 %v5301_v42, %v5300_v38  ;;  %v2420_v11 = vmul.f32 0.01, %v2304_v13  ;;  %vm2388_vm15 = vcmp.gt.f32.partialorder %v2304_v13, 0.0 }
 0x2bc   :  { %v5303_v6 = vpop.f32.mrf.mxu0  ;;  %5489 = vmatprep.mubr.bf16.mxu1 %v2476_v59 }
 0x2bd   :  { %v2307_v63 = vadd.f32 %v5302_v44, %v7680_v23  ;;  %v2452_v27 = vsel %vm2388_vm15, %v2304_v13, %v2420_v11  ;;  %v5923_v13 = vld [vmem:[%s8571_s8] sm:$0xff]  }
 0x2be   :  { %v5304_v35 = vpop.f32.mrf.mxu0  ;;  %5515 = vmatprep.subr.bf16.mxu1 %v5923_v13 }
 0x2bf   :  { %vm2389_vm0 = vcmp.gt.f32.partialorder %v2307_v63, 0.0  ;;  %v2421_v7 = vmul.f32 0.01, %v2307_v63  ;;  %v5305_v17 = vadd.f32 %v5304_v35, %v5303_v6  ;;  %5516 = vmatpush3.bf16.msra.mxu1 %v5923_v13 }
 0x2c0   :  { %v5306_v2 = vpop.f32.mrf.mxu0 }
 0x2c1   :  { %v2453_v39 = vsel %vm2389_vm0, %v2307_v63, %v2421_v7  ;;  %v2312_v47 = vadd.f32 %v5305_v17, %v7680_v23 }
 0x2c2   :  { %v5307_v34 = vpop.f32.mrf.mxu0  ;;  %v2477_v15 = vpack.c.bf16 %v2453_v39, %v2452_v27 }
 0x2c3   :  { %v5308_v18 = vadd.f32 %v5307_v34, %v5306_v2  ;;  %v2422_v21 = vmul.f32 0.01, %v2312_v47  ;;  %vm2390_vm1 = vcmp.gt.f32.partialorder %v2312_v47, 0.0 }
 0x2c4   :  { %v5309_v31 = vpop.f32.mrf.mxu0  ;;  %5490 = vmatmul.mubr.bf16.gmra.mxu1 %v2477_v15 }
 0x2c5   :  { %v2315_v20 = vadd.f32 %v5308_v18, %v7680_v23  ;;  %v2454_v14 = vsel %vm2390_vm1, %v2312_v47, %v2422_v21 }
 0x2c6   :  { %v5310_v33 = vpop.f32.mrf.mxu0 }
 0x2c7   :  { %vm2391_vm2 = vcmp.gt.f32.partialorder %v2315_v20, 0.0  ;;  %v2423_v51 = vmul.f32 0.01, %v2315_v20  ;;  %v5311_v61 = vadd.f32 %v5310_v33, %v5309_v31 }
 0x2c8   :  { %v5312_v53 = vpop.f32.mrf.mxu0 }
 0x2c9   :  { %v2320_v3 = vadd.f32 %v5311_v61, %v7680_v23  ;;  %v2455_v50 = vsel %vm2391_vm2, %v2315_v20, %v2423_v51 }
 0x2ca   :  { %v5313_v24 = vpop.f32.mrf.mxu0  ;;  %v2478_v19 = vpack.c.bf16 %v2455_v50, %v2454_v14 }
 0x2cb   :  { %v5314_v36 = vadd.f32 %v5313_v24, %v5312_v53  ;;  %v2424_v45 = vmul.f32 0.01, %v2320_v3  ;;  %vm2392_vm3 = vcmp.gt.f32.partialorder %v2320_v3, 0.0 }
 0x2cc   :  { %v5315_v26 = vpop.f32.mrf.mxu0  ;;  %5493 = vmatprep.mubr.bf16.mxu1 %v2478_v19 }
 0x2cd   :  { %v2323_v37 = vadd.f32 %v5314_v36, %v7680_v23  ;;  %v2456_v41 = vsel %vm2392_vm3, %v2320_v3, %v2424_v45 }
 0x2ce   :  { %v5316_v54 = vpop.f32.mrf.mxu0 }
 0x2cf   :  { %vm2393_vm4 = vcmp.gt.f32.partialorder %v2323_v37, 0.0  ;;  %v2425_v46 = vmul.f32 0.01, %v2323_v37  ;;  %v5317_v28 = vadd.f32 %v5316_v54, %v5315_v26 }
 0x2d0   :  { %v5318_v8 = vpop.f32.mrf.mxu0 }
 0x2d1   :  { %v2457_v55 = vsel %vm2393_vm4, %v2323_v37, %v2425_v46  ;;  %v2328_v1 = vadd.f32 %v5317_v28, %v7680_v23 }
 0x2d2   :  { %v5319_v10 = vpop.f32.mrf.mxu0  ;;  %v2479_v0 = vpack.c.bf16 %v2457_v55, %v2456_v41 }
 0x2d3   :  { %v5320_v25 = vadd.f32 %v5319_v10, %v5318_v8  ;;  %v2426_v22 = vmul.f32 0.01, %v2328_v1  ;;  %vm2394_vm5 = vcmp.gt.f32.partialorder %v2328_v1, 0.0 }
 0x2d4   :  { %v5321_v58 = vpop.f32.mrf.mxu0  ;;  %5494 = vmatmul.mubr.bf16.gmra.mxu1 %v2479_v0 }
 0x2d5   :  { %v2331_v4 = vadd.f32 %v5320_v25, %v7680_v23  ;;  %v2458_v57 = vsel %vm2394_vm5, %v2328_v1, %v2426_v22  ;;  %vm2869_vm5 = vcmask 523264  }
 0x2d6   :  { %v5322_v56 = vpop.f32.mrf.mxu0 }
 0x2d7   :  { %vm2395_vm6 = vcmp.gt.f32.partialorder %v2331_v4, 0.0  ;;  %v2427_v60 = vmul.f32 0.01, %v2331_v4  ;;  %v5323_v43 = vadd.f32 %v5322_v56, %v5321_v58 }
 0x2d8   :  { %v5324_v5 = vpop.f32.mrf.mxu0 }
 0x2d9   :  { %v2336_v16 = vadd.f32 %v5323_v43, %v7680_v23  ;;  %v2459_v52 = vsel %vm2395_vm6, %v2331_v4, %v2427_v60 }
 0x2da   :  { %v5325_v62 = vpop.f32.mrf.mxu0  ;;  %v2480_v32 = vpack.c.bf16 %v2459_v52, %v2458_v57 }
 0x2db   :  { %v5326_v40 = vadd.f32 %v5325_v62, %v5324_v5  ;;  %v2428_v49 = vmul.f32 0.01, %v2336_v16  ;;  %vm2396_vm7 = vcmp.gt.f32.partialorder %v2336_v16, 0.0  ;;  %v5924_v62 = vld [vmem:[%s8573_s10 + $0x8] sm:$0xff]  }
 0x2dc   :  { %v5327_v30 = vpop.f32.mrf.mxu0  ;;  %5497 = vmatprep.mubr.bf16.mxu1 %v2480_v32  ;;  %v6071_v32 = vmov 1   ;;  %5549 = vmatprep.subr.bf16.mxu0 %v5924_v62 }
 0x2dd   :  { %v2339_v38 = vadd.f32 %v5326_v40, %v7680_v23  ;;  %v2460_v44 = vsel %vm2396_vm7, %v2336_v16, %v2428_v49  ;;  %5715 = vset.pattern.permute.xlu1 %v6071_v32  ;;  %5717 = vset.pattern.permute.xlu0 %v6071_v32  ;;  %v7739_v40 = vld [vmem:[%s8574_s1] sm:$0xff] }
 0x2de   :  { %v5328_v9 = vpop.f32.mrf.mxu0  ;;  %3566 = vperm.xlu1 %5715, %v7739_v40   ;;  %5550 = vmatpush3.bf16.msra.mxu0 %v5924_v62 }
 0x2df   :  { %vm2397_vm8 = vcmp.gt.f32.partialorder %v2339_v38, 0.0  ;;  %v2429_v12 = vmul.f32 0.01, %v2339_v38  ;;  %v5329_v42 = vadd.f32 %v5328_v9, %v5327_v30 }
 0x2e0   :  { %v5330_v59 = vpop.f32.mrf.mxu0 }
 0x2e1   :  { %v2461_v6 = vsel %vm2397_vm8, %v2339_v38, %v2429_v12  ;;  %v2344_v11 = vadd.f32 %v5329_v42, %v7680_v23  ;;  %v7746_v38 = vld [vmem:[%s8574_s1 + $0x8] sm:$0xff] }
 0x2e2   :  { %v5331_v63 = vpop.f32.mrf.mxu0  ;;  %v2481_v35 = vpack.c.bf16 %v2461_v6, %v2460_v44  ;;  %3570 = vperm.xlu1 %5715, %v7746_v38  }
 0x2e3   :  { %v5332_v7 = vadd.f32 %v5331_v63, %v5330_v59  ;;  %v2430_v2 = vmul.f32 0.01, %v2344_v11  ;;  %vm2398_vm9 = vcmp.gt.f32.partialorder %v2344_v11, 0.0 }
 0x2e4   :  { %v5333_v17 = vpop.f32.mrf.mxu0  ;;  %5498 = vmatmul.mubr.bf16.gmra.mxu1 %v2481_v35 }
 0x2e5   :  { %v2347_v27 = vadd.f32 %v5332_v7, %v7680_v23  ;;  %v2462_v31 = vsel %vm2398_vm9, %v2344_v11, %v2430_v2  ;;  %v8705_v7 = vmov 0  }
 0x2e6   :  { %v5334_v39 = vpop.f32.mrf.mxu0  ;;  %5716 = vset.pattern.permute.xlu1 %v8705_v7 }
 0x2e7   :  { %vm2399_vm10 = vcmp.gt.f32.partialorder %v2347_v27, 0.0  ;;  %v2431_v47 = vmul.f32 0.01, %v2347_v27  ;;  %v5335_v34 = vadd.f32 %v5334_v39, %v5333_v17 }
 0x2e8   :  { %v5336_v15 = vpop.f32.mrf.mxu0 }
 0x2e9   :  { %v2352_v18 = vadd.f32 %v5335_v34, %v7680_v23  ;;  %v2463_v21 = vsel %vm2399_vm10, %v2347_v27, %v2431_v47 }
 0x2ea   :  { %v5337_v20 = vpop.f32.mrf.mxu0  ;;  %v2482_v33 = vpack.c.bf16 %v2463_v21, %v2462_v31 }
 0x2eb   :  { %v5338_v51 = vadd.f32 %v5337_v20, %v5336_v15  ;;  %v2432_v53 = vmul.f32 0.01, %v2352_v18  ;;  %vm2400_vm11 = vcmp.gt.f32.partialorder %v2352_v18, 0.0 }
 0x2ec   :  { %v5339_v61 = vpop.f32.mrf.mxu0  ;;  %5501 = vmatprep.mubr.bf16.mxu1 %v2482_v33 }
 0x2ed   :  { %v2355_v3 = vadd.f32 %v5338_v51, %v7680_v23  ;;  %v2464_v36 = vsel %vm2400_vm11, %v2352_v18, %v2432_v53 }
 0x2ee   :  { %v5340_v14 = vpop.f32.mrf.mxu0 }
 0x2ef   :  { %vm2401_vm12 = vcmp.gt.f32.partialorder %v2355_v3, 0.0  ;;  %v2433_v50 = vmul.f32 0.01, %v2355_v3  ;;  %v5341_v24 = vadd.f32 %v5340_v14, %v5339_v61 }
 0x2f0   :  { %v5342_v19 = vpop.f32.mrf.mxu0 }
 0x2f1   :  { %v2465_v26 = vsel %vm2401_vm12, %v2355_v3, %v2433_v50  ;;  %v2360_v45 = vadd.f32 %v5341_v24, %v7680_v23 }
 0x2f2   :  { %v5343_v37 = vpop.f32.mrf.mxu0  ;;  %v2483_v54 = vpack.c.bf16 %v2465_v26, %v2464_v36 }
 0x2f3   :  { %v5344_v46 = vadd.f32 %v5343_v37, %v5342_v19  ;;  %v2434_v8 = vmul.f32 0.01, %v2360_v45  ;;  %vm2402_vm13 = vcmp.gt.f32.partialorder %v2360_v45, 0.0 }
 0x2f4   :  { %v5345_v28 = vpop.f32.mrf.mxu0  ;;  %5502 = vmatmul.mubr.bf16.gmra.mxu1 %v2483_v54 }
 0x2f5   :  { %v2363_v41 = vadd.f32 %v5344_v46, %v7680_v23  ;;  %v2466_v58 = vsel %vm2402_vm13, %v2360_v45, %v2434_v8 }
 0x2f6   :  { %v5346_v55 = vpop.f32.mrf.mxu0 }
 0x2f7   :  { %vm2403_vm14 = vcmp.gt.f32.partialorder %v2363_v41, 0.0  ;;  %v2435_v1 = vmul.f32 0.01, %v2363_v41  ;;  %v5347_v10 = vadd.f32 %v5346_v55, %v5345_v28 }
 0x2f8   :  { %v5348_v0 = vpop.f32.mrf.mxu0 }
 0x2f9   :  { %v2368_v25 = vadd.f32 %v5347_v10, %v7680_v23  ;;  %v2467_v22 = vsel %vm2403_vm14, %v2363_v41, %v2435_v1 }
 0x2fa   :  { %v5349_v4 = vpop.f32.mrf.mxu0  ;;  %v2484_v29 = vpack.c.bf16 %v2467_v22, %v2466_v58 }
 0x2fb   :  { %v5350_v56 = vadd.f32 %v5349_v4, %v5348_v0  ;;  %v2436_v60 = vmul.f32 0.01, %v2368_v25  ;;  %vm2404_vm15 = vcmp.gt.f32.partialorder %v2368_v25, 0.0 }
 0x2fc   :  { %5505 = vmatprep.mubr.bf16.mxu1 %v2484_v29 }
 0x2fd   :  { %v2371_v43 = vadd.f32 %v5350_v56, %v7680_v23  ;;  %v2468_v16 = vsel %vm2404_vm15, %v2368_v25, %v2436_v60  ;;  %v7734_v23 = vld [vmem:[%s8572_s7] ss:$0 sm:$0xff] }
 0x2ff   :  { %vm2405_vm0 = vcmp.gt.f32.partialorder %v2371_v43, 0.0  ;;  %v2437_v5 = vmul.f32 0.01, %v2371_v43 }
 0x301   :  { %v2469_v57 = vsel %vm2405_vm0, %v2371_v43, %v2437_v5 }
 0x302   :  { %v2485_v52 = vpack.c.bf16 %v2469_v57, %v2468_v16 }
 0x304   :  { %5506 = vmatmul.mubr.bf16.gmra.mxu1 %v2485_v52 }
 0x354   :  { %v5479_v48 = vpop.f32.mrf.mxu1 }
 0x355   :  { %v2600_v13 = vadd.f32 %v5479_v48, %v7734_v23 }
 0x356   :  { %v2591_v30 = vpop.f32.mrf.mxu1 }
 0x357   :  { %v2592_v49 = vadd.f32 %v7734_v23, %v2591_v30  ;;  %v2752_v11 = vmul.f32 0.01, %v2600_v13  ;;  %vm2720_vm3 = vcmp.gt.f32.partialorder %v2600_v13, 0.0 }
 0x358   :  { %v5480_v9 = vpop.f32.mrf.mxu1 }
 0x359   :  { %v2603_v12 = vadd.f32 %v5480_v9, %v7734_v23  ;;  %v2750_v59 = vmul.f32 0.01, %v2592_v49  ;;  %vm2718_vm2 = vcmp.gt.f32.partialorder %v2592_v49, 0.0  ;;  %v2784_v27 = vsel %vm2720_vm3, %v2600_v13, %v2752_v11 }
 0x35a   :  { %v2594_v42 = vpop.f32.mrf.mxu1 }
 0x35b   :  { %vm2721_vm1 = vcmp.gt.f32.partialorder %v2603_v12, 0.0  ;;  %v2753_v44 = vmul.f32 0.01, %v2603_v12  ;;  %v2595_v6 = vadd.f32 %v7734_v23, %v2594_v42  ;;  %v2782_v17 = vsel %vm2718_vm2, %v2592_v49, %v2750_v59 }
 0x35d   :  { %vm2719_vm4 = vcmp.gt.f32.partialorder %v2595_v6, 0.0  ;;  %v2751_v63 = vmul.f32 0.01, %v2595_v6  ;;  %v2785_v35 = vsel %vm2721_vm1, %v2603_v12, %v2753_v44 }
 0x35e   :  { %v2815_v47 = vpack.c.bf16 %v2785_v35, %v2784_v27 }
 0x35f   :  { %v2783_v2 = vsel %vm2719_vm4, %v2595_v6, %v2751_v63 }
 0x360   :  { %v2814_v39 = vpack.c.bf16 %v2783_v2, %v2782_v17 }
 0x362   :  { %5517 = vmatprep.mubr.msk.bf16.mxu1 %vm2869_vm5, %v2814_v39 }
 0x363   :  { %5518 = vmatmul.mubr.msk.bf16.vlgmr.msra.gmra.mxu1 %vm2869_vm5, %v2815_v47 }
 0x364   :  { %v5483_v34 = vpop.f32.mrf.mxu1 }
 0x365   :  { %v2616_v31 = vadd.f32 %v5483_v34, %v7734_v23 }
 0x366   :  { %v2607_v15 = vpop.f32.mrf.mxu1 }
 0x367   :  { %v2608_v18 = vadd.f32 %v7734_v23, %v2607_v15  ;;  %v2756_v3 = vmul.f32 0.01, %v2616_v31  ;;  %vm2724_vm8 = vcmp.gt.f32.partialorder %v2616_v31, 0.0 }
 0x368   :  { %v5484_v21 = vpop.f32.mrf.mxu1 }
 0x369   :  { %v2619_v20 = vadd.f32 %v5484_v21, %v7734_v23  ;;  %v2754_v51 = vmul.f32 0.01, %v2608_v18  ;;  %vm2722_vm7 = vcmp.gt.f32.partialorder %v2608_v18, 0.0  ;;  %v2788_v36 = vsel %vm2724_vm8, %v2616_v31, %v2756_v3 }
 0x36a   :  { %v2610_v33 = vpop.f32.mrf.mxu1 }
 0x36b   :  { %vm2725_vm6 = vcmp.gt.f32.partialorder %v2619_v20, 0.0  ;;  %v2757_v61 = vmul.f32 0.01, %v2619_v20  ;;  %v2611_v53 = vadd.f32 %v7734_v23, %v2610_v33  ;;  %v2786_v24 = vsel %vm2722_vm7, %v2608_v18, %v2754_v51 }
 0x36d   :  { %vm2723_vm9 = vcmp.gt.f32.partialorder %v2611_v53, 0.0  ;;  %v2755_v14 = vmul.f32 0.01, %v2611_v53  ;;  %v2789_v50 = vsel %vm2725_vm6, %v2619_v20, %v2757_v61 }
 0x36e   :  { %v2817_v45 = vpack.c.bf16 %v2789_v50, %v2788_v36 }
 0x36f   :  { %v2787_v19 = vsel %vm2723_vm9, %v2611_v53, %v2755_v14 }
 0x370   :  { %v2816_v26 = vpack.c.bf16 %v2787_v19, %v2786_v24  ;;  %v292_v24 = vld [vmem:[%s8574_s1 + $0x18] sm:$0xff] }
 0x371   :  { %3385 = vperm.xlu1 %5716, %v292_v24  }
 0x372   :  { %5521 = vmatprep.mubr.msk.bf16.mxu1 %vm2869_vm5, %v2816_v26 }
 0x373   :  { %5522 = vmatmul.mubr.msk.bf16.gmra.mxu1 %vm2869_vm5, %v2817_v45 }
 0x374   :  { %v5487_v37 = vpop.f32.mrf.mxu1 }
 0x375   :  { %v2632_v28 = vadd.f32 %v5487_v37, %v7734_v23  ;;  %5718 = vset.pattern.permute.xlu1 %v6071_v32 }
 0x376   :  { %v2623_v54 = vpop.f32.mrf.mxu1  ;;  %3578 = vperm.xlu1 %5718, %v292_v24  }
 0x377   :  { %v2624_v46 = vadd.f32 %v7734_v23, %v2623_v54  ;;  %v2760_v25 = vmul.f32 0.01, %v2632_v28  ;;  %vm2728_vm12 = vcmp.gt.f32.partialorder %v2632_v28, 0.0 }
 0x378   :  { %v5488_v8 = vpop.f32.mrf.mxu1 }
 0x379   :  { %v2635_v41 = vadd.f32 %v5488_v8, %v7734_v23  ;;  %v2758_v1 = vmul.f32 0.01, %v2624_v46  ;;  %vm2726_vm11 = vcmp.gt.f32.partialorder %v2624_v46, 0.0  ;;  %v2792_v56 = vsel %vm2728_vm12, %v2632_v28, %v2760_v25 }
 0x37a   :  { %v2626_v55 = vpop.f32.mrf.mxu1  ;;  %5719 = vset.pattern.permute.xlu1 %v8705_v7 }
 0x37b   :  { %vm2729_vm10 = vcmp.gt.f32.partialorder %v2635_v41, 0.0  ;;  %v2761_v10 = vmul.f32 0.01, %v2635_v41  ;;  %v2627_v0 = vadd.f32 %v7734_v23, %v2626_v55  ;;  %v2790_v4 = vsel %vm2726_vm11, %v2624_v46, %v2758_v1 }
 0x37d   :  { %vm2727_vm13 = vcmp.gt.f32.partialorder %v2627_v0, 0.0  ;;  %v2759_v58 = vmul.f32 0.01, %v2627_v0  ;;  %v2793_v22 = vsel %vm2729_vm10, %v2635_v41, %v2761_v10  ;;  %v293_v10 = vld [vmem:[%s8574_s1 + $0x20] sm:$0xff] }
 0x37e   :  { %v2819_v43 = vpack.c.bf16 %v2793_v22, %v2792_v56  ;;  %3390 = vperm.xlu1 %5719, %v293_v10  }
 0x37f   :  { %v2791_v29 = vsel %vm2727_vm13, %v2627_v0, %v2759_v58 }
 0x380   :  { %v2818_v60 = vpack.c.bf16 %v2791_v29, %v2790_v4 }
 0x382   :  { %5525 = vmatprep.mubr.msk.bf16.mxu1 %vm2869_vm5, %v2818_v60  ;;  %5720 = vset.pattern.permute.xlu1 %v6071_v32  ;;  %v7797_v60 = vld [vmem:[%s8574_s1 + $0x10] sm:$0xff] }
 0x383   :  { %5526 = vmatmul.mubr.msk.bf16.gmra.mxu1 %vm2869_vm5, %v2819_v43  ;;  %3582 = vperm.xlu1 %5720, %v293_v10   ;;  %v309_v10 = vld [vmem:[%s8574_s1 + $0xa0] sm:$0xff] }
 0x384   :  { %v5491_v5 = vpop.f32.mrf.mxu1  ;;  %3574 = vperm.xlu0 %5717, %v7797_v60  }
 0x385   :  { %v2648_v52 = vadd.f32 %v5491_v5, %v7734_v23 }
 0x386   :  { %v2639_v16 = vpop.f32.mrf.mxu1 }
 0x387   :  { %v2640_v57 = vadd.f32 %v7734_v23, %v2639_v16  ;;  %v2764_v12 = vmul.f32 0.01, %v2648_v52  ;;  %vm2732_vm0 = vcmp.gt.f32.partialorder %v2648_v52, 0.0  ;;  %v7804_v16 = vld [vmem:[%s8574_s1 + $0x28] sm:$0xff] }
 0x388   :  { %v5492_v48 = vpop.f32.mrf.mxu1  ;;  %3586 = vperm.xlu1 %5720, %v7804_v16  }
 0x389   :  { %v2651_v62 = vadd.f32 %v5492_v48, %v7734_v23  ;;  %v2762_v49 = vmul.f32 0.01, %v2640_v57  ;;  %vm2730_vm15 = vcmp.gt.f32.partialorder %v2640_v57, 0.0  ;;  %v2796_v11 = vsel %vm2732_vm0, %v2648_v52, %v2764_v12 }
 0x38a   :  { %v2642_v30 = vpop.f32.mrf.mxu1 }
 0x38b   :  { %vm2733_vm14 = vcmp.gt.f32.partialorder %v2651_v62, 0.0  ;;  %v2765_v13 = vmul.f32 0.01, %v2651_v62  ;;  %v2643_v9 = vadd.f32 %v7734_v23, %v2642_v30  ;;  %v2794_v44 = vsel %vm2730_vm15, %v2640_v57, %v2762_v49 }
 0x38c   :  { %5721 = vset.pattern.permute.xlu1 %v8705_v7 }
 0x38d   :  { %vm2731_vm1 = vcmp.gt.f32.partialorder %v2643_v9, 0.0  ;;  %v2763_v42 = vmul.f32 0.01, %v2643_v9  ;;  %v2797_v59 = vsel %vm2733_vm14, %v2651_v62, %v2765_v13  ;;  %v7812_v62 = vld [vmem:[%s8574_s1 + $0x30] sm:$0xff] }
 0x38e   :  { %v2821_v35 = vpack.c.bf16 %v2797_v59, %v2796_v11  ;;  %3590 = vperm.xlu0 %5717, %v7812_v62  }
 0x38f   :  { %v2795_v6 = vsel %vm2731_vm1, %v2643_v9, %v2763_v42  ;;  %v296_v42 = vld [vmem:[%s8574_s1 + $0x38] sm:$0xff] }
 0x390   :  { %v2820_v63 = vpack.c.bf16 %v2795_v6, %v2794_v44  ;;  %3405 = vperm.xlu1 %5721, %v296_v42   ;;  %v7823_v44 = vld [vmem:[%s8574_s1 + $0x50] sm:$0xff] }
 0x392   :  { %5529 = vmatprep.mubr.msk.bf16.mxu1 %vm2869_vm5, %v2820_v63  ;;  %3606 = vperm.xlu0 %5717, %v7823_v44  }
 0x393   :  { %5530 = vmatmul.mubr.msk.bf16.gmra.mxu1 %vm2869_vm5, %v2821_v35 }
 0x394   :  { %v5495_v17 = vpop.f32.mrf.mxu1  ;;  %5722 = vset.pattern.permute.xlu1 %v6071_v32 }
 0x395   :  { %v2664_v39 = vadd.f32 %v5495_v17, %v7734_v23  ;;  %3594 = vperm.xlu1 %5722, %v296_v42  }
 0x396   :  { %v2655_v2 = vpop.f32.mrf.mxu1 }
 0x397   :  { %v2656_v27 = vadd.f32 %v7734_v23, %v2655_v2  ;;  %v2768_v20 = vmul.f32 0.01, %v2664_v39  ;;  %vm2736_vm4 = vcmp.gt.f32.partialorder %v2664_v39, 0.0 }
 0x398   :  { %v5496_v47 = vpop.f32.mrf.mxu1 }
 0x399   :  { %v2667_v34 = vadd.f32 %v5496_v47, %v7734_v23  ;;  %v2766_v18 = vmul.f32 0.01, %v2656_v27  ;;  %vm2734_vm3 = vcmp.gt.f32.partialorder %v2656_v27, 0.0  ;;  %v2800_v3 = vsel %vm2736_vm4, %v2664_v39, %v2768_v20  ;;  %v7838_v47 = vld [vmem:[%s8574_s1 + $0x90] sm:$0xff]  ;;  %5723 = vset.pattern.permute.xlu1 %v8705_v7 }
 0x39a   :  { %v2658_v15 = vpop.f32.mrf.mxu1 }
 0x39b   :  { %vm2737_vm2 = vcmp.gt.f32.partialorder %v2667_v34, 0.0  ;;  %v2769_v31 = vmul.f32 0.01, %v2667_v34  ;;  %v2659_v21 = vadd.f32 %v7734_v23, %v2658_v15  ;;  %v2798_v61 = vsel %vm2734_vm3, %v2656_v27, %v2766_v18  ;;  %v7830_v27 = vld [vmem:[%s8574_s1 + $0x70] sm:$0xff]  ;;  %v297_v15 = vld [vmem:[%s8574_s1 + $0x40] sm:$0xff] }
 0x39c   :  { %3622 = vperm.xlu0 %5717, %v7830_v27   ;;  %3410 = vperm.xlu1 %5723, %v297_v15  }
 0x39d   :  { %vm2735_vm6 = vcmp.gt.f32.partialorder %v2659_v21, 0.0  ;;  %v2767_v33 = vmul.f32 0.01, %v2659_v21  ;;  %v2801_v51 = vsel %vm2737_vm2, %v2667_v34, %v2769_v31 }
 0x39e   :  { %v2823_v50 = vpack.c.bf16 %v2801_v51, %v2800_v3  ;;  %v7851_v51 = vld [vmem:[%s8574_s1 + $0xb0] sm:$0xff] }
 0x39f   :  { %v2799_v53 = vsel %vm2735_vm6, %v2659_v21, %v2767_v33 }
 0x3a0   :  { %v2822_v14 = vpack.c.bf16 %v2799_v53, %v2798_v61  ;;  %3638 = vperm.xlu0 %5717, %v7838_v47   ;;  %5724 = vset.pattern.permute.xlu1 %v6071_v32 }
 0x3a1   :  { %3598 = vperm.xlu1 %5724, %v297_v15  }
 0x3a2   :  { %5533 = vmatprep.mubr.msk.bf16.mxu1 %vm2869_vm5, %v2822_v14 }
 0x3a3   :  { %5534 = vmatmul.mubr.msk.bf16.gmra.mxu1 %vm2869_vm5, %v2823_v50 }
 0x3a4   :  { %v5499_v19 = vpop.f32.mrf.mxu1  ;;  %3654 = vperm.xlu0 %5717, %v7851_v51  }
 0x3a5   :  { %v2680_v45 = vadd.f32 %v5499_v19, %v7734_v23  ;;  %v5925_v19 = vld [vmem:[%s8573_s10] sm:$0xff]  }
 0x3a6   :  { %v2671_v36 = vpop.f32.mrf.mxu1  ;;  %5551 = vmatprep.subr.bf16.mxu0 %v5925_v19 }
 0x3a7   :  { %v2672_v26 = vadd.f32 %v7734_v23, %v2671_v36  ;;  %v2772_v55 = vmul.f32 0.01, %v2680_v45  ;;  %vm2740_vm9 = vcmp.gt.f32.partialorder %v2680_v45, 0.0  ;;  %v7862_v36 = vld [vmem:[%s8574_s1 + $0xd0] sm:$0xff]  ;;  %5552 = vmatpush3.bf16.msra.mxu0 %v5925_v19 }
 0x3a8   :  { %v5500_v37 = vpop.f32.mrf.mxu1  ;;  %3670 = vperm.xlu0 %5717, %v7862_v36  }
 0x3a9   :  { %v2683_v54 = vadd.f32 %v5500_v37, %v7734_v23  ;;  %v2770_v28 = vmul.f32 0.01, %v2672_v26  ;;  %vm2738_vm8 = vcmp.gt.f32.partialorder %v2672_v26, 0.0  ;;  %v2804_v22 = vsel %vm2740_vm9, %v2680_v45, %v2772_v55  ;;  %v306_v55 = vld [vmem:[%s8574_s1 + $0x88] sm:$0xff] }
 0x3aa   :  { %v2674_v46 = vpop.f32.mrf.mxu1 }
 0x3ab   :  { %vm2741_vm7 = vcmp.gt.f32.partialorder %v2683_v54, 0.0  ;;  %v2773_v8 = vmul.f32 0.01, %v2683_v54  ;;  %v2675_v41 = vadd.f32 %v7734_v23, %v2674_v46  ;;  %v2802_v25 = vsel %vm2738_vm8, %v2672_v26, %v2770_v28  ;;  %v300_v28 = vld [vmem:[%s8574_s1 + $0x58] sm:$0xff] }
 0x3ac   :  { %5742 = vset.pattern.permute.xlu0 %v8705_v7 }
 0x3ad   :  { %vm2739_vm10 = vcmp.gt.f32.partialorder %v2675_v41, 0.0  ;;  %v2771_v1 = vmul.f32 0.01, %v2675_v41  ;;  %v2805_v0 = vsel %vm2741_vm7, %v2683_v54, %v2773_v8  ;;  %v298_v54 = vld [vmem:[%s8574_s1 + $0x48] sm:$0xff]  ;;  %3370 = vperm.xlu0 %5742, %v7739_v40   ;;  %v301_v40 = vld [vmem:[%s8574_s1 + $0x60] sm:$0xff]  ;;  %v304_v8 = vld [vmem:[%s8574_s1 + $0x78] sm:$0xff] }
 0x3ae   :  { %v2825_v29 = vpack.c.bf16 %v2805_v0, %v2804_v22  ;;  %3602 = vperm.xlu1 %5724, %v298_v54   ;;  %v310_v0 = vld [vmem:[%s8574_s1 + $0xa8] sm:$0xff] }
 0x3af   :  { %v2803_v58 = vsel %vm2739_vm10, %v2675_v41, %v2771_v1  ;;  %v305_v41 = vld [vmem:[%s8574_s1 + $0x80] sm:$0xff]  ;;  %v308_v1 = vld [vmem:[%s8574_s1 + $0x98] sm:$0xff] }
 0x3b0   :  { %v2824_v4 = vpack.c.bf16 %v2803_v58, %v2802_v25  ;;  %v312_v25 = vld [vmem:[%s8574_s1 + $0xb8] sm:$0xff]  ;;  %v7926_v58 = vld [vmem:[%s8575_s9] ss:$0 sm:$0xff] }
 0x3b1   :  { %3375 = vperm.xlu0 %5742, %v7746_v38   ;;  %v302_v38 = vld [vmem:[%s8574_s1 + $0x68] sm:$0xff] }
 0x3b2   :  { %5537 = vmatprep.mubr.msk.bf16.mxu1 %vm2869_vm5, %v2824_v4  ;;  %5725 = vset.pattern.permute.xlu1 %v8705_v7 }
 0x3b3   :  { %5538 = vmatmul.mubr.msk.bf16.gmra.mxu1 %vm2869_vm5, %v2825_v29  ;;  %3425 = vperm.xlu1 %5725, %v300_v28  }
 0x3b4   :  { %v5503_v56 = vpop.f32.mrf.mxu1 }
 0x3b5   :  { %v2696_v57 = vadd.f32 %v5503_v56, %v7734_v23  ;;  %3380 = vperm.xlu0 %5742, %v7797_v60  }
 0x3b6   :  { %v2687_v43 = vpop.f32.mrf.mxu1 }
 0x3b7   :  { %v2688_v5 = vadd.f32 %v7734_v23, %v2687_v43  ;;  %v2776_v12 = vmul.f32 0.01, %v2696_v57  ;;  %vm2744_vm13 = vcmp.gt.f32.partialorder %v2696_v57, 0.0  ;;  %5726 = vset.pattern.permute.xlu1 %v6071_v32 }
 0x3b8   :  { %v5504_v52 = vpop.f32.mrf.mxu1  ;;  %3610 = vperm.xlu1 %5726, %v300_v28  }
 0x3b9   :  { %v2699_v48 = vadd.f32 %v5504_v52, %v7734_v23  ;;  %v2774_v49 = vmul.f32 0.01, %v2688_v5  ;;  %vm2742_vm12 = vcmp.gt.f32.partialorder %v2688_v5, 0.0  ;;  %v2808_v35 = vsel %vm2744_vm13, %v2696_v57, %v2776_v12  ;;  %3395 = vperm.xlu0 %5742, %v7804_v16   ;;  %v313_v16 = vld [vmem:[%s8574_s1 + $0xc0] sm:$0xff] }
 0x3ba   :  { %v2690_v30 = vpop.f32.mrf.mxu1 }
 0x3bb   :  { %vm2745_vm11 = vcmp.gt.f32.partialorder %v2699_v48, 0.0  ;;  %v2777_v13 = vmul.f32 0.01, %v2699_v48  ;;  %v2691_v9 = vadd.f32 %v7734_v23, %v2690_v30  ;;  %v2806_v11 = vsel %vm2742_vm12, %v2688_v5, %v2774_v49  ;;  %v314_v5 = vld [vmem:[%s8574_s1 + $0xc8] sm:$0xff] }
 0x3bc   :  { %5727 = vset.pattern.permute.xlu1 %v8705_v7 }
 0x3bd   :  { %vm2743_vm14 = vcmp.gt.f32.partialorder %v2691_v9, 0.0  ;;  %v2775_v59 = vmul.f32 0.01, %v2691_v9  ;;  %v2809_v6 = vsel %vm2745_vm11, %v2699_v48, %v2777_v13  ;;  %3430 = vperm.xlu1 %5727, %v301_v40   ;;  %3400 = vperm.xlu0 %5742, %v7812_v62  }
 0x3be   :  { %v2827_v2 = vpack.c.bf16 %v2809_v6, %v2808_v35  ;;  %v316_v35 = vld [vmem:[%s8574_s1 + $0xd8] sm:$0xff] }
 0x3bf   :  { %v2807_v63 = vsel %vm2743_vm14, %v2691_v9, %v2775_v59 }
 0x3c0   :  { %v2826_v17 = vpack.c.bf16 %v2807_v63, %v2806_v11 }
 0x3c1   :  { %5728 = vset.pattern.permute.xlu1 %v6071_v32  ;;  %3415 = vperm.xlu0 %5742, %v298_v54  }
 0x3c2   :  { %5541 = vmatprep.mubr.msk.bf16.mxu1 %vm2869_vm5, %v2826_v17  ;;  %3614 = vperm.xlu1 %5728, %v301_v40  }
 0x3c3   :  { %5542 = vmatmul.mubr.msk.bf16.gmra.mxu1 %vm2869_vm5, %v2827_v2  ;;  %v7949_v2 = vld [vmem:[%s8574_s1 + $0xe8] sm:$0xff] }
 0x3c4   :  { %v5507_v39 = vpop.f32.mrf.mxu1 }
 0x3c5   :  { %v2712_v31 = vadd.f32 %v5507_v39, %v7734_v23  ;;  %3420 = vperm.xlu0 %5742, %v7823_v44  }
 0x3c6   :  { %v2703_v34 = vpop.f32.mrf.mxu1  ;;  %3618 = vperm.xlu1 %5728, %v302_v38  }
 0x3c7   :  { %v2704_v18 = vadd.f32 %v7734_v23, %v2703_v34  ;;  %v2780_v14 = vmul.f32 0.01, %v2712_v31  ;;  %vm2748_vm1 = vcmp.gt.f32.partialorder %v2712_v31, 0.0 }
 0x3c8   :  { %v5508_v21 = vpop.f32.mrf.mxu1 }
 0x3c9   :  { %v2715_v20 = vadd.f32 %v5508_v21, %v7734_v23  ;;  %v2778_v61 = vmul.f32 0.01, %v2704_v18  ;;  %vm2746_vm0 = vcmp.gt.f32.partialorder %v2704_v18, 0.0  ;;  %v2812_v45 = vsel %vm2748_vm1, %v2712_v31, %v2780_v14  ;;  %3435 = vperm.xlu0 %5742, %v302_v38   ;;  %v319_v38 = vld [vmem:[%s8574_s1 + $0xf0] sm:$0xff] }
 0x3ca   :  { %v2706_v33 = vpop.f32.mrf.mxu1  ;;  %5729 = vset.pattern.permute.xlu1 %v8705_v7 }
 0x3cb   :  { %vm2749_vm15 = vcmp.gt.f32.partialorder %v2715_v20, 0.0  ;;  %v2781_v53 = vmul.f32 0.01, %v2715_v20  ;;  %v2707_v3 = vadd.f32 %v7734_v23, %v2706_v33  ;;  %v2810_v23 = vsel %vm2746_vm0, %v2704_v18, %v2778_v61  ;;  %3445 = vperm.xlu1 %5729, %v304_v8  }
 0x3cd   :  { %vm2747_vm2 = vcmp.gt.f32.partialorder %v2707_v3, 0.0  ;;  %v2779_v50 = vmul.f32 0.01, %v2707_v3  ;;  %v2813_v24 = vsel %vm2749_vm15, %v2715_v20, %v2781_v53  ;;  %3440 = vperm.xlu0 %5742, %v7830_v27   ;;  %vm3800_vm15 = vcmask 261120  }
 0x3ce   :  { %v2829_v46 = vpack.c.bf16 %v2813_v24, %v2812_v45 }
 0x3cf   :  { %v2811_v26 = vsel %vm2747_vm2, %v2707_v3, %v2779_v50  ;;  %5730 = vset.pattern.permute.xlu1 %v6071_v32 }
 0x3d0   :  { %v2828_v37 = vpack.c.bf16 %v2811_v26, %v2810_v23  ;;  %3626 = vperm.xlu1 %5730, %v304_v8  }
 0x3d1   :  { %3455 = vperm.xlu0 %5742, %v306_v55  }
 0x3d2   :  { %5545 = vmatprep.mubr.msk.bf16.mxu1 %vm2869_vm5, %v2828_v37  ;;  %v317_v37 = vld [vmem:[%s8574_s1 + $0xe0] sm:$0xff] }
 0x3d3   :  { %5546 = vmatmul.mubr.msk.bf16.gmra.mxu1 %vm2869_vm5, %v2829_v46 }
 0x3d4   :  { %5731 = vset.pattern.permute.xlu1 %v8705_v7 }
 0x3d5   :  { %3450 = vperm.xlu1 %5731, %v305_v41   ;;  %3460 = vperm.xlu0 %5742, %v7838_v47  }
 0x3d9   :  { %5732 = vset.pattern.permute.xlu1 %v6071_v32  ;;  %3475 = vperm.xlu0 %5742, %v310_v0  }
 0x3da   :  { %3630 = vperm.xlu1 %5732, %v305_v41   ;;  %v5926_v41 = vld [vmem:[%s8576_s13 + $0x38] sm:$0xff]  }
 0x3db   :  { %5585 = vmatprep.subr.bf16.mxu1 %v5926_v41 }
 0x3dc   :  { %5586 = vmatpush3.bf16.msra.mxu1 %v5926_v41 }
 0x3dd   :  { %3480 = vperm.xlu0 %5742, %v7851_v51  }
 0x3de   :  { %3634 = vperm.xlu1 %5732, %v306_v55  }
 0x3e1   :  { %3495 = vperm.xlu0 %5742, %v314_v5  }
 0x3e2   :  { %5733 = vset.pattern.permute.xlu1 %v8705_v7 }
 0x3e3   :  { %3465 = vperm.xlu1 %5733, %v308_v1  }
 0x3e5   :  { %3500 = vperm.xlu0 %5742, %v7862_v36  }
 0x3e7   :  { %5734 = vset.pattern.permute.xlu1 %v6071_v32 }
 0x3e8   :  { %3642 = vperm.xlu1 %5734, %v308_v1   ;;  %v5927_v1 = vld [vmem:[%s8576_s13 + $0x30] sm:$0xff]  }
 0x3e9   :  { %3515 = vperm.xlu0 %5742, %v7949_v2   ;;  %5587 = vmatprep.subr.bf16.mxu1 %v5927_v1 }
 0x3ea   :  { %5588 = vmatpush3.bf16.msra.mxu1 %v5927_v1 }
 0x3ec   :  { %5735 = vset.pattern.permute.xlu1 %v8705_v7 }
 0x3ed   :  { %3470 = vperm.xlu1 %5735, %v309_v10   ;;  %3520 = vperm.xlu0 %5742, %v319_v38  }
 0x3f1   :  { %5736 = vset.pattern.permute.xlu1 %v6071_v32  ;;  %5747 = vset.pattern.permute.xlu0 %v6071_v32 }
 0x3f2   :  { %3646 = vperm.xlu1 %5736, %v309_v10   ;;  %3686 = vperm.xlu0 %5747, %v319_v38  }
 0x3f6   :  { %3650 = vperm.xlu1 %5736, %v310_v0  }
 0x3fa   :  { %5737 = vset.pattern.permute.xlu1 %v8705_v7 }
 0x3fb   :  { %3485 = vperm.xlu1 %5737, %v312_v25  }
 0x3ff   :  { %5738 = vset.pattern.permute.xlu1 %v6071_v32 }
 0x400   :  { %3658 = vperm.xlu1 %5738, %v312_v25  }
 0x404   :  { %5739 = vset.pattern.permute.xlu1 %v8705_v7 }
 0x405   :  { %3490 = vperm.xlu1 %5739, %v313_v16  }
 0x409   :  { %5740 = vset.pattern.permute.xlu1 %v6071_v32 }
 0x40a   :  { %3662 = vperm.xlu1 %5740, %v313_v16  }
 0x40e   :  { %3666 = vperm.xlu1 %5740, %v314_v5  }
 0x412   :  { %5741 = vset.pattern.permute.xlu1 %v8705_v7 }
 0x413   :  { %3505 = vperm.xlu1 %5741, %v316_v35  }
 0x417   :  { %5743 = vset.pattern.permute.xlu1 %v6071_v32 }
 0x418   :  { %3674 = vperm.xlu1 %5743, %v316_v35  }
 0x41c   :  { %5744 = vset.pattern.permute.xlu1 %v8705_v7 }
 0x41d   :  { %3510 = vperm.xlu1 %5744, %v317_v37  }
 0x421   :  { %5745 = vset.pattern.permute.xlu1 %v6071_v32 }
 0x422   :  { %3678 = vperm.xlu1 %5745, %v317_v37  }
 0x423   :  { %v5519_v22 = vpop.f32.mrf.mxu1 }
 0x424   :  { %v2961_v4 = vadd.f32 %v5519_v22, %v7926_v58  ;;  %v5928_v22 = vld [vmem:[%s8576_s13 + $0x28] sm:$0xff]  }
 0x425   :  { %v2952_v29 = vpop.f32.mrf.mxu1  ;;  %5589 = vmatprep.subr.bf16.mxu1 %v5928_v22 }
 0x426   :  { %vm3081_vm5 = vcmp.gt.f32.partialorder %v2961_v4, 0.0  ;;  %v3113_v56 = vmul.f32 0.01, %v2961_v4  ;;  %v2953_v60 = vadd.f32 %v7926_v58, %v2952_v29  ;;  %3682 = vperm.xlu1 %5745, %v7949_v2   ;;  %5590 = vmatpush3.bf16.msra.mxu1 %v5928_v22 }
 0x427   :  { %v5520_v43 = vpop.f32.mrf.mxu1 }
 0x428   :  { %v3145_v57 = vsel %vm3081_vm5, %v2961_v4, %v3113_v56  ;;  %vm3079_vm3 = vcmp.gt.f32.partialorder %v2953_v60, 0.0  ;;  %v3111_v52 = vmul.f32 0.01, %v2953_v60  ;;  %v2964_v48 = vadd.f32 %v5520_v43, %v7926_v58 }
 0x429   :  { %v5168_v62 = vmul.f32 -1.442695, %v3145_v57  ;;  %v2955_v30 = vpop.f32.mrf.mxu1 }
 0x42a   :  { %v3143_v49 = vsel %vm3079_vm3, %v2953_v60, %v3111_v52  ;;  %vm3082_vm4 = vcmp.gt.f32.partialorder %v2964_v48, 0.0  ;;  %v3114_v13 = vmul.f32 0.01, %v2964_v48  ;;  %v2956_v9 = vadd.f32 %v7926_v58, %v2955_v30  ;;  %v320_v52 = vld [vmem:[%s8574_s1 + $0xf8] sm:$0xff]  ;;  %5746 = vset.pattern.permute.xlu1 %v8705_v7 }
 0x42b   :  { %5942 = vpow2.f32 %v5168_v62  ;;  %v5166_v12 = vmul.f32 -1.442695, %v3143_v49  ;;  %3525 = vperm.xlu1 %5746, %v320_v52  }
 0x42c   :  { %v3146_v42 = vsel %vm3082_vm4, %v2964_v48, %v3114_v13  ;;  %vm3080_vm6 = vcmp.gt.f32.partialorder %v2956_v9, 0.0  ;;  %v3112_v59 = vmul.f32 0.01, %v2956_v9  ;;  %v5929_v48 = vld [vmem:[%s8576_s13 + $0x20] sm:$0xff]  }
 0x42d   :  { %5944 = vpow2.f32 %v5166_v12  ;;  %v5169_v44 = vmul.f32 -1.442695, %v3146_v42  ;;  %5591 = vmatprep.subr.bf16.mxu1 %v5929_v48 }
 0x42e   :  { %v3144_v6 = vsel %vm3080_vm6, %v2956_v9, %v3112_v59  ;;  %5592 = vmatpush3.bf16.msra.mxu1 %v5929_v48 }
 0x42f   :  { %5946 = vpow2.f32 %v5169_v44  ;;  %v5167_v11 = vmul.f32 -1.442695, %v3144_v6  ;;  %5748 = vset.pattern.permute.xlu1 %v6071_v32 }
 0x430   :  { %3690 = vperm.xlu1 %5748, %v320_v52  }
 0x431   :  { %5948 = vpow2.f32 %v5167_v11 }
 0x433   :  { %v5523_v63 = vpop.f32.mrf.mxu1 }
 0x434   :  { %v2977_v17 = vadd.f32 %v5523_v63, %v7926_v58 }
 0x435   :  { %v2968_v27 = vpop.f32.mrf.mxu1 }
 0x436   :  { %vm3085_vm7 = vcmp.gt.f32.partialorder %v2977_v17, 0.0  ;;  %v3117_v39 = vmul.f32 0.01, %v2977_v17  ;;  %v2969_v47 = vadd.f32 %v7926_v58, %v2968_v27 }
 0x437   :  { %v5524_v34 = vpop.f32.mrf.mxu1 }
 0x438   :  { %v5943_v15 = vpop.eup %5942  ;;  %v3149_v18 = vsel %vm3085_vm7, %v2977_v17, %v3117_v39  ;;  %vm3083_vm8 = vcmp.gt.f32.partialorder %v2969_v47, 0.0  ;;  %v3115_v31 = vmul.f32 0.01, %v2969_v47  ;;  %v2980_v21 = vadd.f32 %v5524_v34, %v7926_v58 }
 0x439   :  { %v3273_v20 = vadd.f32 1.0, %v5943_v15  ;;  %v5172_v33 = vmul.f32 -1.442695, %v3149_v18  ;;  %v2971_v51 = vpop.f32.mrf.mxu1 }
 0x43a   :  { %v5945_v61 = vpop.eup %5944  ;;  %v3147_v53 = vsel %vm3083_vm8, %v2969_v47, %v3115_v31  ;;  %vm3086_vm9 = vcmp.gt.f32.partialorder %v2980_v21, 0.0  ;;  %v3118_v3 = vmul.f32 0.01, %v2980_v21  ;;  %v2972_v14 = vadd.f32 %v7926_v58, %v2971_v51 }
 0x43b   :  { %5950 = vrcp.f32 %v3273_v20  ;;  %v3271_v50 = vadd.f32 1.0, %v5945_v61  ;;  %v5170_v24 = vmul.f32 -1.442695, %v3147_v53 }
 0x43c   :  { %v5947_v19 = vpop.eup %5946  ;;  %5952 = vpow2.f32 %v5172_v33  ;;  %v3150_v36 = vsel %vm3086_vm9, %v2980_v21, %v3118_v3  ;;  %vm3084_vm10 = vcmp.gt.f32.partialorder %v2972_v14, 0.0  ;;  %v3116_v23 = vmul.f32 0.01, %v2972_v14 }
 0x43d   :  { %5954 = vrcp.f32 %v3271_v50  ;;  %v3274_v26 = vadd.f32 1.0, %v5947_v19  ;;  %v5173_v45 = vmul.f32 -1.442695, %v3150_v36 }
 0x43e   :  { %v5949_v54 = vpop.eup %5948  ;;  %5956 = vpow2.f32 %v5170_v24  ;;  %v3148_v46 = vsel %vm3084_vm10, %v2972_v14, %v3116_v23 }
 0x43f   :  { %5958 = vrcp.f32 %v3274_v26  ;;  %v3272_v28 = vadd.f32 1.0, %v5949_v54  ;;  %v5171_v40 = vmul.f32 -1.442695, %v3148_v46 }
 0x440   :  { %5960 = vpow2.f32 %v5173_v45 }
 0x441   :  { %5962 = vrcp.f32 %v3272_v28 }
 0x442   :  { %5964 = vpow2.f32 %v5171_v40 }
 0x443   :  { %v5527_v8 = vpop.f32.mrf.mxu1 }
 0x444   :  { %v2993_v55 = vadd.f32 %v5527_v8, %v7926_v58 }
 0x445   :  { %v2984_v10 = vpop.f32.mrf.mxu1 }
 0x446   :  { %vm3089_vm11 = vcmp.gt.f32.partialorder %v2993_v55, 0.0  ;;  %v3121_v0 = vmul.f32 0.01, %v2993_v55  ;;  %v2985_v25 = vadd.f32 %v7926_v58, %v2984_v10 }
 0x447   :  { %v5528_v4 = vpop.f32.mrf.mxu1 }
 0x448   :  { %v5951_v29 = vpop.eup %5950  ;;  %v3153_v56 = vsel %vm3089_vm11, %v2993_v55, %v3121_v0  ;;  %vm3087_vm12 = vcmp.gt.f32.partialorder %v2985_v25, 0.0  ;;  %v3119_v60 = vmul.f32 0.01, %v2985_v25  ;;  %v2996_v43 = vadd.f32 %v5528_v4, %v7926_v58 }
 0x449   :  { %v5953_v5 = vpop.eup %5952  ;;  %v5176_v16 = vmul.f32 -1.442695, %v3153_v56  ;;  %v2987_v57 = vpop.f32.mrf.mxu1 }
 0x44a   :  { %v5955_v62 = vpop.eup %5954  ;;  %v3277_v30 = vadd.f32 1.0, %v5953_v5  ;;  %v3151_v49 = vsel %vm3087_vm12, %v2985_v25, %v3119_v60  ;;  %vm3090_vm13 = vcmp.gt.f32.partialorder %v2996_v43, 0.0  ;;  %v3122_v13 = vmul.f32 0.01, %v2996_v43 }
 0x44b   :  { %v5957_v9 = vpop.eup %5956  ;;  %v5174_v12 = vmul.f32 -1.442695, %v3151_v49  ;;  %v2988_v42 = vadd.f32 %v7926_v58, %v2987_v57  ;;  %5966 = vpow2.f32 %v5176_v16 }
 0x44c   :  { %v5959_v59 = vpop.eup %5958  ;;  %v3275_v44 = vadd.f32 1.0, %v5957_v9  ;;  %v3154_v6 = vsel %vm3090_vm13, %v2996_v43, %v3122_v13 }
 0x44d   :  { %v5961_v11 = vpop.eup %5960  ;;  %5968 = vpow2.f32 %v5174_v12  ;;  %v5177_v63 = vmul.f32 -1.442695, %v3154_v6  ;;  %vm3088_vm14 = vcmp.gt.f32.partialorder %v2988_v42, 0.0  ;;  %v3120_v2 = vmul.f32 0.01, %v2988_v42 }
 0x44e   :  { %v5963_v35 = vpop.eup %5962  ;;  %5970 = vrcp.f32 %v3277_v30  ;;  %v3278_v17 = vadd.f32 1.0, %v5961_v11  ;;  %v3762_v47 = vpack.c.bf16 %v5959_v59, %v5951_v29 }
 0x44f   :  { %v5965_v27 = vpop.eup %5964  ;;  %5972 = vpow2.f32 %v5177_v63  ;;  %v3761_v39 = vpack.c.bf16 %v5963_v35, %v5955_v62  ;;  %v3152_v15 = vsel %vm3088_vm14, %v2988_v42, %v3120_v2 }
 0x450   :  { %5974 = vrcp.f32 %v3275_v44  ;;  %v3276_v34 = vadd.f32 1.0, %v5965_v27  ;;  %v5175_v18 = vmul.f32 -1.442695, %v3152_v15 }
 0x451   :  { %5976 = vrcp.f32 %v3278_v17  ;;  %5553 = vmatprep.mubr.msk.bf16.mxu0 %vm3800_vm15, %v3761_v39 }
 0x452   :  { %5978 = vrcp.f32 %v3276_v34  ;;  %5554 = vmatmul.mubr.msk.bf16.vlgmr.msra.gmra.mxu0 %vm3800_vm15, %v3762_v47 }
 0x453   :  { %5980 = vpow2.f32 %v5175_v18  ;;  %v5531_v7 = vpop.f32.mrf.mxu1 }
 0x454   :  { %v3009_v31 = vadd.f32 %v5531_v7, %v7926_v58 }
 0x455   :  { %v3000_v21 = vpop.f32.mrf.mxu1 }
 0x456   :  { %vm3093_vm0 = vcmp.gt.f32.partialorder %v3009_v31, 0.0  ;;  %v3125_v20 = vmul.f32 0.01, %v3009_v31  ;;  %v3001_v33 = vadd.f32 %v7926_v58, %v3000_v21 }
 0x457   :  { %v5532_v51 = vpop.f32.mrf.mxu1 }
 0x458   :  { %v3157_v61 = vsel %vm3093_vm0, %v3009_v31, %v3125_v20  ;;  %vm3091_vm1 = vcmp.gt.f32.partialorder %v3001_v33, 0.0  ;;  %v3123_v53 = vmul.f32 0.01, %v3001_v33  ;;  %v3012_v3 = vadd.f32 %v5532_v51, %v7926_v58  ;;  %v5967_v14 = vpop.eup %5966 }
 0x459   :  { %v5180_v50 = vmul.f32 -1.442695, %v3157_v61  ;;  %v3003_v32 = vpop.f32.mrf.mxu1  ;;  %v3281_v25 = vadd.f32 1.0, %v5967_v14 }
 0x45a   :  { %v5969_v24 = vpop.eup %5968  ;;  %v3155_v19 = vsel %vm3091_vm1, %v3001_v33, %v3123_v53  ;;  %vm3094_vm2 = vcmp.gt.f32.partialorder %v3012_v3, 0.0  ;;  %v3126_v36 = vmul.f32 0.01, %v3012_v3  ;;  %v3004_v23 = vadd.f32 %v7926_v58, %v3003_v32 }
 0x45b   :  { %v5971_v26 = vpop.eup %5970  ;;  %v3279_v45 = vadd.f32 1.0, %v5969_v24  ;;  %v5178_v37 = vmul.f32 -1.442695, %v3155_v19  ;;  %5982 = vpow2.f32 %v5180_v50 }
 0x45c   :  { %v5973_v54 = vpop.eup %5972  ;;  %v3158_v46 = vsel %vm3094_vm2, %v3012_v3, %v3126_v36  ;;  %vm3092_vm5 = vcmp.gt.f32.partialorder %v3004_v23, 0.0  ;;  %v3124_v28 = vmul.f32 0.01, %v3004_v23 }
 0x45d   :  { %v5975_v40 = vpop.eup %5974  ;;  %v5181_v38 = vmul.f32 -1.442695, %v3158_v46  ;;  %v3282_v41 = vadd.f32 1.0, %v5973_v54  ;;  %5984 = vpow2.f32 %v5178_v37 }
 0x45e   :  { %v5977_v8 = vpop.eup %5976  ;;  %v3156_v55 = vsel %vm3092_vm5, %v3004_v23, %v3124_v28  ;;  %5986 = vrcp.f32 %v3279_v45 }
 0x45f   :  { %v5979_v1 = vpop.eup %5978  ;;  %v5179_v10 = vmul.f32 -1.442695, %v3156_v55  ;;  %5988 = vpow2.f32 %v5181_v38  ;;  %v3764_v29 = vpack.c.bf16 %v5977_v8, %v5971_v26 }
 0x460   :  { %v5981_v0 = vpop.eup %5980  ;;  %v3763_v22 = vpack.c.bf16 %v5979_v1, %v5975_v40 }
 0x461   :  { %v3280_v4 = vadd.f32 1.0, %v5981_v0  ;;  %5990 = vpow2.f32 %v5179_v10 }
 0x462   :  { %5992 = vrcp.f32 %v3282_v41  ;;  %5557 = vmatprep.mubr.msk.bf16.mxu0 %vm3800_vm15, %v3763_v22 }
 0x463   :  { %5994 = vrcp.f32 %v3280_v4  ;;  %5558 = vmatmul.mubr.msk.bf16.gmra.mxu0 %vm3800_vm15, %v3764_v29  ;;  %v5535_v56 = vpop.f32.mrf.mxu1 }
 0x464   :  { %5996 = vrcp.f32 %v3281_v25  ;;  %v3025_v60 = vadd.f32 %v5535_v56, %v7926_v58 }
 0x465   :  { %v3016_v43 = vpop.f32.mrf.mxu1 }
 0x466   :  { %vm3097_vm3 = vcmp.gt.f32.partialorder %v3025_v60, 0.0  ;;  %v3129_v5 = vmul.f32 0.01, %v3025_v60  ;;  %v3017_v16 = vadd.f32 %v7926_v58, %v3016_v43 }
 0x467   :  { %v5536_v57 = vpop.f32.mrf.mxu1 }
 0x468   :  { %v3161_v52 = vsel %vm3097_vm3, %v3025_v60, %v3129_v5  ;;  %vm3095_vm4 = vcmp.gt.f32.partialorder %v3017_v16, 0.0  ;;  %v3127_v48 = vmul.f32 0.01, %v3017_v16  ;;  %v3028_v62 = vadd.f32 %v5536_v57, %v7926_v58  ;;  %v5983_v30 = vpop.eup %5982 }
 0x469   :  { %v5184_v49 = vmul.f32 -1.442695, %v3161_v52  ;;  %v3019_v13 = vpop.f32.mrf.mxu1  ;;  %v3285_v9 = vadd.f32 1.0, %v5983_v30 }
 0x46a   :  { %v3159_v12 = vsel %vm3095_vm4, %v3017_v16, %v3127_v48  ;;  %vm3098_vm6 = vcmp.gt.f32.partialorder %v3028_v62, 0.0  ;;  %v3130_v42 = vmul.f32 0.01, %v3028_v62  ;;  %v5985_v59 = vpop.eup %5984  ;;  %v3020_v6 = vadd.f32 %v7926_v58, %v3019_v13 }
 0x46b   :  { %5998 = vpow2.f32 %v5184_v49  ;;  %v5182_v44 = vmul.f32 -1.442695, %v3159_v12  ;;  %v5987_v11 = vpop.eup %5986  ;;  %v3283_v63 = vadd.f32 1.0, %v5985_v59 }
 0x46c   :  { %6000 = vrcp.f32 %v3285_v9  ;;  %v3162_v35 = vsel %vm3098_vm6, %v3028_v62, %v3130_v42  ;;  %v5989_v17 = vpop.eup %5988  ;;  %vm3096_vm7 = vcmp.gt.f32.partialorder %v3020_v6, 0.0  ;;  %v3128_v27 = vmul.f32 0.01, %v3020_v6 }
 0x46d   :  { %6002 = vpow2.f32 %v5182_v44  ;;  %v5185_v2 = vmul.f32 -1.442695, %v3162_v35  ;;  %v3286_v47 = vadd.f32 1.0, %v5989_v17 }
 0x46e   :  { %v5991_v39 = vpop.eup %5990  ;;  %6004 = vrcp.f32 %v3283_v63  ;;  %v3160_v18 = vsel %vm3096_vm7, %v3020_v6, %v3128_v27 }
 0x46f   :  { %v5993_v34 = vpop.eup %5992  ;;  %v3284_v15 = vadd.f32 1.0, %v5991_v39  ;;  %6006 = vpow2.f32 %v5185_v2  ;;  %v5183_v31 = vmul.f32 -1.442695, %v3160_v18 }
 0x470   :  { %v5995_v7 = vpop.eup %5994  ;;  %6008 = vrcp.f32 %v3286_v47 }
 0x471   :  { %v5997_v21 = vpop.eup %5996  ;;  %6010 = vrcp.f32 %v3284_v15  ;;  %v3765_v20 = vpack.c.bf16 %v5995_v7, %v5987_v11 }
 0x472   :  { %6012 = vpow2.f32 %v5183_v31  ;;  %v3766_v33 = vpack.c.bf16 %v5993_v34, %v5997_v21 }
 0x473   :  { %5561 = vmatprep.mubr.msk.bf16.mxu0 %vm3800_vm15, %v3765_v20  ;;  %v5539_v51 = vpop.f32.mrf.mxu1 }
 0x474   :  { %5562 = vmatmul.mubr.msk.bf16.gmra.mxu0 %vm3800_vm15, %v3766_v33  ;;  %v3041_v61 = vadd.f32 %v5539_v51, %v7926_v58 }
 0x475   :  { %v3032_v53 = vpop.f32.mrf.mxu1 }
 0x476   :  { %vm3101_vm8 = vcmp.gt.f32.partialorder %v3041_v61, 0.0  ;;  %v3133_v3 = vmul.f32 0.01, %v3041_v61  ;;  %v3033_v14 = vadd.f32 %v7926_v58, %v3032_v53 }
 0x477   :  { %v5540_v50 = vpop.f32.mrf.mxu1 }
 0x478   :  { %v5999_v32 = vpop.eup %5998  ;;  %v3165_v24 = vsel %vm3101_vm8, %v3041_v61, %v3133_v3  ;;  %vm3099_vm9 = vcmp.gt.f32.partialorder %v3033_v14, 0.0  ;;  %v3131_v19 = vmul.f32 0.01, %v3033_v14  ;;  %v3044_v36 = vadd.f32 %v5540_v50, %v7926_v58 }
 0x479   :  { %v6001_v23 = vpop.eup %6000  ;;  %v5188_v26 = vmul.f32 -1.442695, %v3165_v24  ;;  %v3035_v45 = vpop.f32.mrf.mxu1  ;;  %v3289_v56 = vadd.f32 1.0, %v5999_v32  ;;  %v5930_v32 = vld [vmem:[%s8576_s13 + $0x18] sm:$0xff]  }
 0x47a   :  { %v6003_v37 = vpop.eup %6002  ;;  %v3163_v54 = vsel %vm3099_vm9, %v3033_v14, %v3131_v19  ;;  %vm3102_vm10 = vcmp.gt.f32.partialorder %v3044_v36, 0.0  ;;  %v3134_v46 = vmul.f32 0.01, %v3044_v36  ;;  %v3036_v28 = vadd.f32 %v7926_v58, %v3035_v45  ;;  %5593 = vmatprep.subr.bf16.mxu1 %v5930_v32  ;;  %v5931_v45 = vld [vmem:[%s8576_s13 + $0x10] sm:$0xff]  }
 0x47b   :  { %v6005_v40 = vpop.eup %6004  ;;  %v3287_v38 = vadd.f32 1.0, %v6003_v37  ;;  %v5186_v8 = vmul.f32 -1.442695, %v3163_v54  ;;  %6014 = vpow2.f32 %v5188_v26  ;;  %5594 = vmatpush3.bf16.msra.mxu1 %v5930_v32 }
 0x47c   :  { %v6007_v41 = vpop.eup %6006  ;;  %v3166_v55 = vsel %vm3102_vm10, %v3044_v36, %v3134_v46  ;;  %vm3100_vm11 = vcmp.gt.f32.partialorder %v3036_v28, 0.0  ;;  %v3132_v1 = vmul.f32 0.01, %v3036_v28  ;;  %5595 = vmatprep.subr.bf16.mxu1 %v5931_v45 }
 0x47d   :  { %v6009_v10 = vpop.eup %6008  ;;  %6016 = vrcp.f32 %v3287_v38  ;;  %v3290_v0 = vadd.f32 1.0, %v6007_v41  ;;  %v5189_v25 = vmul.f32 -1.442695, %v3166_v55 }
 0x47e   :  { %v6011_v22 = vpop.eup %6010  ;;  %6018 = vpow2.f32 %v5186_v8  ;;  %v3164_v4 = vsel %vm3100_vm11, %v3036_v28, %v3132_v1  ;;  %v3768_v16 = vpack.c.bf16 %v6009_v10, %v6001_v23 }
 0x47f   :  { %v6013_v29 = vpop.eup %6012  ;;  %6020 = vrcp.f32 %v3290_v0  ;;  %v5187_v60 = vmul.f32 -1.442695, %v3164_v4  ;;  %v3767_v43 = vpack.c.bf16 %v6011_v22, %v6005_v40  ;;  %5596 = vmatpush3.bf16.msra.mxu1 %v5931_v45  ;;  %v5932_v4 = vld [vmem:[%s8576_s13 + $0x8] sm:$0xff]  }
 0x480   :  { %v3288_v5 = vadd.f32 1.0, %v6013_v29  ;;  %6022 = vpow2.f32 %v5189_v25  ;;  %5597 = vmatprep.subr.bf16.mxu1 %v5932_v4 }
 0x481   :  { %6024 = vpow2.f32 %v5187_v60  ;;  %5565 = vmatprep.mubr.msk.bf16.mxu0 %vm3800_vm15, %v3767_v43 }
 0x482   :  { %6026 = vrcp.f32 %v3288_v5  ;;  %5566 = vmatmul.mubr.msk.bf16.gmra.mxu0 %vm3800_vm15, %v3768_v16 }
 0x483   :  { %6028 = vrcp.f32 %v3289_v56  ;;  %v5543_v57 = vpop.f32.mrf.mxu1  ;;  %5598 = vmatpush3.bf16.msra.mxu1 %v5932_v4  ;;  %v8088_v4 = vld [vmem:[%s8577_s11 + $0x1] ss:$0 sm:$0xff] }
 0x484   :  { %v3057_v52 = vadd.f32 %v5543_v57, %v7926_v58 }
 0x485   :  { %v3048_v48 = vpop.f32.mrf.mxu1 }
 0x486   :  { %vm3105_vm12 = vcmp.gt.f32.partialorder %v3057_v52, 0.0  ;;  %v3137_v62 = vmul.f32 0.01, %v3057_v52  ;;  %v3049_v30 = vadd.f32 %v7926_v58, %v3048_v48  ;;  %v5933_v48 = vld [vmem:[%s8576_s13] sm:$0xff]  }
 0x487   :  { %v5544_v49 = vpop.f32.mrf.mxu1  ;;  %5599 = vmatprep.subr.bf16.mxu1 %v5933_v48 }
 0x488   :  { %v3169_v13 = vsel %vm3105_vm12, %v3057_v52, %v3137_v62  ;;  %vm3103_vm13 = vcmp.gt.f32.partialorder %v3049_v30, 0.0  ;;  %v3135_v9 = vmul.f32 0.01, %v3049_v30  ;;  %v3060_v12 = vadd.f32 %v5544_v49, %v7926_v58  ;;  %v6015_v42 = vpop.eup %6014  ;;  %v8028_v52 = vpop.permute.xlu1 %3566  ;;  %5600 = vmatpush3.bf16.msra.mxu1 %v5933_v48  ;;  %v8105_v48 = vld [vmem:[%s8578_s12] ss:$0 sm:$0xff] }
 0x489   :  { %v5192_v59 = vmul.f32 -1.442695, %v3169_v13  ;;  %v3051_v44 = vpop.f32.mrf.mxu1  ;;  %v3293_v11 = vadd.f32 1.0, %v6015_v42 }
 0x48a   :  { %v6017_v6 = vpop.eup %6016  ;;  %v3167_v63 = vsel %vm3103_vm13, %v3049_v30, %v3135_v9  ;;  %vm3106_vm14 = vcmp.gt.f32.partialorder %v3060_v12, 0.0  ;;  %v3138_v35 = vmul.f32 0.01, %v3060_v12  ;;  %v3052_v27 = vadd.f32 %v7926_v58, %v3051_v44 }
 0x48b   :  { %v6019_v17 = vpop.eup %6018  ;;  %6030 = vpow2.f32 %v5192_v59  ;;  %v5190_v2 = vmul.f32 -1.442695, %v3167_v63 }
 0x48c   :  { %v6021_v39 = vpop.eup %6020  ;;  %6032 = vrcp.f32 %v3293_v11  ;;  %v3291_v47 = vadd.f32 1.0, %v6019_v17  ;;  %v3170_v34 = vsel %vm3106_vm14, %v3060_v12, %v3138_v35  ;;  %vm3104_vm0 = vcmp.gt.f32.partialorder %v3052_v27, 0.0  ;;  %v8035_v42 = vpop.permute.xlu1 %3570 }
 0x48d   :  { %v6023_v15 = vpop.eup %6022  ;;  %6034 = vpow2.f32 %v5190_v2  ;;  %v5193_v18 = vmul.f32 -1.442695, %v3170_v34  ;;  %v3136_v7 = vmul.f32 0.01, %v3052_v27 }
 0x48e   :  { %v6025_v31 = vpop.eup %6024  ;;  %6036 = vrcp.f32 %v3291_v47  ;;  %v3294_v21 = vadd.f32 1.0, %v6023_v15 }
 0x48f   :  { %v6027_v20 = vpop.eup %6026  ;;  %v3292_v33 = vadd.f32 1.0, %v6025_v31  ;;  %6038 = vpow2.f32 %v5193_v18  ;;  %v3168_v51 = vsel %vm3104_vm0, %v3052_v27, %v3136_v7 }
 0x490   :  { %v6029_v61 = vpop.eup %6028  ;;  %6040 = vrcp.f32 %v3294_v21  ;;  %v5191_v53 = vmul.f32 -1.442695, %v3168_v51  ;;  %v3769_v3 = vpack.c.bf16 %v6027_v20, %v6017_v6  ;;  %v8037_v6 = vpop.permute.xlu1 %3385 }
 0x491   :  { %6042 = vrcp.f32 %v3292_v33  ;;  %v3770_v14 = vpack.c.bf16 %v6021_v39, %v6029_v61 }
 0x492   :  { %6044 = vpow2.f32 %v5191_v53  ;;  %5569 = vmatprep.mubr.msk.bf16.mxu0 %vm3800_vm15, %v3769_v3 }
 0x493   :  { %5570 = vmatmul.mubr.msk.bf16.gmra.mxu0 %vm3800_vm15, %v3770_v14  ;;  %v5547_v50 = vpop.f32.mrf.mxu1 }
 0x494   :  { %v3073_v24 = vadd.f32 %v5547_v50, %v7926_v58  ;;  %v3579_v7 = vpop.permute.xlu1 %3578 }
 0x495   :  { %v3064_v19 = vpop.f32.mrf.mxu1 }
 0x496   :  { %vm3109_vm1 = vcmp.gt.f32.partialorder %v3073_v24, 0.0  ;;  %v3141_v36 = vmul.f32 0.01, %v3073_v24  ;;  %v3065_v23 = vadd.f32 %v7926_v58, %v3064_v19 }
 0x497   :  { %v5548_v26 = vpop.f32.mrf.mxu1 }
 0x498   :  { %v6031_v37 = vpop.eup %6030  ;;  %v3173_v54 = vsel %vm3109_vm1, %v3073_v24, %v3141_v36  ;;  %vm3107_vm2 = vcmp.gt.f32.partialorder %v3065_v23, 0.0  ;;  %v3139_v46 = vmul.f32 0.01, %v3065_v23  ;;  %v3076_v28 = vadd.f32 %v5548_v26, %v7926_v58  ;;  %v8041_v21 = vpop.permute.xlu1 %3390 }
 0x499   :  { %v6033_v40 = vpop.eup %6032  ;;  %v5196_v38 = vmul.f32 -1.442695, %v3173_v54  ;;  %v3067_v8 = vpop.f32.mrf.mxu1  ;;  %v3297_v30 = vadd.f32 1.0, %v6031_v37 }
 0x49a   :  { %v6035_v41 = vpop.eup %6034  ;;  %v3171_v55 = vsel %vm3107_vm2, %v3065_v23, %v3139_v46  ;;  %vm3110_vm5 = vcmp.gt.f32.partialorder %v3076_v28, 0.0  ;;  %v3142_v1 = vmul.f32 0.01, %v3076_v28  ;;  %v3068_v10 = vadd.f32 %v7926_v58, %v3067_v8  ;;  %v3575_v23 = vpop.permute.xlu0 %3574 }
 0x49b   :  { %v6037_v0 = vpop.eup %6036  ;;  %v3295_v25 = vadd.f32 1.0, %v6035_v41  ;;  %v5194_v22 = vmul.f32 -1.442695, %v3171_v55  ;;  %6046 = vpow2.f32 %v5196_v38 }
 0x49c   :  { %v6039_v29 = vpop.eup %6038  ;;  %v3174_v56 = vsel %vm3110_vm5, %v3076_v28, %v3142_v1  ;;  %vm3108_vm3 = vcmp.gt.f32.partialorder %v3068_v10, 0.0  ;;  %v3140_v60 = vmul.f32 0.01, %v3068_v10  ;;  %v8043_v33 = vpop.permute.xlu1 %3582 }
 0x49d   :  { %v6041_v43 = vpop.eup %6040  ;;  %6048 = vrcp.f32 %v3295_v25  ;;  %v3298_v5 = vadd.f32 1.0, %v6039_v29  ;;  %v5197_v16 = vmul.f32 -1.442695, %v3174_v56  ;;  %v8093_v29 = vld [vmem:[%s8577_s11] ss:$0 sm:$0xff] }
 0x49e   :  { %v6043_v57 = vpop.eup %6042  ;;  %6050 = vpow2.f32 %v5194_v22  ;;  %v3172_v58 = vsel %vm3108_vm3, %v3068_v10, %v3140_v60  ;;  %v3772_v12 = vpack.c.bf16 %v6041_v43, %v6033_v40  ;;  %v8059_v45 = vpop.permute.xlu0 %3590  ;;  %v3699_v43 = vmul.f32 %v8088_v4, %v3575_v23 }
 0x49f   :  { %v6045_v62 = vpop.eup %6044  ;;  %6052 = vrcp.f32 %v3298_v5  ;;  %v5195_v49 = vmul.f32 -1.442695, %v3172_v58  ;;  %v3771_v13 = vpack.c.bf16 %v6043_v57, %v6037_v0  ;;  %v3697_v5 = vmul.f32 %v8088_v4, %v8028_v52 }
 0x4a0   :  { %v3296_v9 = vadd.f32 1.0, %v6045_v62  ;;  %6054 = vpow2.f32 %v5197_v16  ;;  %v8047_v50 = vpop.permute.xlu1 %3586  ;;  %v3535_v62 = vmul.f32 %v8093_v29, %v8037_v6 }
 0x4a1   :  { %6056 = vpow2.f32 %v5195_v49  ;;  %5573 = vmatprep.mubr.msk.bf16.mxu0 %vm3800_vm15, %v3771_v13 }
 0x4a2   :  { %6058 = vrcp.f32 %v3296_v9  ;;  %5574 = vmatmul.mubr.msk.bf16.gmra.mxu0 %vm3800_vm15, %v3772_v12  ;;  %v8063_v54 = vpop.permute.xlu0 %3606 }
 0x4a3   :  { %6060 = vrcp.f32 %v3297_v30  ;;  %v3700_v30 = vmul.f32 %v8088_v4, %v3579_v7 }
 0x4a4   :  { %v8049_v32 = vpop.permute.xlu1 %3405 }
 0x4a6   :  { %v8067_v28 = vpop.permute.xlu0 %3622 }
 0x4a8   :  { %v6047_v59 = vpop.eup %6046  ;;  %v8051_v24 = vpop.permute.xlu1 %3594 }
 0x4a9   :  { %v3301_v27 = vadd.f32 1.0, %v6047_v59  ;;  %v5934_v59 = vld [vmem:[%s8579_s15 + $0x38] sm:$0xff]  }
 0x4aa   :  { %v6049_v44 = vpop.eup %6048  ;;  %v8071_v38 = vpop.permute.xlu0 %3638  ;;  %5633 = vmatprep.subr.bf16.mxu0 %v5934_v59 }
 0x4ab   :  { %v6051_v11 = vpop.eup %6050  ;;  %5634 = vmatpush3.bf16.msra.mxu0 %v5934_v59 }
 0x4ac   :  { %v6053_v63 = vpop.eup %6052  ;;  %v3299_v35 = vadd.f32 1.0, %v6051_v11  ;;  %v8053_v19 = vpop.permute.xlu1 %3410 }
 0x4ad   :  { %v6055_v17 = vpop.eup %6054 }
 0x4ae   :  { %v6057_v2 = vpop.eup %6056  ;;  %v3302_v39 = vadd.f32 1.0, %v6055_v17  ;;  %6062 = vrcp.f32 %v3299_v35  ;;  %v8075_v41 = vpop.permute.xlu0 %3654  ;;  %v5935_v35 = vld [vmem:[%s8579_s15 + $0x30] sm:$0xff]   ;;  %v3732_v17 = vadd.f32 %v3700_v30, %v3535_v62 }
 0x4af   :  { %v6059_v47 = vpop.eup %6058  ;;  %v3300_v34 = vadd.f32 1.0, %v6057_v2  ;;  %5635 = vmatprep.subr.bf16.mxu0 %v5935_v35 }
 0x4b0   :  { %v6061_v15 = vpop.eup %6060  ;;  %6064 = vrcp.f32 %v3302_v39  ;;  %v3773_v18 = vpack.c.bf16 %v6059_v47, %v6049_v44  ;;  %v8055_v36 = vpop.permute.xlu1 %3598  ;;  %v3698_v44 = vmul.f32 %v8088_v4, %v8035_v42  ;;  %v5936_v42 = vld [vmem:[%s8579_s15 + $0x28] sm:$0xff]   ;;  %5636 = vmatpush3.bf16.msra.mxu0 %v5935_v35 }
 0x4b1   :  { %6066 = vrcp.f32 %v3300_v34  ;;  %v3774_v31 = vpack.c.bf16 %v6053_v63, %v6061_v15  ;;  %5637 = vmatprep.subr.bf16.mxu0 %v5936_v42 }
 0x4b2   :  { %6068 = vrcp.f32 %v3301_v27  ;;  %5577 = vmatprep.mubr.msk.bf16.mxu0 %vm3800_vm15, %v3773_v18  ;;  %v8079_v1 = vpop.permute.xlu0 %3670 }
 0x4b3   :  { %5578 = vmatmul.mubr.msk.bf16.gmra.mxu0 %vm3800_vm15, %v3774_v31 }
 0x4b4   :  { %v8057_v26 = vpop.permute.xlu1 %3602  ;;  %5638 = vmatpush3.bf16.msra.mxu0 %v5936_v42 }
 0x4b6   :  { %v3371_v0 = vpop.permute.xlu0 %3370 }
 0x4b7   :  { %v3532_v16 = vmul.f32 %v8093_v29, %v3371_v0 }
 0x4b8   :  { %v8061_v37 = vpop.permute.xlu1 %3425 }
 0x4b9   :  { %v3729_v13 = vadd.f32 %v3697_v5, %v3532_v16  ;;  %v5938_v16 = vld [vmem:[%s8579_s15 + $0x18] sm:$0xff]  }
 0x4ba   :  { %v3376_v22 = vpop.permute.xlu0 %3375 }
 0x4bb   :  { %v6063_v20 = vpop.eup %6062  ;;  %v3533_v11 = vmul.f32 %v8093_v29, %v3376_v22 }
 0x4bc   :  { %v8065_v46 = vpop.permute.xlu1 %3610 }
 0x4bd   :  { %v6065_v51 = vpop.eup %6064  ;;  %v3730_v15 = vadd.f32 %v3698_v44, %v3533_v11 }
 0x4be   :  { %v6067_v61 = vpop.eup %6066  ;;  %v3381_v56 = vpop.permute.xlu0 %3380 }
 0x4bf   :  { %v6069_v53 = vpop.eup %6068  ;;  %v3775_v3 = vpack.c.bf16 %v6067_v61, %v6063_v20  ;;  %v3534_v57 = vmul.f32 %v8093_v29, %v3381_v56 }
 0x4c0   :  { %v3776_v14 = vpack.c.bf16 %v6065_v51, %v6069_v53  ;;  %v8069_v40 = vpop.permute.xlu1 %3430 }
 0x4c1   :  { %5581 = vmatprep.mubr.msk.bf16.mxu0 %vm3800_vm15, %v3775_v3  ;;  %v3731_v9 = vadd.f32 %v3699_v43, %v3534_v57  ;;  %v5937_v3 = vld [vmem:[%s8579_s15 + $0x20] sm:$0xff]   ;;  %v3703_v57 = vmul.f32 %v8088_v4, %v8059_v45 }
 0x4c2   :  { %5582 = vmatmul.mubr.msk.bf16.gmra.mxu0 %vm3800_vm15, %v3776_v14  ;;  %v3396_v61 = vpop.permute.xlu0 %3395  ;;  %5639 = vmatprep.subr.bf16.mxu0 %v5937_v3 }
 0x4c3   :  { %5640 = vmatpush3.bf16.msra.mxu0 %v5937_v3 }
 0x4c4   :  { %v8073_v8 = vpop.permute.xlu1 %3614  ;;  %5641 = vmatprep.subr.bf16.mxu0 %v5938_v16 }
 0x4c6   :  { %v3401_v56 = vpop.permute.xlu0 %3400 }
 0x4c7   :  { %5642 = vmatpush3.bf16.msra.mxu0 %v5938_v16 }
 0x4c8   :  { %v8077_v55 = vpop.permute.xlu1 %3618 }
 0x4cc   :  { %v8081_v10 = vpop.permute.xlu1 %3445 }
 0x4d0   :  { %v8083_v25 = vpop.permute.xlu1 %3626 }
 0x4d4   :  { %v8095_v60 = vpop.permute.xlu1 %3450 }
 0x4d8   :  { %v8118_v63 = vpop.permute.xlu1 %3630 }
 0x4dc   :  { %v8128_v20 = vpop.permute.xlu1 %3634 }
 0x4e0   :  { %v8139_v62 = vpop.permute.xlu1 %3465 }
 0x512   :  { %v5555_v58 = vpop.f32.mrf.mxu0 }
 0x513   :  { %v3892_v52 = vadd.f32 %v5555_v58, %v8105_v48  ;;  %v3538_v58 = vmul.f32 %v8093_v29, %v3401_v56 }
 0x514   :  { %v3883_v49 = vpop.f32.mrf.mxu0 }
 0x515   :  { %v3884_v12 = vadd.f32 %v8105_v48, %v3883_v49  ;;  %v4012_v47 = vadd.f32 %v3892_v52, %v3731_v9  ;;  %v3536_v49 = vmul.f32 %v8093_v29, %v8041_v21  ;;  %v3539_v52 = vmul.f32 %v8093_v29, %v8049_v32 }
 0x516   :  { %v5556_v6 = vpop.f32.mrf.mxu0  ;;  %v3735_v59 = vadd.f32 %v3703_v57, %v3538_v58  ;;  %v3707_v58 = vmul.f32 %v8088_v4, %v8063_v54 }
 0x517   :  { %v4010_v2 = vadd.f32 %v3884_v12, %v3729_v13  ;;  %v3895_v27 = vadd.f32 %v5556_v6, %v8105_v48  ;;  %v4076_v53 = vmul.f32 0.01, %v4012_v47  ;;  %vm4044_vm6 = vcmp.gt.f32.partialorder %v4012_v47, 0.0 }
 0x518   :  { %v3886_v39 = vpop.f32.mrf.mxu0  ;;  %v3701_v13 = vmul.f32 %v8088_v4, %v8043_v33  ;;  %v3704_v12 = vmul.f32 %v8088_v4, %v8051_v24  ;;  %v3702_v33 = vmul.f32 %v8088_v4, %v8047_v50  ;;  %v3537_v6 = vmul.f32 %v8093_v29, %v3396_v61 }
 0x519   :  { %v4013_v34 = vadd.f32 %v3895_v27, %v3732_v17  ;;  %v4074_v18 = vmul.f32 0.01, %v4010_v2  ;;  %v3887_v7 = vadd.f32 %v8105_v48, %v3886_v39  ;;  %vm4042_vm4 = vcmp.gt.f32.partialorder %v4010_v2, 0.0  ;;  %v8154_v17 = vpop.permute.xlu1 %3642 }
 0x51a   :  { %v4108_v43 = vsel %vm4044_vm6, %v4012_v47, %v4076_v53  ;;  %v3733_v11 = vadd.f32 %v3701_v13, %v3536_v49  ;;  %v3736_v32 = vadd.f32 %v3704_v12, %v3539_v52  ;;  %v3708_v49 = vmul.f32 %v8088_v4, %v8065_v46 }
 0x51b   :  { %vm4045_vm15 = vcmp.gt.f32.partialorder %v4013_v34, 0.0  ;;  %v4077_v31 = vmul.f32 0.01, %v4013_v34  ;;  %v4011_v51 = vadd.f32 %v3887_v7, %v3730_v15  ;;  %v4106_v0 = vsel %vm4042_vm4, %v4010_v2, %v4074_v18  ;;  %v3416_v18 = vpop.permute.xlu0 %3415 }
 0x51c   :  { %v3706_v12 = vmul.f32 %v8088_v4, %v8057_v26  ;;  %v3541_v54 = vmul.f32 %v8093_v29, %v3416_v18 }
 0x51d   :  { %vm4043_vm7 = vcmp.gt.f32.partialorder %v4011_v51, 0.0  ;;  %v4075_v14 = vmul.f32 0.01, %v4011_v51  ;;  %v4109_v23 = vsel %vm4045_vm15, %v4013_v34, %v4077_v31  ;;  %v3734_v34 = vadd.f32 %v3702_v33, %v3537_v6  ;;  %v8158_v31 = vpop.permute.xlu1 %3470 }
 0x51e   :  { %v4139_v30 = vpack.c.bf16 %v4109_v23, %v4108_v43  ;;  %v3540_v43 = vmul.f32 %v8093_v29, %v8053_v19 }
 0x51f   :  { %v4107_v22 = vsel %vm4043_vm7, %v4011_v51, %v4075_v14 }
 0x520   :  { %v4138_v5 = vpack.c.bf16 %v4107_v22, %v4106_v0  ;;  %v3421_v22 = vpop.permute.xlu0 %3420 }
 0x521   :  { %v8164_v16 = vpop.permute.xlu1 %3646  ;;  %v3542_v13 = vmul.f32 %v8093_v29, %v3421_v22 }
 0x522   :  { %5601 = vmatprep.mubr.bf16.mxu1 %v4138_v5  ;;  %v3705_v5 = vmul.f32 %v8088_v4, %v8055_v36 }
 0x523   :  { %v5559_v9 = vpop.f32.mrf.mxu0  ;;  %5602 = vmatmul.mubr.bf16.vlgmr.msra.gmra.mxu1 %v4139_v30  ;;  %v3543_v30 = vmul.f32 %v8093_v29, %v8061_v37  ;;  %v3739_v37 = vadd.f32 %v3707_v58, %v3542_v13 }
 0x524   :  { %v3908_v44 = vadd.f32 %v5559_v9, %v8105_v48  ;;  %v3737_v52 = vadd.f32 %v3705_v5, %v3540_v43  ;;  %v3436_v33 = vpop.permute.xlu0 %3435  ;;  %v3710_v5 = vmul.f32 %v8088_v4, %v8077_v55 }
 0x525   :  { %v3899_v45 = vpop.f32.mrf.mxu0  ;;  %v8179_v46 = vpop.permute.xlu1 %3650 }
 0x526   :  { %v3900_v21 = vadd.f32 %v8105_v48, %v3899_v45  ;;  %v4016_v39 = vadd.f32 %v3908_v44, %v3735_v59  ;;  %v3740_v59 = vadd.f32 %v3708_v49, %v3543_v30 }
 0x527   :  { %v5560_v35 = vpop.f32.mrf.mxu0 }
 0x528   :  { %v3911_v24 = vadd.f32 %v5560_v35, %v8105_v48  ;;  %v4014_v2 = vadd.f32 %v3900_v21, %v3733_v11  ;;  %v4080_v51 = vmul.f32 0.01, %v4016_v39  ;;  %vm4048_vm10 = vcmp.gt.f32.partialorder %v4016_v39, 0.0  ;;  %v3441_v18 = vpop.permute.xlu0 %3440 }
 0x529   :  { %v3902_v27 = vpop.f32.mrf.mxu0 }
 0x52a   :  { %v4017_v47 = vadd.f32 %v3911_v24, %v3736_v32  ;;  %v3903_v42 = vadd.f32 %v8105_v48, %v3902_v27  ;;  %v4078_v7 = vmul.f32 0.01, %v4014_v2  ;;  %vm4046_vm9 = vcmp.gt.f32.partialorder %v4014_v2, 0.0 }
 0x52b   :  { %v4112_v23 = vsel %vm4048_vm10, %v4016_v39, %v4080_v51  ;;  %v3738_v32 = vadd.f32 %v3706_v12, %v3541_v54  ;;  %v3546_v51 = vmul.f32 %v8093_v29, %v3441_v18  ;;  %v3716_v18 = vmul.f32 %v8088_v4, %v8154_v17 }
 0x52c   :  { %v4081_v15 = vmul.f32 0.01, %v4017_v47  ;;  %vm4049_vm8 = vcmp.gt.f32.partialorder %v4017_v47, 0.0  ;;  %v4015_v50 = vadd.f32 %v3903_v42, %v3734_v34  ;;  %v4110_v3 = vsel %vm4046_vm9, %v4014_v2, %v4078_v7 }
 0x52d   :  { %v3711_v42 = vmul.f32 %v8088_v4, %v8067_v28 }
 0x52e   :  { %vm4047_vm11 = vcmp.gt.f32.partialorder %v4015_v50, 0.0  ;;  %v4079_v61 = vmul.f32 0.01, %v4015_v50  ;;  %v4113_v53 = vsel %vm4049_vm8, %v4017_v47, %v4081_v15  ;;  %v8182_v47 = vpop.permute.xlu1 %3485  ;;  %v3544_v15 = vmul.f32 %v8093_v29, %v8069_v40 }
 0x52f   :  { %v4141_v56 = vpack.c.bf16 %v4113_v53, %v4112_v23  ;;  %v3712_v23 = vmul.f32 %v8088_v4, %v8083_v25  ;;  %v3743_v30 = vadd.f32 %v3711_v42, %v3546_v51  ;;  %v3715_v42 = vmul.f32 %v8088_v4, %v8071_v38 }
 0x530   :  { %v4111_v14 = vsel %vm4047_vm11, %v4015_v50, %v4079_v61  ;;  %v3709_v50 = vmul.f32 %v8088_v4, %v8073_v8 }
 0x531   :  { %v4140_v0 = vpack.c.bf16 %v4111_v14, %v4110_v3  ;;  %v3547_v14 = vmul.f32 %v8093_v29, %v8081_v10 }
 0x532   :  { %v3741_v43 = vadd.f32 %v3709_v50, %v3544_v15  ;;  %v8200_v58 = vpop.permute.xlu1 %3658  ;;  %v3551_v15 = vmul.f32 %v8093_v29, %v8139_v62 }
 0x533   :  { %5605 = vmatprep.mubr.bf16.mxu1 %v4140_v0  ;;  %v3744_v25 = vadd.f32 %v3712_v23, %v3547_v14 }
 0x534   :  { %v5563_v57 = vpop.f32.mrf.mxu0  ;;  %5606 = vmatmul.mubr.bf16.gmra.mxu1 %v4141_v56 }
 0x535   :  { %v3924_v9 = vadd.f32 %v5563_v57, %v8105_v48  ;;  %v3545_v57 = vmul.f32 %v8093_v29, %v3436_v33 }
 0x536   :  { %v3915_v19 = vpop.f32.mrf.mxu0 }
 0x537   :  { %v3916_v36 = vadd.f32 %v8105_v48, %v3915_v19  ;;  %v4020_v6 = vadd.f32 %v3924_v9, %v3739_v37  ;;  %v3456_v37 = vpop.permute.xlu0 %3455 }
 0x538   :  { %v5564_v45 = vpop.f32.mrf.mxu0  ;;  %v3549_v38 = vmul.f32 %v8093_v29, %v3456_v37  ;;  %v3555_v37 = vmul.f32 %v8093_v29, %v8182_v47 }
 0x539   :  { %v3927_v44 = vadd.f32 %v5564_v45, %v8105_v48  ;;  %v4018_v21 = vadd.f32 %v3916_v36, %v3737_v52  ;;  %v4084_v39 = vmul.f32 0.01, %v4020_v6  ;;  %vm4052_vm14 = vcmp.gt.f32.partialorder %v4020_v6, 0.0  ;;  %v8204_v45 = vpop.permute.xlu1 %3490 }
 0x53a   :  { %v3918_v11 = vpop.f32.mrf.mxu0  ;;  %v3742_v52 = vadd.f32 %v3710_v5, %v3545_v57 }
 0x53b   :  { %v4021_v35 = vadd.f32 %v3927_v44, %v3740_v59  ;;  %v3919_v24 = vadd.f32 %v8105_v48, %v3918_v11  ;;  %v4082_v27 = vmul.f32 0.01, %v4018_v21  ;;  %vm4050_vm13 = vcmp.gt.f32.partialorder %v4018_v21, 0.0 }
 0x53c   :  { %v4116_v28 = vsel %vm4052_vm14, %v4020_v6, %v4084_v39  ;;  %v3461_v39 = vpop.permute.xlu0 %3460 }
 0x53d   :  { %v4085_v2 = vmul.f32 0.01, %v4021_v35  ;;  %vm4053_vm12 = vcmp.gt.f32.partialorder %v4021_v35, 0.0  ;;  %v4019_v26 = vadd.f32 %v3919_v24, %v3738_v32  ;;  %v4114_v53 = vsel %vm4050_vm13, %v4018_v21, %v4082_v27  ;;  %v8206_v24 = vpop.permute.xlu1 %3662 }
 0x53e   :  { %v3548_v27 = vmul.f32 %v8093_v29, %v8095_v60 }
 0x53f   :  { %vm4051_vm0 = vcmp.gt.f32.partialorder %v4019_v26, 0.0  ;;  %v4083_v34 = vmul.f32 0.01, %v4019_v26  ;;  %v4117_v7 = vsel %vm4053_vm12, %v4021_v35, %v4085_v2 }
 0x540   :  { %v4143_v22 = vpack.c.bf16 %v4117_v7, %v4116_v28  ;;  %v3550_v7 = vmul.f32 %v8093_v29, %v3461_v39 }
 0x541   :  { %v4115_v3 = vsel %vm4051_vm0, %v4019_v26, %v4083_v34  ;;  %v3713_v26 = vmul.f32 %v8088_v4, %v8118_v63  ;;  %v8224_v14 = vpop.permute.xlu1 %3666 }
 0x542   :  { %v5567_v61 = vpop.f32.mrf.mxu0  ;;  %v4142_v0 = vpack.c.bf16 %v4115_v3, %v4114_v53  ;;  %v3748_v3 = vadd.f32 %v3716_v18, %v3551_v15  ;;  %v3747_v62 = vadd.f32 %v3715_v42, %v3550_v7 }
 0x543   :  { %v3940_v56 = vadd.f32 %v5567_v61, %v8105_v48  ;;  %v3745_v51 = vadd.f32 %v3713_v26, %v3548_v27  ;;  %v3714_v61 = vmul.f32 %v8088_v4, %v8128_v20  ;;  %v5939_v27 = vld [vmem:[%s8579_s15 + $0x10] sm:$0xff]  }
 0x544   :  { %v3931_v40 = vpop.f32.mrf.mxu0  ;;  %5609 = vmatprep.mubr.bf16.mxu1 %v4142_v0  ;;  %5643 = vmatprep.subr.bf16.mxu0 %v5939_v27 }
 0x545   :  { %v3932_v8 = vadd.f32 %v8105_v48, %v3931_v40  ;;  %5610 = vmatmul.mubr.bf16.gmra.mxu1 %v4143_v22  ;;  %v4024_v9 = vadd.f32 %v3940_v56, %v3743_v30  ;;  %v3746_v40 = vadd.f32 %v3714_v61, %v3549_v38  ;;  %v8228_v57 = vpop.permute.xlu1 %3505  ;;  %5644 = vmatpush3.bf16.msra.mxu0 %v5939_v27 }
 0x546   :  { %v5568_v10 = vpop.f32.mrf.mxu0 }
 0x547   :  { %v3943_v49 = vadd.f32 %v5568_v10, %v8105_v48  ;;  %v4022_v13 = vadd.f32 %v3932_v8, %v3741_v43  ;;  %v4088_v44 = vmul.f32 0.01, %v4024_v9  ;;  %vm4056_vm5 = vcmp.gt.f32.partialorder %v4024_v9, 0.0  ;;  %v3476_v8 = vpop.permute.xlu0 %3475 }
 0x548   :  { %v3934_v19 = vpop.f32.mrf.mxu0 }
 0x549   :  { %v4025_v36 = vadd.f32 %v3943_v49, %v3744_v25  ;;  %v3935_v12 = vadd.f32 %v8105_v48, %v3934_v19  ;;  %v4086_v55 = vmul.f32 0.01, %v4022_v13  ;;  %vm4054_vm2 = vcmp.gt.f32.partialorder %v4022_v13, 0.0 }
 0x54a   :  { %v4120_v35 = vsel %vm4056_vm5, %v4024_v9, %v4088_v44  ;;  %v3719_v49 = vmul.f32 %v8088_v4, %v8075_v41  ;;  %v3552_v9 = vmul.f32 %v8093_v29, %v8158_v31  ;;  %v3720_v41 = vmul.f32 %v8088_v4, %v8200_v58 }
 0x54b   :  { %v4089_v54 = vmul.f32 0.01, %v4025_v36  ;;  %vm4057_vm1 = vcmp.gt.f32.partialorder %v4025_v36, 0.0  ;;  %v4023_v59 = vadd.f32 %v3935_v12, %v3742_v52  ;;  %v4118_v33 = vsel %vm4054_vm2, %v4022_v13, %v4086_v55  ;;  %v3481_v52 = vpop.permute.xlu0 %3480 }
 0x54d   :  { %vm4055_vm3 = vcmp.gt.f32.partialorder %v4023_v59, 0.0  ;;  %v4087_v21 = vmul.f32 0.01, %v4023_v59  ;;  %v4121_v11 = vsel %vm4057_vm1, %v4025_v36, %v4089_v54  ;;  %v3717_v36 = vmul.f32 %v8088_v4, %v8164_v16 }
 0x54e   :  { %v4145_v2 = vpack.c.bf16 %v4121_v11, %v4120_v35  ;;  %v3718_v35 = vmul.f32 %v8088_v4, %v8179_v46 }
 0x54f   :  { %v4119_v6 = vsel %vm4055_vm3, %v4023_v59, %v4087_v21  ;;  %v3554_v59 = vmul.f32 %v8093_v29, %v3481_v52  ;;  %v3675_v21 = vpop.permute.xlu1 %3674  ;;  %v3496_v18 = vpop.permute.xlu0 %3495 }
 0x550   :  { %v4144_v32 = vpack.c.bf16 %v4119_v6, %v4118_v33  ;;  %v3749_v33 = vadd.f32 %v3717_v36, %v3552_v9  ;;  %v3553_v6 = vmul.f32 %v8093_v29, %v3476_v8  ;;  %v3721_v8 = vmul.f32 %v8088_v4, %v8206_v24 }
 0x551   :  { %v3751_v47 = vadd.f32 %v3719_v49, %v3554_v59 }
 0x552   :  { %5613 = vmatprep.mubr.bf16.mxu1 %v4144_v32  ;;  %v3750_v15 = vadd.f32 %v3718_v35, %v3553_v6 }
 0x553   :  { %v5571_v34 = vpop.f32.mrf.mxu0  ;;  %5614 = vmatmul.mubr.bf16.gmra.mxu1 %v4145_v2  ;;  %v3752_v2 = vadd.f32 %v3720_v41, %v3555_v37  ;;  %v8250_v7 = vpop.permute.xlu1 %3510 }
 0x554   :  { %v3956_v60 = vadd.f32 %v5571_v34, %v8105_v48 }
 0x555   :  { %v3947_v50 = vpop.f32.mrf.mxu0 }
 0x556   :  { %v3948_v63 = vadd.f32 %v8105_v48, %v3947_v50  ;;  %v4028_v0 = vadd.f32 %v3956_v60, %v3747_v62  ;;  %v5940_v60 = vld [vmem:[%s8579_s15 + $0x8] sm:$0xff]   ;;  %v3501_v62 = vpop.permute.xlu0 %3500 }
 0x557   :  { %v5572_v53 = vpop.f32.mrf.mxu0  ;;  %5645 = vmatprep.subr.bf16.mxu0 %v5940_v60 }
 0x558   :  { %v3959_v17 = vadd.f32 %v5572_v53, %v8105_v48  ;;  %v4026_v23 = vadd.f32 %v3948_v63, %v3745_v51  ;;  %v4092_v10 = vmul.f32 0.01, %v4028_v0  ;;  %vm4060_vm6 = vcmp.gt.f32.partialorder %v4028_v0, 0.0  ;;  %5646 = vmatpush3.bf16.msra.mxu0 %v5940_v60  ;;  %v5941_v53 = vld [vmem:[%s8579_s15] sm:$0xff]  }
 0x559   :  { %v3950_v28 = vpop.f32.mrf.mxu0  ;;  %5647 = vmatprep.subr.bf16.mxu0 %v5941_v53 }
 0x55a   :  { %v4029_v22 = vadd.f32 %v3959_v17, %v3748_v3  ;;  %v3951_v56 = vadd.f32 %v8105_v48, %v3950_v28  ;;  %v4090_v5 = vmul.f32 0.01, %v4026_v23  ;;  %vm4058_vm4 = vcmp.gt.f32.partialorder %v4026_v23, 0.0  ;;  %v3679_v17 = vpop.permute.xlu1 %3678 }
 0x55b   :  { %v4124_v12 = vsel %vm4060_vm6, %v4028_v0, %v4092_v10  ;;  %v3559_v10 = vmul.f32 %v8093_v29, %v8228_v57 }
 0x55c   :  { %v4093_v43 = vmul.f32 0.01, %v4029_v22  ;;  %vm4061_vm15 = vcmp.gt.f32.partialorder %v4029_v22, 0.0  ;;  %v4027_v20 = vadd.f32 %v3951_v56, %v3746_v40  ;;  %v4122_v13 = vsel %vm4058_vm4, %v4026_v23, %v4090_v5  ;;  %5648 = vmatpush3.bf16.msra.mxu0 %v5941_v53 }
 0x55d   :  { %v3556_v56 = vmul.f32 %v8093_v29, %v8204_v45  ;;  %v3723_v5 = vmul.f32 %v8088_v4, %v8079_v1  ;;  %v3722_v1 = vmul.f32 %v8088_v4, %v8224_v14 }
 0x55e   :  { %vm4059_vm7 = vcmp.gt.f32.partialorder %v4027_v20, 0.0  ;;  %v4091_v25 = vmul.f32 0.01, %v4027_v20  ;;  %v4125_v30 = vsel %vm4061_vm15, %v4029_v22, %v4093_v43 }
 0x55f   :  { %v4147_v44 = vpack.c.bf16 %v4125_v30, %v4124_v12  ;;  %v3516_v30 = vpop.permute.xlu0 %3515  ;;  %v3753_v9 = vadd.f32 %v3721_v8, %v3556_v56 }
 0x560   :  { %v4123_v19 = vsel %vm4059_vm7, %v4027_v20, %v4091_v25  ;;  %v3558_v20 = vmul.f32 %v8093_v29, %v3501_v62  ;;  %v3724_v25 = vmul.f32 %v8088_v4, %v3675_v21 }
 0x561   :  { %v4146_v55 = vpack.c.bf16 %v4123_v19, %v4122_v13  ;;  %v3683_v13 = vpop.permute.xlu1 %3682  ;;  %v3557_v19 = vmul.f32 %v8093_v29, %v3496_v18 }
 0x562   :  { %v5575_v54 = vpop.f32.mrf.mxu0  ;;  %v3755_v52 = vadd.f32 %v3723_v5, %v3558_v20  ;;  %v3756_v12 = vadd.f32 %v3724_v25, %v3559_v10  ;;  %v3726_v53 = vmul.f32 %v8088_v4, %v3683_v13 }
 0x563   :  { %5617 = vmatprep.mubr.bf16.mxu1 %v4146_v55  ;;  %v3972_v31 = vadd.f32 %v5575_v54, %v8105_v48  ;;  %v3521_v59 = vpop.permute.xlu0 %3520  ;;  %v3754_v21 = vadd.f32 %v3722_v1, %v3557_v19 }
 0x564   :  { %v3963_v11 = vpop.f32.mrf.mxu0  ;;  %5618 = vmatmul.mubr.bf16.gmra.mxu1 %v4147_v44 }
 0x565   :  { %v3964_v16 = vadd.f32 %v8105_v48, %v3963_v11  ;;  %v4032_v34 = vadd.f32 %v3972_v31, %v3751_v47  ;;  %v3526_v44 = vpop.permute.xlu1 %3525 }
 0x566   :  { %v5576_v32 = vpop.f32.mrf.mxu0 }
 0x567   :  { %v3975_v58 = vadd.f32 %v5576_v32, %v8105_v48  ;;  %v4030_v26 = vadd.f32 %v3964_v16, %v3749_v33  ;;  %v4096_v61 = vmul.f32 0.01, %v4032_v34  ;;  %vm4064_vm10 = vcmp.gt.f32.partialorder %v4032_v34, 0.0  ;;  %v3687_v35 = vpop.permute.xlu0 %3686 }
 0x568   :  { %v3966_v39 = vpop.f32.mrf.mxu0  ;;  %v3727_v18 = vmul.f32 %v8088_v4, %v3687_v35 }
 0x569   :  { %v4033_v42 = vadd.f32 %v3975_v58, %v3752_v2  ;;  %v3967_v46 = vadd.f32 %v8105_v48, %v3966_v39  ;;  %v4094_v63 = vmul.f32 0.01, %v4030_v26  ;;  %vm4062_vm9 = vcmp.gt.f32.partialorder %v4030_v26, 0.0  ;;  %v3691_v47 = vpop.permute.xlu1 %3690 }
 0x56a   :  { %v4128_v0 = vsel %vm4064_vm10, %v4032_v34, %v4096_v61  ;;  %v3560_v2 = vmul.f32 %v8093_v29, %v8250_v7  ;;  %v3725_v39 = vmul.f32 %v8088_v4, %v3679_v17  ;;  %v3561_v61 = vmul.f32 %v8093_v29, %v3516_v30 }
 0x56b   :  { %v4097_v50 = vmul.f32 0.01, %v4033_v42  ;;  %vm4065_vm8 = vcmp.gt.f32.partialorder %v4033_v42, 0.0  ;;  %v4031_v51 = vadd.f32 %v3967_v46, %v3750_v15  ;;  %v4126_v23 = vsel %vm4062_vm9, %v4030_v26, %v4094_v63 }
 0x56c   :  { %v3562_v26 = vmul.f32 %v8093_v29, %v3521_v59  ;;  %v3563_v46 = vmul.f32 %v8093_v29, %v3526_v44  ;;  %v3758_v56 = vadd.f32 %v3726_v53, %v3561_v61 }
 0x56d   :  { %vm4063_vm11 = vcmp.gt.f32.partialorder %v4031_v51, 0.0  ;;  %v4095_v38 = vmul.f32 0.01, %v4031_v51  ;;  %v4129_v3 = vsel %vm4065_vm8, %v4033_v42, %v4097_v50  ;;  %v3728_v50 = vmul.f32 %v8088_v4, %v3691_v47 }
 0x56e   :  { %v4149_v40 = vpack.c.bf16 %v4129_v3, %v4128_v0  ;;  %v3759_v62 = vadd.f32 %v3727_v18, %v3562_v26 }
 0x56f   :  { %v4127_v28 = vsel %vm4063_vm11, %v4031_v51, %v4095_v38  ;;  %v3757_v38 = vadd.f32 %v3725_v39, %v3560_v2  ;;  %v3760_v17 = vadd.f32 %v3728_v50, %v3563_v46 }
 0x570   :  { %v4148_v22 = vpack.c.bf16 %v4127_v28, %v4126_v23 }
 0x572   :  { %5621 = vmatprep.mubr.bf16.mxu1 %v4148_v22 }
 0x573   :  { %v5579_v43 = vpop.f32.mrf.mxu0  ;;  %5622 = vmatmul.mubr.bf16.gmra.mxu1 %v4149_v40 }
 0x574   :  { %v3988_v45 = vadd.f32 %v5579_v43, %v8105_v48 }
 0x575   :  { %v3979_v49 = vpop.f32.mrf.mxu0 }
 0x576   :  { %v3980_v24 = vadd.f32 %v8105_v48, %v3979_v49  ;;  %v4036_v37 = vadd.f32 %v3988_v45, %v3755_v52 }
 0x577   :  { %v5580_v36 = vpop.f32.mrf.mxu0 }
 0x578   :  { %v3991_v57 = vadd.f32 %v5580_v36, %v8105_v48  ;;  %v4034_v54 = vadd.f32 %v3980_v24, %v3753_v9  ;;  %v4100_v6 = vmul.f32 0.01, %v4036_v37  ;;  %vm4068_vm14 = vcmp.gt.f32.partialorder %v4036_v37, 0.0 }
 0x579   :  { %v3982_v55 = vpop.f32.mrf.mxu0 }
 0x57a   :  { %v4037_v41 = vadd.f32 %v3991_v57, %v3756_v12  ;;  %v3983_v11 = vadd.f32 %v8105_v48, %v3982_v55  ;;  %v4098_v16 = vmul.f32 0.01, %v4034_v54  ;;  %vm4066_vm13 = vcmp.gt.f32.partialorder %v4034_v54, 0.0 }
 0x57b   :  { %v4132_v34 = vsel %vm4068_vm14, %v4036_v37, %v4100_v6 }
 0x57c   :  { %v4101_v31 = vmul.f32 0.01, %v4037_v41  ;;  %vm4069_vm12 = vcmp.gt.f32.partialorder %v4037_v41, 0.0  ;;  %v4035_v33 = vadd.f32 %v3983_v11, %v3754_v21  ;;  %v4130_v58 = vsel %vm4066_vm13, %v4034_v54, %v4098_v16 }
 0x57e   :  { %vm4067_vm0 = vcmp.gt.f32.partialorder %v4035_v33, 0.0  ;;  %v4099_v14 = vmul.f32 0.01, %v4035_v33  ;;  %v4133_v32 = vsel %vm4069_vm12, %v4037_v41, %v4101_v31 }
 0x57f   :  { %v4151_v60 = vpack.c.bf16 %v4133_v32, %v4132_v34 }
 0x580   :  { %v4131_v27 = vsel %vm4067_vm0, %v4035_v33, %v4099_v14 }
 0x581   :  { %v4150_v15 = vpack.c.bf16 %v4131_v27, %v4130_v58 }
 0x582   :  { %v5583_v42 = vpop.f32.mrf.mxu0 }
 0x583   :  { %5625 = vmatprep.mubr.bf16.mxu1 %v4150_v15  ;;  %v4004_v7 = vadd.f32 %v5583_v42, %v8105_v48 }
 0x584   :  { %v3995_v63 = vpop.f32.mrf.mxu0  ;;  %5626 = vmatmul.mubr.bf16.gmra.mxu1 %v4151_v60 }
 0x585   :  { %v3996_v51 = vadd.f32 %v8105_v48, %v3995_v63  ;;  %v4040_v22 = vadd.f32 %v4004_v7, %v3759_v62 }
 0x586   :  { %v5584_v3 = vpop.f32.mrf.mxu0 }
 0x587   :  { %v4007_v23 = vadd.f32 %v5584_v3, %v8105_v48  ;;  %v4038_v28 = vadd.f32 %v3996_v51, %v3757_v38  ;;  %v4104_v29 = vmul.f32 0.01, %v4040_v22  ;;  %vm4072_vm5 = vcmp.gt.f32.partialorder %v4040_v22, 0.0 }
 0x588   :  { %v3998_v0 = vpop.f32.mrf.mxu0 }
 0x589   :  { %v4041_v40 = vadd.f32 %v4007_v23, %v3760_v17  ;;  %v3999_v8 = vadd.f32 %v8105_v48, %v3998_v0  ;;  %v4102_v5 = vmul.f32 0.01, %v4038_v28  ;;  %vm4070_vm2 = vcmp.gt.f32.partialorder %v4038_v28, 0.0  ;;  %v8292_v48 = vld [vmem:[%s8580_s14] ss:$0 sm:$0xff] }
 0x58a   :  { %v4136_v49 = vsel %vm4072_vm5, %v4040_v22, %v4104_v29 }
 0x58b   :  { %v4105_v43 = vmul.f32 0.01, %v4041_v40  ;;  %vm4073_vm1 = vcmp.gt.f32.partialorder %v4041_v40, 0.0  ;;  %v4039_v20 = vadd.f32 %v3999_v8, %v3758_v56  ;;  %v4134_v25 = vsel %vm4070_vm2, %v4038_v28, %v4102_v5 }
 0x58d   :  { %vm4071_vm3 = vcmp.gt.f32.partialorder %v4039_v20, 0.0  ;;  %v4103_v4 = vmul.f32 0.01, %v4039_v20  ;;  %v4137_v10 = vsel %vm4073_vm1, %v4041_v40, %v4105_v43 }
 0x58e   :  { %v4153_v45 = vpack.c.bf16 %v4137_v10, %v4136_v49 }
 0x58f   :  { %v4135_v30 = vsel %vm4071_vm3, %v4039_v20, %v4103_v4 }
 0x590   :  { %v4152_v13 = vpack.c.bf16 %v4135_v30, %v4134_v25 }
 0x592   :  { %5629 = vmatprep.mubr.bf16.mxu1 %v4152_v13 }
 0x593   :  { %5630 = vmatmul.mubr.bf16.gmra.mxu1 %v4153_v45 }
 0x5e3   :  { %v5603_v24 = vpop.f32.mrf.mxu1 }
 0x5e4   :  { %v4268_v1 = vadd.f32 %v5603_v24, %v8292_v48 }
 0x5e5   :  { %v4259_v19 = vpop.f32.mrf.mxu1 }
 0x5e6   :  { %v4260_v9 = vadd.f32 %v8292_v48, %v4259_v19  ;;  %v4420_v59 = vmul.f32 0.01, %v4268_v1  ;;  %vm4388_vm6 = vcmp.gt.f32.partialorder %v4268_v1, 0.0 }
 0x5e7   :  { %v5604_v36 = vpop.f32.mrf.mxu1 }
 0x5e8   :  { %v4271_v52 = vadd.f32 %v5604_v36, %v8292_v48  ;;  %v4418_v57 = vmul.f32 0.01, %v4260_v9  ;;  %vm4386_vm4 = vcmp.gt.f32.partialorder %v4260_v9, 0.0  ;;  %v4452_v11 = vsel %vm4388_vm6, %v4268_v1, %v4420_v59 }
 0x5e9   :  { %v4262_v12 = vpop.f32.mrf.mxu1 }
 0x5ea   :  { %vm4389_vm15 = vcmp.gt.f32.partialorder %v4271_v52, 0.0  ;;  %v4421_v54 = vmul.f32 0.01, %v4271_v52  ;;  %v4263_v55 = vadd.f32 %v8292_v48, %v4262_v12  ;;  %v4450_v44 = vsel %vm4386_vm4, %v4260_v9, %v4418_v57 }
 0x5ec   :  { %vm4387_vm7 = vcmp.gt.f32.partialorder %v4263_v55, 0.0  ;;  %v4419_v37 = vmul.f32 0.01, %v4263_v55  ;;  %v4453_v41 = vsel %vm4389_vm15, %v4271_v52, %v4421_v54 }
 0x5ed   :  { %v4483_v16 = vpack.c.bf16 %v4453_v41, %v4452_v11 }
 0x5ee   :  { %v4451_v21 = vsel %vm4387_vm7, %v4263_v55, %v4419_v37 }
 0x5ef   :  { %v4482_v31 = vpack.c.bf16 %v4451_v21, %v4450_v44 }
 0x5f1   :  { %5649 = vmatprep.mubr.bf16.mxu0 %v4482_v31 }
 0x5f2   :  { %5650 = vmatmul.mubr.bf16.vlgmr.msra.gmra.mxu0 %v4483_v16 }
 0x5f4   :  { %v5607_v33 = vpop.f32.mrf.mxu1 }
 0x5f5   :  { %v4284_v35 = vadd.f32 %v5607_v33, %v8292_v48 }
 0x5f6   :  { %v4275_v6 = vpop.f32.mrf.mxu1 }
 0x5f7   :  { %v4276_v14 = vadd.f32 %v8292_v48, %v4275_v6  ;;  %v4424_v39 = vmul.f32 0.01, %v4284_v35  ;;  %vm4392_vm10 = vcmp.gt.f32.partialorder %v4284_v35, 0.0 }
 0x5f8   :  { %v5608_v32 = vpop.f32.mrf.mxu1 }
 0x5f9   :  { %v4287_v47 = vadd.f32 %v5608_v32, %v8292_v48  ;;  %v4422_v58 = vmul.f32 0.01, %v4276_v14  ;;  %vm4390_vm9 = vcmp.gt.f32.partialorder %v4276_v14, 0.0  ;;  %v4456_v46 = vsel %vm4392_vm10, %v4284_v35, %v4424_v39 }
 0x5fa   :  { %v4278_v2 = vpop.f32.mrf.mxu1 }
 0x5fb   :  { %vm4393_vm8 = vcmp.gt.f32.partialorder %v4287_v47, 0.0  ;;  %v4425_v27 = vmul.f32 0.01, %v4287_v47  ;;  %v4279_v26 = vadd.f32 %v8292_v48, %v4278_v2  ;;  %v4454_v15 = vsel %vm4390_vm9, %v4276_v14, %v4422_v58 }
 0x5fd   :  { %vm4391_vm11 = vcmp.gt.f32.partialorder %v4279_v26, 0.0  ;;  %v4423_v34 = vmul.f32 0.01, %v4279_v26  ;;  %v4457_v42 = vsel %vm4393_vm8, %v4287_v47, %v4425_v27 }
 0x5fe   :  { %v4485_v60 = vpack.c.bf16 %v4457_v42, %v4456_v46 }
 0x5ff   :  { %v4455_v18 = vsel %vm4391_vm11, %v4279_v26, %v4423_v34 }
 0x600   :  { %v4484_v50 = vpack.c.bf16 %v4455_v18, %v4454_v15 }
 0x602   :  { %5653 = vmatprep.mubr.bf16.mxu0 %v4484_v50 }
 0x603   :  { %5654 = vmatmul.mubr.bf16.gmra.mxu0 %v4485_v60 }
 0x605   :  { %v5611_v63 = vpop.f32.mrf.mxu1 }
 0x606   :  { %v4300_v61 = vadd.f32 %v5611_v63, %v8292_v48 }
 0x607   :  { %v4291_v7 = vpop.f32.mrf.mxu1 }
 0x608   :  { %v4292_v51 = vadd.f32 %v8292_v48, %v4291_v7  ;;  %v4428_v28 = vmul.f32 0.01, %v4300_v61  ;;  %vm4396_vm14 = vcmp.gt.f32.partialorder %v4300_v61, 0.0 }
 0x609   :  { %v5612_v38 = vpop.f32.mrf.mxu1 }
 0x60a   :  { %v4303_v53 = vadd.f32 %v5612_v38, %v8292_v48  ;;  %v4426_v62 = vmul.f32 0.01, %v4292_v51  ;;  %vm4394_vm13 = vcmp.gt.f32.partialorder %v4292_v51, 0.0  ;;  %v4460_v8 = vsel %vm4396_vm14, %v4300_v61, %v4428_v28 }
 0x60b   :  { %v4294_v3 = vpop.f32.mrf.mxu1 }
 0x60c   :  { %vm4397_vm12 = vcmp.gt.f32.partialorder %v4303_v53, 0.0  ;;  %v4429_v17 = vmul.f32 0.01, %v4303_v53  ;;  %v4295_v23 = vadd.f32 %v8292_v48, %v4294_v3  ;;  %v4458_v40 = vsel %vm4394_vm13, %v4292_v51, %v4426_v62 }
 0x60e   :  { %vm4395_vm0 = vcmp.gt.f32.partialorder %v4295_v23, 0.0  ;;  %v4427_v0 = vmul.f32 0.01, %v4295_v23  ;;  %v4461_v22 = vsel %vm4397_vm12, %v4303_v53, %v4429_v17 }
 0x60f   :  { %v4487_v5 = vpack.c.bf16 %v4461_v22, %v4460_v8 }
 0x610   :  { %v4459_v56 = vsel %vm4395_vm0, %v4295_v23, %v4427_v0 }
 0x611   :  { %v4486_v43 = vpack.c.bf16 %v4459_v56, %v4458_v40 }
 0x613   :  { %5657 = vmatprep.mubr.bf16.mxu0 %v4486_v43  ;;  %v5615_v20 = vpop.f32.mrf.mxu1 }
 0x614   :  { %5658 = vmatmul.mubr.bf16.gmra.mxu0 %v4487_v5  ;;  %v4316_v10 = vadd.f32 %v5615_v20, %v8292_v48 }
 0x615   :  { %v4307_v29 = vpop.f32.mrf.mxu1 }
 0x616   :  { %v4308_v4 = vadd.f32 %v8292_v48, %v4307_v29  ;;  %v4432_v19 = vmul.f32 0.01, %v4316_v10  ;;  %vm4400_vm5 = vcmp.gt.f32.partialorder %v4316_v10, 0.0 }
 0x617   :  { %v5616_v25 = vpop.f32.mrf.mxu1 }
 0x618   :  { %v4319_v30 = vadd.f32 %v5616_v25, %v8292_v48  ;;  %v4430_v13 = vmul.f32 0.01, %v4308_v4  ;;  %vm4398_vm2 = vcmp.gt.f32.partialorder %v4308_v4, 0.0  ;;  %v4464_v12 = vsel %vm4400_vm5, %v4316_v10, %v4432_v19 }
 0x619   :  { %v4310_v49 = vpop.f32.mrf.mxu1 }
 0x61a   :  { %vm4401_vm1 = vcmp.gt.f32.partialorder %v4319_v30, 0.0  ;;  %v4433_v45 = vmul.f32 0.01, %v4319_v30  ;;  %v4311_v24 = vadd.f32 %v8292_v48, %v4310_v49  ;;  %v4462_v36 = vsel %vm4398_vm2, %v4308_v4, %v4430_v13 }
 0x61c   :  { %vm4399_vm3 = vcmp.gt.f32.partialorder %v4311_v24, 0.0  ;;  %v4431_v9 = vmul.f32 0.01, %v4311_v24  ;;  %v4465_v1 = vsel %vm4401_vm1, %v4319_v30, %v4433_v45 }
 0x61d   :  { %v4489_v54 = vpack.c.bf16 %v4465_v1, %v4464_v12 }
 0x61e   :  { %v4463_v52 = vsel %vm4399_vm3, %v4311_v24, %v4431_v9 }
 0x61f   :  { %v4488_v57 = vpack.c.bf16 %v4463_v52, %v4462_v36 }
 0x621   :  { %5661 = vmatprep.mubr.bf16.mxu0 %v4488_v57 }
 0x622   :  { %5662 = vmatmul.mubr.bf16.gmra.mxu0 %v4489_v54 }
 0x624   :  { %v5619_v55 = vpop.f32.mrf.mxu1 }
 0x625   :  { %v4332_v41 = vadd.f32 %v5619_v55, %v8292_v48 }
 0x626   :  { %v4323_v59 = vpop.f32.mrf.mxu1 }
 0x627   :  { %v4324_v37 = vadd.f32 %v8292_v48, %v4323_v59  ;;  %v4436_v6 = vmul.f32 0.01, %v4332_v41  ;;  %vm4404_vm6 = vcmp.gt.f32.partialorder %v4332_v41, 0.0 }
 0x628   :  { %v5620_v44 = vpop.f32.mrf.mxu1 }
 0x629   :  { %v4335_v21 = vadd.f32 %v5620_v44, %v8292_v48  ;;  %v4434_v31 = vmul.f32 0.01, %v4324_v37  ;;  %vm4402_vm4 = vcmp.gt.f32.partialorder %v4324_v37, 0.0  ;;  %v4468_v2 = vsel %vm4404_vm6, %v4332_v41, %v4436_v6 }
 0x62a   :  { %v4326_v11 = vpop.f32.mrf.mxu1 }
 0x62b   :  { %vm4405_vm15 = vcmp.gt.f32.partialorder %v4335_v21, 0.0  ;;  %v4437_v16 = vmul.f32 0.01, %v4335_v21  ;;  %v4327_v33 = vadd.f32 %v8292_v48, %v4326_v11  ;;  %v4466_v32 = vsel %vm4402_vm4, %v4324_v37, %v4434_v31 }
 0x62d   :  { %vm4403_vm7 = vcmp.gt.f32.partialorder %v4327_v33, 0.0  ;;  %v4435_v14 = vmul.f32 0.01, %v4327_v33  ;;  %v4469_v35 = vsel %vm4405_vm15, %v4335_v21, %v4437_v16 }
 0x62e   :  { %v4491_v27 = vpack.c.bf16 %v4469_v35, %v4468_v2  ;;  %v24_v2 = vstv %s8583_s18 }
 0x62f   :  { %v4467_v47 = vsel %vm4403_vm7, %v4327_v33, %v4435_v14  ;;  %v8329_v33 = vld [vmem:[%s8581_s16] ss:$0 sm:$0xff]  ;;  %25 = vst [vmem:[#allocation2] sm:$0x1] %v24_v2 }
 0x630   :  { %v4490_v58 = vpack.c.bf16 %v4467_v47, %v4466_v32  ;;  %v8336_v47 = vld [vmem:[%s8582_s17] ss:$0 sm:$0xff] }
 0x632   :  { %5665 = vmatprep.mubr.bf16.mxu0 %v4490_v58 }
 0x633   :  { %5666 = vmatmul.mubr.bf16.gmra.mxu0 %v4491_v27  ;;  %v5623_v26 = vpop.f32.mrf.mxu1 }
 0x634   :  { %v4348_v42 = vadd.f32 %v5623_v26, %v8292_v48 }
 0x635   :  { %v4339_v39 = vpop.f32.mrf.mxu1 }
 0x636   :  { %v4340_v34 = vadd.f32 %v8292_v48, %v4339_v39  ;;  %v4440_v7 = vmul.f32 0.01, %v4348_v42  ;;  %vm4408_vm10 = vcmp.gt.f32.partialorder %v4348_v42, 0.0 }
 0x637   :  { %v5624_v15 = vpop.f32.mrf.mxu1 }
 0x638   :  { %v4351_v18 = vadd.f32 %v5624_v15, %v8292_v48  ;;  %v4438_v50 = vmul.f32 0.01, %v4340_v34  ;;  %vm4406_vm9 = vcmp.gt.f32.partialorder %v4340_v34, 0.0  ;;  %v4472_v3 = vsel %vm4408_vm10, %v4348_v42, %v4440_v7 }
 0x639   :  { %v4342_v46 = vpop.f32.mrf.mxu1 }
 0x63a   :  { %vm4409_vm8 = vcmp.gt.f32.partialorder %v4351_v18, 0.0  ;;  %v4441_v60 = vmul.f32 0.01, %v4351_v18  ;;  %v4343_v63 = vadd.f32 %v8292_v48, %v4342_v46  ;;  %v4470_v38 = vsel %vm4406_vm9, %v4340_v34, %v4438_v50 }
 0x63c   :  { %vm4407_vm11 = vcmp.gt.f32.partialorder %v4343_v63, 0.0  ;;  %v4439_v51 = vmul.f32 0.01, %v4343_v63  ;;  %v4473_v61 = vsel %vm4409_vm8, %v4351_v18, %v4441_v60 }
 0x63d   :  { %v4493_v17 = vpack.c.bf16 %v4473_v61, %v4472_v3 }
 0x63e   :  { %v4471_v53 = vsel %vm4407_vm11, %v4343_v63, %v4439_v51 }
 0x63f   :  { %v4492_v62 = vpack.c.bf16 %v4471_v53, %v4470_v38 }
 0x641   :  { %5669 = vmatprep.mubr.bf16.mxu0 %v4492_v62 }
 0x642   :  { %5670 = vmatmul.mubr.bf16.gmra.mxu0 %v4493_v17 }
 0x644   :  { %v5627_v23 = vpop.f32.mrf.mxu1 }
 0x645   :  { %v4364_v22 = vadd.f32 %v5627_v23, %v8292_v48 }
 0x646   :  { %v4355_v28 = vpop.f32.mrf.mxu1 }
 0x647   :  { %v4356_v0 = vadd.f32 %v8292_v48, %v4355_v28  ;;  %v4444_v29 = vmul.f32 0.01, %v4364_v22  ;;  %vm4412_vm14 = vcmp.gt.f32.partialorder %v4364_v22, 0.0 }
 0x648   :  { %v5628_v40 = vpop.f32.mrf.mxu1 }
 0x649   :  { %v4367_v56 = vadd.f32 %v5628_v40, %v8292_v48  ;;  %v4442_v43 = vmul.f32 0.01, %v4356_v0  ;;  %vm4410_vm13 = vcmp.gt.f32.partialorder %v4356_v0, 0.0  ;;  %v4476_v49 = vsel %vm4412_vm14, %v4364_v22, %v4444_v29 }
 0x64a   :  { %v4358_v8 = vpop.f32.mrf.mxu1 }
 0x64b   :  { %vm4413_vm12 = vcmp.gt.f32.partialorder %v4367_v56, 0.0  ;;  %v4445_v5 = vmul.f32 0.01, %v4367_v56  ;;  %v4359_v20 = vadd.f32 %v8292_v48, %v4358_v8  ;;  %v4474_v25 = vsel %vm4410_vm13, %v4356_v0, %v4442_v43 }
 0x64d   :  { %vm4411_vm0 = vcmp.gt.f32.partialorder %v4359_v20, 0.0  ;;  %v4443_v4 = vmul.f32 0.01, %v4359_v20  ;;  %v4477_v10 = vsel %vm4413_vm12, %v4367_v56, %v4445_v5 }
 0x64e   :  { %v4495_v45 = vpack.c.bf16 %v4477_v10, %v4476_v49 }
 0x64f   :  { %v4475_v30 = vsel %vm4411_vm0, %v4359_v20, %v4443_v4 }
 0x650   :  { %v4494_v13 = vpack.c.bf16 %v4475_v30, %v4474_v25 }
 0x652   :  { %5673 = vmatprep.mubr.bf16.mxu0 %v4494_v13 }
 0x653   :  { %5674 = vmatmul.mubr.bf16.gmra.mxu0 %v4495_v45  ;;  %v5631_v24 = vpop.f32.mrf.mxu1 }
 0x654   :  { %v4380_v1 = vadd.f32 %v5631_v24, %v8292_v48 }
 0x655   :  { %v4371_v19 = vpop.f32.mrf.mxu1 }
 0x656   :  { %v4372_v9 = vadd.f32 %v8292_v48, %v4371_v19  ;;  %v4448_v59 = vmul.f32 0.01, %v4380_v1  ;;  %vm4416_vm5 = vcmp.gt.f32.partialorder %v4380_v1, 0.0 }
 0x657   :  { %v5632_v36 = vpop.f32.mrf.mxu1 }
 0x658   :  { %v4383_v52 = vadd.f32 %v5632_v36, %v8292_v48  ;;  %v4446_v57 = vmul.f32 0.01, %v4372_v9  ;;  %vm4414_vm2 = vcmp.gt.f32.partialorder %v4372_v9, 0.0  ;;  %v4480_v11 = vsel %vm4416_vm5, %v4380_v1, %v4448_v59 }
 0x659   :  { %v4374_v12 = vpop.f32.mrf.mxu1 }
 0x65a   :  { %vm4417_vm1 = vcmp.gt.f32.partialorder %v4383_v52, 0.0  ;;  %v4449_v54 = vmul.f32 0.01, %v4383_v52  ;;  %v4375_v55 = vadd.f32 %v8292_v48, %v4374_v12  ;;  %v4478_v44 = vsel %vm4414_vm2, %v4372_v9, %v4446_v57 }
 0x65c   :  { %vm4415_vm3 = vcmp.gt.f32.partialorder %v4375_v55, 0.0  ;;  %v4447_v37 = vmul.f32 0.01, %v4375_v55  ;;  %v4481_v41 = vsel %vm4417_vm1, %v4383_v52, %v4449_v54 }
 0x65d   :  { %v4497_v16 = vpack.c.bf16 %v4481_v41, %v4480_v11 }
 0x65e   :  { %v4479_v21 = vsel %vm4415_vm3, %v4375_v55, %v4447_v37 }
 0x65f   :  { %v4496_v31 = vpack.c.bf16 %v4479_v21, %v4478_v44 }
 0x661   :  { %5677 = vmatprep.mubr.bf16.mxu0 %v4496_v31 }
 0x662   :  { %5678 = vmatmul.mubr.bf16.gmra.mxu0 %v4497_v16 }
 0x6b2   :  { %v5651_v6 = vpop.f32.mrf.mxu0 }
 0x6b3   :  { %v4612_v48 = vadd.f32 %v5651_v6, %v8329_v33 }
 0x6b4   :  { %v4603_v14 = vpop.f32.mrf.mxu0 }
 0x6b5   :  { %v4764_v35 = vmul.f32 0.01, %v4612_v48  ;;  %v4604_v32 = vadd.f32 %v8329_v33, %v4603_v14  ;;  %vm4732_vm15 = vcmp.gt.f32.partialorder %v4612_v48, 0.0 }
 0x6b6   :  { %v5652_v58 = vpop.f32.mrf.mxu0 }
 0x6b7   :  { %v4762_v27 = vmul.f32 0.01, %v4604_v32  ;;  %v4615_v26 = vadd.f32 %v5652_v58, %v8329_v33  ;;  %v4796_v39 = vsel %vm4732_vm15, %v4612_v48, %v4764_v35  ;;  %vm4730_vm4 = vcmp.gt.f32.partialorder %v4604_v32, 0.0 }
 0x6b8   :  { %v4606_v34 = vpop.f32.mrf.mxu0  ;;  %v4835_v42 = vmul.f32 %v8336_v47, %v4796_v39 }
 0x6b9   :  { %v4765_v15 = vmul.f32 0.01, %v4615_v26  ;;  %v4607_v18 = vadd.f32 %v8329_v33, %v4606_v34  ;;  %v4794_v46 = vsel %vm4730_vm4, %v4604_v32, %v4762_v27  ;;  %vm4733_vm6 = vcmp.gt.f32.partialorder %v4615_v26, 0.0 }
 0x6ba   :  { %4869 = vadd.xlane.f32.xlu0 %v4835_v42  ;;  %v4833_v50 = vmul.f32 %v8336_v47, %v4794_v46 }
 0x6bb   :  { %v4763_v60 = vmul.f32 0.01, %v4607_v18  ;;  %vm4731_vm7 = vcmp.gt.f32.partialorder %v4607_v18, 0.0  ;;  %v4797_v63 = vsel %vm4733_vm6, %v4615_v26, %v4765_v15 }
 0x6bc   :  { %4865 = vadd.xlane.f32.xlu1 %v4833_v50  ;;  %v4836_v61 = vmul.f32 %v8336_v47, %v4797_v63 }
 0x6bd   :  { %v4795_v7 = vsel %vm4731_vm7, %v4607_v18, %v4763_v60 }
 0x6be   :  { %v4834_v51 = vmul.f32 %v8336_v47, %v4795_v7 }
 0x6c0   :  { %4867 = vadd.xlane.f32.xlu0 %v4834_v51  ;;  %4871 = vadd.xlane.f32.xlu1 %v4836_v61 }
 0x6c3   :  { %v5655_v38 = vpop.f32.mrf.mxu0 }
 0x6c4   :  { %v4628_v53 = vadd.f32 %v5655_v38, %v8329_v33 }
 0x6c5   :  { %v4619_v3 = vpop.f32.mrf.mxu0 }
 0x6c6   :  { %v4768_v62 = vmul.f32 0.01, %v4628_v53  ;;  %v4620_v17 = vadd.f32 %v8329_v33, %v4619_v3  ;;  %vm4736_vm8 = vcmp.gt.f32.partialorder %v4628_v53, 0.0 }
 0x6c7   :  { %v5656_v23 = vpop.f32.mrf.mxu0 }
 0x6c8   :  { %v4766_v28 = vmul.f32 0.01, %v4620_v17  ;;  %v4631_v0 = vadd.f32 %v5656_v23, %v8329_v33  ;;  %v4800_v22 = vsel %vm4736_vm8, %v4628_v53, %v4768_v62  ;;  %vm4734_vm9 = vcmp.gt.f32.partialorder %v4620_v17, 0.0 }
 0x6c9   :  { %v4622_v40 = vpop.f32.mrf.mxu0  ;;  %v4839_v56 = vmul.f32 %v8336_v47, %v4800_v22 }
 0x6ca   :  { %v4769_v8 = vmul.f32 0.01, %v4631_v0  ;;  %v4623_v43 = vadd.f32 %v8329_v33, %v4622_v40  ;;  %v4798_v5 = vsel %vm4734_vm9, %v4620_v17, %v4766_v28  ;;  %vm4737_vm10 = vcmp.gt.f32.partialorder %v4631_v0, 0.0 }
 0x6cb   :  { %4877 = vadd.xlane.f32.xlu0 %v4839_v56  ;;  %v4837_v4 = vmul.f32 %v8336_v47, %v4798_v5 }
 0x6cc   :  { %v4767_v20 = vmul.f32 0.01, %v4623_v43  ;;  %v4801_v29 = vsel %vm4737_vm10, %v4631_v0, %v4769_v8  ;;  %vm4735_vm11 = vcmp.gt.f32.partialorder %v4623_v43, 0.0 }
 0x6cd   :  { %v4840_v10 = vmul.f32 %v8336_v47, %v4801_v29 }
 0x6ce   :  { %v4799_v25 = vsel %vm4735_vm11, %v4623_v43, %v4767_v20 }
 0x6cf   :  { %4873 = vadd.xlane.f32.xlu0 %v4837_v4  ;;  %4879 = vadd.xlane.f32.xlu1 %v4840_v10  ;;  %v4838_v30 = vmul.f32 %v8336_v47, %v4799_v25 }
 0x6d3   :  { %4875 = vadd.xlane.f32.xlu1 %v4838_v30 }
 0x6d4   :  { %v5659_v49 = vpop.f32.mrf.mxu0 }
 0x6d5   :  { %v4644_v13 = vadd.f32 %v5659_v49, %v8329_v33 }
 0x6d6   :  { %v4635_v45 = vpop.f32.mrf.mxu0 }
 0x6d7   :  { %v4772_v24 = vmul.f32 0.01, %v4644_v13  ;;  %v4636_v19 = vadd.f32 %v8329_v33, %v4635_v45  ;;  %vm4740_vm12 = vcmp.gt.f32.partialorder %v4644_v13, 0.0 }
 0x6d8   :  { %v5660_v9 = vpop.f32.mrf.mxu0 }
 0x6d9   :  { %v4770_v1 = vmul.f32 0.01, %v4636_v19  ;;  %v4647_v36 = vadd.f32 %v5660_v9, %v8329_v33  ;;  %v4804_v52 = vsel %vm4740_vm12, %v4644_v13, %v4772_v24  ;;  %vm4738_vm13 = vcmp.gt.f32.partialorder %v4636_v19, 0.0 }
 0x6da   :  { %v4638_v12 = vpop.f32.mrf.mxu0  ;;  %v4843_v57 = vmul.f32 %v8336_v47, %v4804_v52 }
 0x6db   :  { %v4773_v54 = vmul.f32 0.01, %v4647_v36  ;;  %v4639_v55 = vadd.f32 %v8329_v33, %v4638_v12  ;;  %v4802_v59 = vsel %vm4738_vm13, %v4636_v19, %v4770_v1  ;;  %vm4741_vm14 = vcmp.gt.f32.partialorder %v4647_v36, 0.0 }
 0x6dc   :  { %4885 = vadd.xlane.f32.xlu0 %v4843_v57  ;;  %v4841_v44 = vmul.f32 %v8336_v47, %v4802_v59 }
 0x6dd   :  { %v4771_v37 = vmul.f32 0.01, %v4639_v55  ;;  %v4805_v41 = vsel %vm4741_vm14, %v4647_v36, %v4773_v54  ;;  %vm4739_vm0 = vcmp.gt.f32.partialorder %v4639_v55, 0.0 }
 0x6de   :  { %v4844_v21 = vmul.f32 %v8336_v47, %v4805_v41 }
 0x6df   :  { %v4803_v11 = vsel %vm4739_vm0, %v4639_v55, %v4771_v37 }
 0x6e0   :  { %4881 = vadd.xlane.f32.xlu0 %v4841_v44  ;;  %4887 = vadd.xlane.f32.xlu1 %v4844_v21  ;;  %v4842_v16 = vmul.f32 %v8336_v47, %v4803_v11 }
 0x6e2   :  { %v5663_v31 = vpop.f32.mrf.mxu0 }
 0x6e3   :  { %v4660_v6 = vadd.f32 %v5663_v31, %v8329_v33 }
 0x6e4   :  { %4883 = vadd.xlane.f32.xlu1 %v4842_v16  ;;  %v4651_v48 = vpop.f32.mrf.mxu0 }
 0x6e5   :  { %v4776_v14 = vmul.f32 0.01, %v4660_v6  ;;  %v4652_v35 = vadd.f32 %v8329_v33, %v4651_v48  ;;  %vm4744_vm1 = vcmp.gt.f32.partialorder %v4660_v6, 0.0 }
 0x6e6   :  { %v5664_v32 = vpop.f32.mrf.mxu0 }
 0x6e7   :  { %v4774_v2 = vmul.f32 0.01, %v4652_v35  ;;  %v4663_v58 = vadd.f32 %v5664_v32, %v8329_v33  ;;  %v4808_v27 = vsel %vm4744_vm1, %v4660_v6, %v4776_v14  ;;  %vm4742_vm2 = vcmp.gt.f32.partialorder %v4652_v35, 0.0 }
 0x6e8   :  { %v4654_v26 = vpop.f32.mrf.mxu0  ;;  %v4847_v39 = vmul.f32 %v8336_v47, %v4808_v27 }
 0x6e9   :  { %v4777_v34 = vmul.f32 0.01, %v4663_v58  ;;  %v4655_v42 = vadd.f32 %v8329_v33, %v4654_v26  ;;  %v4806_v15 = vsel %vm4742_vm2, %v4652_v35, %v4774_v2  ;;  %vm4745_vm5 = vcmp.gt.f32.partialorder %v4663_v58, 0.0 }
 0x6ea   :  { %4893 = vadd.xlane.f32.xlu0 %v4847_v39  ;;  %v4845_v50 = vmul.f32 %v8336_v47, %v4806_v15 }
 0x6eb   :  { %v4775_v18 = vmul.f32 0.01, %v4655_v42  ;;  %v4809_v46 = vsel %vm4745_vm5, %v4663_v58, %v4777_v34  ;;  %vm4743_vm3 = vcmp.gt.f32.partialorder %v4655_v42, 0.0 }
 0x6ec   :  { %v4848_v60 = vmul.f32 %v8336_v47, %v4809_v46 }
 0x6ed   :  { %v4807_v63 = vsel %vm4743_vm3, %v4655_v42, %v4775_v18 }
 0x6ee   :  { %4889 = vadd.xlane.f32.xlu0 %v4845_v50  ;;  %4895 = vadd.xlane.f32.xlu1 %v4848_v60  ;;  %v4846_v7 = vmul.f32 %v8336_v47, %v4807_v63 }
 0x6f2   :  { %4891 = vadd.xlane.f32.xlu1 %v4846_v7 }
 0x6f3   :  { %v5667_v51 = vpop.f32.mrf.mxu0 }
 0x6f4   :  { %v4676_v61 = vadd.f32 %v5667_v51, %v8329_v33 }
 0x6f5   :  { %v4667_v38 = vpop.f32.mrf.mxu0 }
 0x6f6   :  { %v4780_v53 = vmul.f32 0.01, %v4676_v61  ;;  %v4668_v3 = vadd.f32 %v8329_v33, %v4667_v38  ;;  %vm4748_vm15 = vcmp.gt.f32.partialorder %v4676_v61, 0.0 }
 0x6f7   :  { %v5668_v62 = vpop.f32.mrf.mxu0 }
 0x6f8   :  { %v4778_v17 = vmul.f32 0.01, %v4668_v3  ;;  %v4679_v23 = vadd.f32 %v5668_v62, %v8329_v33  ;;  %v4812_v28 = vsel %vm4748_vm15, %v4676_v61, %v4780_v53  ;;  %vm4746_vm4 = vcmp.gt.f32.partialorder %v4668_v3, 0.0 }
 0x6f9   :  { %v4670_v0 = vpop.f32.mrf.mxu0  ;;  %v4851_v22 = vmul.f32 %v8336_v47, %v4812_v28  ;;  %vm4968_vm15 = vcmask 7168  }
 0x6fa   :  { %v4781_v40 = vmul.f32 0.01, %v4679_v23  ;;  %v4671_v56 = vadd.f32 %v8329_v33, %v4670_v0  ;;  %v4810_v8 = vsel %vm4746_vm4, %v4668_v3, %v4778_v17  ;;  %vm4749_vm6 = vcmp.gt.f32.partialorder %v4679_v23, 0.0 }
 0x6fb   :  { %4901 = vadd.xlane.f32.xlu0 %v4851_v22  ;;  %v4849_v20 = vmul.f32 %v8336_v47, %v4810_v8 }
 0x6fc   :  { %v4779_v43 = vmul.f32 0.01, %v4671_v56  ;;  %v4813_v5 = vsel %vm4749_vm6, %v4679_v23, %v4781_v40  ;;  %vm4747_vm7 = vcmp.gt.f32.partialorder %v4671_v56, 0.0 }
 0x6fd   :  { %v4852_v29 = vmul.f32 %v8336_v47, %v4813_v5 }
 0x6fe   :  { %v4811_v4 = vsel %vm4747_vm7, %v4671_v56, %v4779_v43 }
 0x6ff   :  { %4897 = vadd.xlane.f32.xlu0 %v4849_v20  ;;  %4903 = vadd.xlane.f32.xlu1 %v4852_v29  ;;  %v4850_v10 = vmul.f32 %v8336_v47, %v4811_v4 }
 0x702   :  { %v5671_v25 = vpop.f32.mrf.mxu0 }
 0x703   :  { %v4692_v30 = vadd.f32 %v5671_v25, %v8329_v33  ;;  %4899 = vadd.xlane.f32.xlu1 %v4850_v10 }
 0x704   :  { %v4683_v49 = vpop.f32.mrf.mxu0 }
 0x705   :  { %v4784_v13 = vmul.f32 0.01, %v4692_v30  ;;  %v4684_v45 = vadd.f32 %v8329_v33, %v4683_v49  ;;  %vm4752_vm8 = vcmp.gt.f32.partialorder %v4692_v30, 0.0 }
 0x706   :  { %v5672_v24 = vpop.f32.mrf.mxu0 }
 0x707   :  { %v4782_v19 = vmul.f32 0.01, %v4684_v45  ;;  %v4695_v9 = vadd.f32 %v5672_v24, %v8329_v33  ;;  %v4816_v1 = vsel %vm4752_vm8, %v4692_v30, %v4784_v13  ;;  %vm4750_vm9 = vcmp.gt.f32.partialorder %v4684_v45, 0.0 }
 0x708   :  { %v4686_v36 = vpop.f32.mrf.mxu0  ;;  %v4855_v52 = vmul.f32 %v8336_v47, %v4816_v1 }
 0x709   :  { %vm4753_vm10 = vcmp.gt.f32.partialorder %v4695_v9, 0.0  ;;  %v4785_v12 = vmul.f32 0.01, %v4695_v9  ;;  %v4687_v57 = vadd.f32 %v8329_v33, %v4686_v36  ;;  %v4814_v54 = vsel %vm4750_vm9, %v4684_v45, %v4782_v19 }
 0x70a   :  { %4909 = vadd.xlane.f32.xlu0 %v4855_v52  ;;  %v4853_v37 = vmul.f32 %v8336_v47, %v4814_v54 }
 0x70b   :  { %vm4751_vm11 = vcmp.gt.f32.partialorder %v4687_v57, 0.0  ;;  %v4783_v55 = vmul.f32 0.01, %v4687_v57  ;;  %v4817_v59 = vsel %vm4753_vm10, %v4695_v9, %v4785_v12 }
 0x70c   :  { %v4856_v41 = vmul.f32 %v8336_v47, %v4817_v59 }
 0x70d   :  { %v4815_v44 = vsel %vm4751_vm11, %v4687_v57, %v4783_v55 }
 0x70e   :  { %4905 = vadd.xlane.f32.xlu0 %v4853_v37  ;;  %4911 = vadd.xlane.f32.xlu1 %v4856_v41  ;;  %v4854_v21 = vmul.f32 %v8336_v47, %v4815_v44 }
 0x712   :  { %4907 = vadd.xlane.f32.xlu1 %v4854_v21 }
 0x713   :  { %v5675_v11 = vpop.f32.mrf.mxu0 }
 0x714   :  { %v4708_v31 = vadd.f32 %v5675_v11, %v8329_v33 }
 0x715   :  { %v4699_v16 = vpop.f32.mrf.mxu0 }
 0x716   :  { %v4788_v6 = vmul.f32 0.01, %v4708_v31  ;;  %v4700_v48 = vadd.f32 %v8329_v33, %v4699_v16  ;;  %vm4756_vm12 = vcmp.gt.f32.partialorder %v4708_v31, 0.0 }
 0x717   :  { %v5676_v14 = vpop.f32.mrf.mxu0 }
 0x718   :  { %v4786_v35 = vmul.f32 0.01, %v4700_v48  ;;  %v4711_v32 = vadd.f32 %v5676_v14, %v8329_v33  ;;  %v4820_v2 = vsel %vm4756_vm12, %v4708_v31, %v4788_v6  ;;  %vm4754_vm13 = vcmp.gt.f32.partialorder %v4700_v48, 0.0 }
 0x719   :  { %v4702_v58 = vpop.f32.mrf.mxu0  ;;  %v4859_v27 = vmul.f32 %v8336_v47, %v4820_v2 }
 0x71a   :  { %vm4757_vm14 = vcmp.gt.f32.partialorder %v4711_v32, 0.0  ;;  %v4789_v26 = vmul.f32 0.01, %v4711_v32  ;;  %v4703_v39 = vadd.f32 %v8329_v33, %v4702_v58  ;;  %v4818_v34 = vsel %vm4754_vm13, %v4700_v48, %v4786_v35 }
 0x71b   :  { %4917 = vadd.xlane.f32.xlu0 %v4859_v27  ;;  %v4857_v18 = vmul.f32 %v8336_v47, %v4818_v34 }
 0x71c   :  { %vm4755_vm0 = vcmp.gt.f32.partialorder %v4703_v39, 0.0  ;;  %v4787_v42 = vmul.f32 0.01, %v4703_v39  ;;  %v4821_v15 = vsel %vm4757_vm14, %v4711_v32, %v4789_v26 }
 0x71d   :  { %v4860_v46 = vmul.f32 %v8336_v47, %v4821_v15 }
 0x71e   :  { %v4819_v50 = vsel %vm4755_vm0, %v4703_v39, %v4787_v42 }
 0x71f   :  { %4913 = vadd.xlane.f32.xlu0 %v4857_v18  ;;  %4919 = vadd.xlane.f32.xlu1 %v4860_v46  ;;  %v4858_v60 = vmul.f32 %v8336_v47, %v4819_v50 }
 0x722   :  { %v5679_v63 = vpop.f32.mrf.mxu0 }
 0x723   :  { %v4724_v7 = vadd.f32 %v5679_v63, %v8329_v33  ;;  %4915 = vadd.xlane.f32.xlu1 %v4858_v60 }
 0x724   :  { %v4715_v51 = vpop.f32.mrf.mxu0 }
 0x725   :  { %v4716_v61 = vadd.f32 %v8329_v33, %v4715_v51  ;;  %v4792_v53 = vmul.f32 0.01, %v4724_v7  ;;  %vm4760_vm2 = vcmp.gt.f32.partialorder %v4724_v7, 0.0 }
 0x726   :  { %v5680_v38 = vpop.f32.mrf.mxu0 }
 0x727   :  { %v4790_v3 = vmul.f32 0.01, %v4716_v61  ;;  %v4727_v62 = vadd.f32 %v5680_v38, %v8329_v33  ;;  %vm4758_vm1 = vcmp.gt.f32.partialorder %v4716_v61, 0.0  ;;  %v4824_v56 = vsel %vm4760_vm2, %v4724_v7, %v4792_v53 }
 0x728   :  { %v4718_v17 = vpop.f32.mrf.mxu0  ;;  %v4863_v43 = vmul.f32 %v8336_v47, %v4824_v56 }
 0x729   :  { %v4719_v23 = vadd.f32 %v8329_v33, %v4718_v17  ;;  %v4822_v28 = vsel %vm4758_vm1, %v4716_v61, %v4790_v3  ;;  %v4793_v22 = vmul.f32 0.01, %v4727_v62  ;;  %vm4761_vm3 = vcmp.gt.f32.partialorder %v4727_v62, 0.0  ;;  %v8403_v33 = vld [vmem:[#allocation2] ss:$0 sm:$0xff] }
 0x72a   :  { %v4861_v0 = vmul.f32 %v8336_v47, %v4822_v28 }
 0x72b   :  { %vm4759_vm5 = vcmp.gt.f32.partialorder %v4719_v23, 0.0  ;;  %v4791_v40 = vmul.f32 0.01, %v4719_v23  ;;  %v4825_v20 = vsel %vm4761_vm3, %v4727_v62, %v4793_v22 }
 0x72c   :  { %4921 = vadd.xlane.f32.xlu0 %v4861_v0  ;;  %v4864_v29 = vmul.f32 %v8336_v47, %v4825_v20 }
 0x72d   :  { %v4823_v8 = vsel %vm4759_vm5, %v4719_v23, %v4791_v40 }
 0x72e   :  { %v4862_v5 = vmul.f32 %v8336_v47, %v4823_v8 }
 0x730   :  { %4925 = vadd.xlane.f32.xlu0 %v4863_v43  ;;  %4923 = vadd.xlane.f32.xlu1 %v4862_v5 }
 0x734   :  { %4927 = vadd.xlane.f32.xlu1 %v4864_v29 }
 0x743   :  { %v4870_v4 = vpop.xlane.xlu0 %4869 }
 0x744   :  { %v4938_v10 = vadd.f32 %v8403_v33, %v4870_v4 }
 0x745   :  { %v4866_v25 = vpop.xlane.xlu1 %4865 }
 0x746   :  { %4971 = vst.msk [vmem:[%s8584_s19 + $0x10] sm:$0xff] %vm4968_vm15, %v4938_v10  ;;  %v4936_v30 = vadd.f32 %v8403_v33, %v4866_v25 }
 0x748   :  { %4969 = vst.msk [vmem:[%s8584_s19] sm:$0xff] %vm4968_vm15, %v4936_v30 }
 0x749   :  { %v4868_v47 = vpop.xlane.xlu0 %4867  ;;  %v4872_v49 = vpop.xlane.xlu1 %4871 }
 0x74a   :  { %v4937_v13 = vadd.f32 %v8403_v33, %v4868_v47  ;;  %v4939_v45 = vadd.f32 %v8403_v33, %v4872_v49 }
 0x74c   :  { %4970 = vst.msk [vmem:[%s8584_s19 + $0x8] sm:$0xff] %vm4968_vm15, %v4937_v13  ;;  %4972 = vst.msk [vmem:[%s8584_s19 + $0x18] sm:$0xff] %vm4968_vm15, %v4939_v45 }
 0x754   :  { %v4878_v24 = vpop.xlane.xlu0 %4877 }
 0x755   :  { %v4942_v19 = vadd.f32 %v8403_v33, %v4878_v24 }
 0x757   :  { %4975 = vst.msk [vmem:[%s8584_s19 + $0x30] sm:$0xff] %vm4968_vm15, %v4942_v19 }
 0x758   :  { %v4874_v9 = vpop.xlane.xlu0 %4873  ;;  %v4880_v1 = vpop.xlane.xlu1 %4879 }
 0x759   :  { %v4940_v36 = vadd.f32 %v8403_v33, %v4874_v9  ;;  %v4943_v52 = vadd.f32 %v8403_v33, %v4880_v1 }
 0x75b   :  { %4973 = vst.msk [vmem:[%s8584_s19 + $0x20] sm:$0xff] %vm4968_vm15, %v4940_v36  ;;  %4976 = vst.msk [vmem:[%s8584_s19 + $0x38] sm:$0xff] %vm4968_vm15, %v4943_v52 }
 0x75c   :  { %v4876_v12 = vpop.xlane.xlu1 %4875 }
 0x75d   :  { %v4941_v57 = vadd.f32 %v8403_v33, %v4876_v12 }
 0x75f   :  { %4974 = vst.msk [vmem:[%s8584_s19 + $0x28] sm:$0xff] %vm4968_vm15, %v4941_v57 }
 0x765   :  { %v4886_v54 = vpop.xlane.xlu0 %4885 }
 0x766   :  { %v4946_v55 = vadd.f32 %v8403_v33, %v4886_v54 }
 0x768   :  { %4979 = vst.msk [vmem:[%s8584_s19 + $0x50] sm:$0xff] %vm4968_vm15, %v4946_v55 }
 0x769   :  { %v4882_v59 = vpop.xlane.xlu0 %4881  ;;  %v4888_v37 = vpop.xlane.xlu1 %4887 }
 0x76a   :  { %v4944_v41 = vadd.f32 %v8403_v33, %v4882_v59  ;;  %v4947_v44 = vadd.f32 %v8403_v33, %v4888_v37 }
 0x76c   :  { %4977 = vst.msk [vmem:[%s8584_s19 + $0x40] sm:$0xff] %vm4968_vm15, %v4944_v41  ;;  %4980 = vst.msk [vmem:[%s8584_s19 + $0x58] sm:$0xff] %vm4968_vm15, %v4947_v44 }
 0x76d   :  { %v4884_v21 = vpop.xlane.xlu1 %4883 }
 0x76e   :  { %v4945_v11 = vadd.f32 %v8403_v33, %v4884_v21 }
 0x770   :  { %4978 = vst.msk [vmem:[%s8584_s19 + $0x48] sm:$0xff] %vm4968_vm15, %v4945_v11 }
 0x773   :  { %v4894_v31 = vpop.xlane.xlu0 %4893 }
 0x774   :  { %v4950_v16 = vadd.f32 %v8403_v33, %v4894_v31 }
 0x776   :  { %4983 = vst.msk [vmem:[%s8584_s19 + $0x70] sm:$0xff] %vm4968_vm15, %v4950_v16 }
 0x777   :  { %v4890_v6 = vpop.xlane.xlu0 %4889  ;;  %v4896_v48 = vpop.xlane.xlu1 %4895 }
 0x778   :  { %v4948_v14 = vadd.f32 %v8403_v33, %v4890_v6  ;;  %v4951_v35 = vadd.f32 %v8403_v33, %v4896_v48 }
 0x77a   :  { %4981 = vst.msk [vmem:[%s8584_s19 + $0x60] sm:$0xff] %vm4968_vm15, %v4948_v14  ;;  %4984 = vst.msk [vmem:[%s8584_s19 + $0x78] sm:$0xff] %vm4968_vm15, %v4951_v35 }
 0x77b   :  { %v4892_v32 = vpop.xlane.xlu1 %4891 }
 0x77c   :  { %v4949_v2 = vadd.f32 %v8403_v33, %v4892_v32 }
 0x77e   :  { %4982 = vst.msk [vmem:[%s8584_s19 + $0x68] sm:$0xff] %vm4968_vm15, %v4949_v2 }
 0x784   :  { %v4902_v58 = vpop.xlane.xlu0 %4901 }
 0x785   :  { %v4954_v27 = vadd.f32 %v8403_v33, %v4902_v58 }
 0x787   :  { %4987 = vst.msk [vmem:[%s8584_s19 + $0x90] sm:$0xff] %vm4968_vm15, %v4954_v27 }
 0x788   :  { %v4898_v26 = vpop.xlane.xlu0 %4897  ;;  %v4904_v39 = vpop.xlane.xlu1 %4903 }
 0x789   :  { %v4952_v34 = vadd.f32 %v8403_v33, %v4898_v26  ;;  %v4955_v42 = vadd.f32 %v8403_v33, %v4904_v39 }
 0x78b   :  { %4985 = vst.msk [vmem:[%s8584_s19 + $0x80] sm:$0xff] %vm4968_vm15, %v4952_v34  ;;  %4988 = vst.msk [vmem:[%s8584_s19 + $0x98] sm:$0xff] %vm4968_vm15, %v4955_v42 }
 0x78c   :  { %v4900_v15 = vpop.xlane.xlu1 %4899 }
 0x78d   :  { %v4953_v18 = vadd.f32 %v8403_v33, %v4900_v15 }
 0x78f   :  { %4986 = vst.msk [vmem:[%s8584_s19 + $0x88] sm:$0xff] %vm4968_vm15, %v4953_v18 }
 0x793   :  { %v4910_v46 = vpop.xlane.xlu0 %4909 }
 0x794   :  { %v4958_v50 = vadd.f32 %v8403_v33, %v4910_v46 }
 0x796   :  { %4991 = vst.msk [vmem:[%s8584_s19 + $0xb0] sm:$0xff] %vm4968_vm15, %v4958_v50 }
 0x797   :  { %v4906_v60 = vpop.xlane.xlu0 %4905  ;;  %v4912_v63 = vpop.xlane.xlu1 %4911 }
 0x798   :  { %v4956_v7 = vadd.f32 %v8403_v33, %v4906_v60  ;;  %v4959_v51 = vadd.f32 %v8403_v33, %v4912_v63 }
 0x79a   :  { %4989 = vst.msk [vmem:[%s8584_s19 + $0xa0] sm:$0xff] %vm4968_vm15, %v4956_v7  ;;  %4992 = vst.msk [vmem:[%s8584_s19 + $0xb8] sm:$0xff] %vm4968_vm15, %v4959_v51 }
 0x79b   :  { %v4908_v61 = vpop.xlane.xlu1 %4907 }
 0x79c   :  { %v4957_v38 = vadd.f32 %v8403_v33, %v4908_v61 }
 0x79e   :  { %4990 = vst.msk [vmem:[%s8584_s19 + $0xa8] sm:$0xff] %vm4968_vm15, %v4957_v38 }
 0x7a4   :  { %v4918_v53 = vpop.xlane.xlu0 %4917 }
 0x7a5   :  { %v4962_v3 = vadd.f32 %v8403_v33, %v4918_v53 }
 0x7a7   :  { %4995 = vst.msk [vmem:[%s8584_s19 + $0xd0] sm:$0xff] %vm4968_vm15, %v4962_v3 }
 0x7a8   :  { %v4914_v62 = vpop.xlane.xlu0 %4913  ;;  %v4920_v17 = vpop.xlane.xlu1 %4919 }
 0x7a9   :  { %v4960_v23 = vadd.f32 %v8403_v33, %v4914_v62  ;;  %v4963_v28 = vadd.f32 %v8403_v33, %v4920_v17 }
 0x7ab   :  { %4993 = vst.msk [vmem:[%s8584_s19 + $0xc0] sm:$0xff] %vm4968_vm15, %v4960_v23  ;;  %4996 = vst.msk [vmem:[%s8584_s19 + $0xd8] sm:$0xff] %vm4968_vm15, %v4963_v28 }
 0x7ac   :  { %v4916_v0 = vpop.xlane.xlu1 %4915 }
 0x7ad   :  { %v4961_v22 = vadd.f32 %v8403_v33, %v4916_v0 }
 0x7af   :  { %4994 = vst.msk [vmem:[%s8584_s19 + $0xc8] sm:$0xff] %vm4968_vm15, %v4961_v22 }
 0x7b5   :  { %v4922_v40 = vpop.xlane.xlu0 %4921 }
 0x7b6   :  { %v4964_v56 = vadd.f32 %v8403_v33, %v4922_v40 }
 0x7b8   :  { %4997 = vst.msk [vmem:[%s8584_s19 + $0xe0] sm:$0xff] %vm4968_vm15, %v4964_v56 }
 0x7b9   :  { %v4926_v8 = vpop.xlane.xlu0 %4925  ;;  %v4924_v43 = vpop.xlane.xlu1 %4923 }
 0x7ba   :  { %v4966_v5 = vadd.f32 %v8403_v33, %v4926_v8  ;;  %v4965_v20 = vadd.f32 %v8403_v33, %v4924_v43 }
 0x7bc   :  { %4999 = vst.msk [vmem:[%s8584_s19 + $0xf0] sm:$0xff] %vm4968_vm15, %v4966_v5  ;;  %4998 = vst.msk [vmem:[%s8584_s19 + $0xe8] sm:$0xff] %vm4968_vm15, %v4965_v20 }
 0x7bd   :  { %v4928_v29 = vpop.xlane.xlu1 %4927 }
 0x7be   :  { %v4967_v4 = vadd.f32 %v8403_v33, %v4928_v29 }
 0x7c0   :  { %5000 = vst.msk [vmem:[%s8584_s19 + $0xf8] sm:$0xff] %vm4968_vm15, %v4967_v4 }

</bundles_post_ra>
